<compile_context>
chip_gen: v5e
topology: v5e:2x2
jax: 0.10.0
libtpu: 0.0.40
codegen_flags: <defaults>
</compile_context>

<pallas_src>
import functools

import jax
import jax.numpy as jnp
from jax.experimental import pallas as pl
from jax.experimental.pallas import tpu as pltpu

_BN_EPS = 1e-5


def _round_up(x, m):
    return (x + m - 1) // m * m


def _largest_tile(npad, base, cap):
    """Largest multiple of `base` that divides `npad` and is <= cap."""
    nt = npad // base
    best = base
    for f in range(1, nt + 1):
        if nt % f == 0 and base * f <= cap:
            best = base * f
    return best


@functools.lru_cache(maxsize=None)
def _tpu_config():
    """Generation-aware tiling / VMEM budget."""
    vmem_phys = 64 * 1024 * 1024  # conservative fallback (v7x per-core VMEM)
    try:
        vmem_phys = int(pltpu.get_tpu_info().vmem_capacity_bytes)
    except Exception:
        pass
    is_v5e = False
    try:
        kind = jax.devices()[0].device_kind.lower()
        is_v5e = ("v5e" in kind) or ("v5 lite" in kind) or ("v5litepod" in kind)
    except Exception:
        pass
    if vmem_phys <= 96 * 1024 * 1024:
        # v7x-class: 64 MiB physical VMEM per TensorCore -> conservative tiles.
        return {"vmem_limit": 48 * 1024 * 1024, "mm_rows": 512, "ep_rows": 512,
                "wide_lanes": not is_v5e}
    # v5e / v6e class: 128 MiB physical VMEM -> bigger tiles, bigger budget.
    return {"vmem_limit": 96 * 1024 * 1024, "mm_rows": 1024, "ep_rows": 1024,
            "wide_lanes": not is_v5e}


def _cparams(cfg):
    return pltpu.CompilerParams(
        dimension_semantics=("parallel",),  # row-tile axis: shard across TCs
        vmem_limit_bytes=cfg["vmem_limit"],
    )


# ----------------------------------------------------------------------------
# Kernel A: conv matmul (bf16 x bf16 -> f32 acc) + per-tile partial BN stats.
# Output y is emitted in bf16; stats come from the f32 accumulator.
# Optionally fuses the 1x1 projection shortcut (center-tap slice of the patch).
# ----------------------------------------------------------------------------
def _mm_emit(p, w, y_ref, s_ref, q_ref):
    acc = jnp.dot(p, w, preferred_element_type=jnp.float32)
    y_ref[...] = acc.astype(y_ref.dtype)
    s_ref[...] = jnp.sum(acc, axis=0).reshape(1, 1, -1)
    q_ref[...] = jnp.sum(acc * acc, axis=0).reshape(1, 1, -1)


def _mm_stats_kernel(p_ref, w_ref, y_ref, s_ref, q_ref):
    _mm_emit(p_ref[...], w_ref[...], y_ref, s_ref, q_ref)


def _mm_stats_proj_kernel(p_ref, w_ref, ws_ref,
                          y_ref, s_ref, q_ref, ysc_ref, ss_ref, qs_ref, *, cin):
    p = p_ref[...]
    _mm_emit(p, w_ref[...], y_ref, s_ref, q_ref)
    # 1x1 projection shortcut: its input is exactly the center-tap (dy=1,dx=1)
    # channel block of the conv1 patch tile already resident in VMEM.
    _mm_emit(p[:, 4 * cin:5 * cin], ws_ref[...], ysc_ref, ss_ref, qs_ref)


def _matmul_stats(patches, weights, tm, cfg, ws=None, cin=None):
    """patches (Npad,K) bf16, weights (K,Cp) bf16 -> y bf16, partial stats f32.

    If ws is given, also computes the fused 1x1 projection shortcut."""
    npad, k = patches.shape
    cp = weights.shape[1]
    ntiles = npad // tm

    inputs = [patches, weights]
    in_specs = [
        pl.BlockSpec((tm, k), lambda i: (i, 0)),
        pl.BlockSpec((k, cp), lambda i: (0, 0)),
    ]
    out_specs = [
        pl.BlockSpec((tm, cp), lambda i: (i, 0)),
        pl.BlockSpec((1, 1, cp), lambda i: (i, 0, 0)),
        pl.BlockSpec((1, 1, cp), lambda i: (i, 0, 0)),
    ]
    out_shape = [
        jax.ShapeDtypeStruct((npad, cp), jnp.bfloat16),
        jax.ShapeDtypeStruct((ntiles, 1, cp), jnp.float32),
        jax.ShapeDtypeStruct((ntiles, 1, cp), jnp.float32),
    ]
    if ws is not None:
        kernel = functools.partial(_mm_stats_proj_kernel, cin=cin)
        inputs.append(ws)
        in_specs.append(pl.BlockSpec((ws.shape[0], cp), lambda i: (0, 0)))
        out_specs += [
            pl.BlockSpec((tm, cp), lambda i: (i, 0)),
            pl.BlockSpec((1, 1, cp), lambda i: (i, 0, 0)),
            pl.BlockSpec((1, 1, cp), lambda i: (i, 0, 0)),
        ]
        out_shape += [
            jax.ShapeDtypeStruct((npad, cp), jnp.bfloat16),
            jax.ShapeDtypeStruct((ntiles, 1, cp), jnp.float32),
            jax.ShapeDtypeStruct((ntiles, 1, cp), jnp.float32),
        ]
    else:
        kernel = _mm_stats_kernel

    return pl.pallas_call(
        kernel,
        grid=(ntiles,),
        in_specs=in_specs,
        out_specs=out_specs,
        out_shape=out_shape,
        compiler_params=_cparams(cfg),
    )(*inputs)


# ----------------------------------------------------------------------------
# Kernel B: BN affine (+ optional residual, raw or with its own BN affine)
# + ReLU.  Memory-bound: bf16 in/out streams, f32 math, large row tile.
# ----------------------------------------------------------------------------
def _bn_affine_kernel(*refs, relu, has_res, res_affine):
    if res_affine:
        y_ref, sc_ref, sh_ref, r_ref, rsc_ref, rsh_ref, o_ref = refs
    elif has_res:
        y_ref, sc_ref, sh_ref, r_ref, o_ref = refs
    else:
        y_ref, sc_ref, sh_ref, o_ref = refs

    out = y_ref[...].astype(jnp.float32) * sc_ref[...] + sh_ref[...]
    if res_affine:
        out = out + r_ref[...].astype(jnp.float32) * rsc_ref[...] + rsh_ref[...]
    elif has_res:
        out = out + r_ref[...].astype(jnp.float32)
    if relu:
        out = jnp.maximum(out, 0.0)
    o_ref[...] = out.astype(o_ref.dtype)


def _bn_affine(y, scale, shift, tm, cfg, relu, out_dtype,
               res=None, res_scale=None, res_shift=None):
    npad, cp = y.shape
    ntiles = npad // tm
    has_res = res is not None
    res_affine = res_scale is not None

    inputs = [y, scale, shift]
    in_specs = [
        pl.BlockSpec((tm, cp), lambda i: (i, 0)),
        pl.BlockSpec((1, cp), lambda i: (0, 0)),
        pl.BlockSpec((1, cp), lambda i: (0, 0)),
    ]
    if has_res:
        inputs.append(res)
        in_specs.append(pl.BlockSpec((tm, cp), lambda i: (i, 0)))
    if res_affine:
        inputs += [res_scale, res_shift]
        in_specs += [
            pl.BlockSpec((1, cp), lambda i: (0, 0)),
            pl.BlockSpec((1, cp), lambda i: (0, 0)),
        ]

    kernel = functools.partial(
        _bn_affine_kernel, relu=relu, has_res=has_res, res_affine=res_affine
    )
    return pl.pallas_call(
        kernel,
        grid=(ntiles,),
        in_specs=in_specs,
        out_specs=pl.BlockSpec((tm, cp), lambda i: (i, 0)),
        out_shape=jax.ShapeDtypeStruct((npad, cp), out_dtype),
        compiler_params=_cparams(cfg),
    )(*inputs)


# ----------------------------------------------------------------------------
# Plain-JAX glue: im2col (in bf16), weight re-layout, BN stat folding, padding.
# ----------------------------------------------------------------------------
def _im2col3x3(x_nhwc, stride):
    """NHWC -> (B*Ho*Wo, 9*C) patch matrix, tap-major / channel-minor columns."""
    b, h, w, c = x_nhwc.shape
    xp = jnp.pad(x_nhwc, ((0, 0), (1, 1), (1, 1), (0, 0)))
    ho = (h + 2 - 3) // stride + 1
    wo = (w + 2 - 3) // stride + 1
    cols = []
    for dy in range(3):
        for dx in range(3):
            t = xp[:, dy: dy + stride * ho: stride, dx: dx + stride * wo: stride, :]
            cols.append(t.reshape(b * ho * wo, c))
    return jnp.concatenate(cols, axis=1)  # (N, 9*C), dtype of x_nhwc


def _weight_matrix(w_oihw, cp):
    """PyTorch conv weight (Cout,Cin,kh,kw) -> (kh*kw*Cin, Cp) bf16, Cout zero-padded."""
    cout, cin, kh, kw = w_oihw.shape
    wm = jnp.transpose(w_oihw, (2, 3, 1, 0)).reshape(kh * kw * cin, cout)
    wm = jnp.pad(wm, ((0, 0), (0, cp - cout)))
    return wm.astype(jnp.bfloat16)


def _pad_rows(a, npad):
    return jnp.pad(a, ((0, npad - a.shape[0]), (0, 0)))


def _pad_cols(a, cp):
    return jnp.pad(a, ((0, 0), (0, cp - a.shape[1])))


def _bn_scale_shift(sums, sumsqs, n_rows, gamma, beta, cp):
    """Fold global batch stats into per-channel (scale, shift): y*s + t == BN(y)."""
    s = jnp.sum(sums[:, 0, :], axis=0)
    q = jnp.sum(sumsqs[:, 0, :], axis=0)
    mean = s / n_rows
    var = jnp.maximum(q / n_rows - mean * mean, 0.0)  # biased var (training mode)
    g = jnp.pad(gamma.astype(jnp.float32), (0, cp - gamma.shape[0]), constant_values=1.0)
    bb = jnp.pad(beta.astype(jnp.float32), (0, cp - beta.shape[0]))
    scale = g * jax.lax.rsqrt(var + _BN_EPS)
    shift = bb - mean * scale
    return scale.reshape(1, cp), shift.reshape(1, cp)


# ----------------------------------------------------------------------------
# BasicBlock forward (NCHW in, NCHW out, matching the PyTorch module).
# ----------------------------------------------------------------------------
@functools.partial(jax.jit, static_argnames=("stride",))
def basic_block_forward(x_nchw, p, stride=1):
    cfg = _tpu_config()
    x = jnp.transpose(x_nchw, (0, 2, 3, 1)).astype(jnp.float32)  # -> NHWC
    b, h, w, cin = x.shape
    cout = p["w1"].shape[0]
    ho = (h + 2 - 3) // stride + 1
    wo = (w + 2 - 3) // stride + 1
    n = b * ho * wo

    # Lane-dense output channels: 128, or 256 when Cout > 128 on 256-wide MXUs.
    lane = 256 if (cout > 128 and cfg["wide_lanes"]) else 128
    cp = _round_up(cout, lane)

    tm = min(cfg["mm_rows"], _round_up(n, 8))      # matmul row tile
    npad = _round_up(n, tm)
    tm_ep = _largest_tile(npad, tm, cfg["ep_rows"])  # bigger tile for epilogue

    x_bf16 = x.astype(jnp.bfloat16)                # cast ONCE, before im2col

    # ---- conv1 (3x3, stride) [+ fused 1x1 projection shortcut] --------------
    p1 = _pad_rows(_im2col3x3(x_bf16, stride), npad)      # (Npad, 9*Cin) bf16
    w1 = _weight_matrix(p["w1"], cp)                      # (9*Cin, Cp) bf16
    has_proj = (stride != 1) or (cin != cout)
    if has_proj:
        wsc = _weight_matrix(p["ws"], cp)                 # (Cin, Cp) bf16
        y1, s1, q1, ysc, ss, qs = _matmul_stats(p1, w1, tm, cfg, ws=wsc, cin=cin)
        res_scale, res_shift = _bn_scale_shift(ss, qs, n, p["gs"], p["bs"], cp)
        res = ysc                                         # shortcut BN fused below
    else:
        y1, s1, q1 = _matmul_stats(p1, w1, tm, cfg)
        res = _pad_rows(_pad_cols(x_bf16.reshape(n, cin), cp), npad)  # identity, bf16
        res_scale = res_shift = None

    # ---- bn1 + relu (h1 emitted in bf16 for conv2's patch build) ------------
    sc1, sh1 = _bn_scale_shift(s1, q1, n, p["g1"], p["b1"], cp)
    h1 = _bn_affine(y1, sc1, sh1, tm_ep, cfg, relu=True, out_dtype=jnp.bfloat16)

    # ---- conv2 (3x3, stride 1) + bn2 + residual + relu (fused epilogue) -----
    h1_img = h1[:n, :cout].reshape(b, ho, wo, cout)       # bf16
    p2 = _pad_rows(_im2col3x3(h1_img, 1), npad)           # (Npad, 9*Cout) bf16
    w2 = _weight_matrix(p["w2"], cp)
    y2, s2, q2 = _matmul_stats(p2, w2, tm, cfg)
    sc2, sh2 = _bn_scale_shift(s2, q2, n, p["g2"], p["b2"], cp)
    out2d = _bn_affine(y2, sc2, sh2, tm_ep, cfg, relu=True, out_dtype=jnp.float32,
                       res=res, res_scale=res_scale, res_shift=res_shift)

    out = out2d[:n, :cout].reshape(b, ho, wo, cout)
    return jnp.transpose(out, (0, 3, 1, 2))  # -> NCHW


# ----------------------------------------------------------------------------
# Pure-JAX reference (bf16 convolutions / f32 accumulate & f32 BN).  The Pallas
# path additionally streams activations (y1/y2/h1/residual) through bf16, so
# the comparison tolerance is ~1e-2-level (the intended MXU-native contract).
# ----------------------------------------------------------------------------
def reference_forward(x_nchw, p, stride=1):
    x = jnp.transpose(x_nchw, (0, 2, 3, 1)).astype(jnp.float32)

    def conv(z, w_oihw, s, pad):
        w = jnp.transpose(w_oihw, (2, 3, 1, 0))  # -> HWIO
        return jax.lax.conv_general_dilated(
            z.astype(jnp.bfloat16), w.astype(jnp.bfloat16), (s, s),
            [(pad, pad), (pad, pad)],
            dimension_numbers=("NHWC", "HWIO", "NHWC"),
            preferred_element_type=jnp.float32,
        )

    def bn(z, g, bb):
        m = jnp.mean(z, axis=(0, 1, 2), keepdims=True)
        v = jnp.mean(jnp.square(z - m), axis=(0, 1, 2), keepdims=True)
        return (z - m) * jax.lax.rsqrt(v + _BN_EPS) * g + bb

    h = jax.nn.relu(bn(conv(x, p["w1"], stride, 1), p["g1"], p["b1"]))
    h = bn(conv(h, p["w2"], 1, 1), p["g2"], p["b2"])
    cin, cout = x.shape[-1], p["w1"].shape[0]
    if stride != 1 or cin != cout:
        sc = bn(conv(x, p["ws"], stride, 0), p["gs"], p["bs"])
    else:
        sc = x
    return jnp.transpose(jax.nn.relu(h + sc), (0, 3, 1, 2))


def _make_params(key, in_planes, planes):
    ks = jax.random.split(key, 9)
    return {
        "w1": 0.1 * jax.random.normal(ks[0], (planes, in_planes, 3, 3), jnp.float32),
        "g1": 1.0 + 0.1 * jax.random.normal(ks[1], (planes,), jnp.float32),
        "b1": 0.1 * jax.random.normal(ks[2], (planes,), jnp.float32),
        "w2": 0.1 * jax.random.normal(ks[3], (planes, planes, 3, 3), jnp.float32),
        "g2": 1.0 + 0.1 * jax.random.normal(ks[4], (planes,), jnp.float32),
        "b2": 0.1 * jax.random.normal(ks[5], (planes,), jnp.float32),
        "ws": 0.1 * jax.random.normal(ks[6], (planes, in_planes, 1, 1), jnp.float32),
        "gs": 1.0 + 0.1 * jax.random.normal(ks[7], (planes,), jnp.float32),
        "bs": 0.1 * jax.random.normal(ks[8], (planes,), jnp.float32),
    }


if __name__ == "__main__":
    configs = [
        ("projection 4->8 stride1", 4, 8, 1),
        ("identity   8->8 stride1", 8, 8, 1),
        ("projection 4->8 stride2", 4, 8, 2),
    ]
    key = jax.random.PRNGKey(0)
    for name, in_planes, planes, stride in configs:
        key, kx, kp = jax.random.split(key, 3)
        x = jax.random.normal(kx, (2, in_planes, 16, 16), jnp.float32)  # NCHW
        params = _make_params(kp, in_planes, planes)

        out = jax.block_until_ready(basic_block_forward(x, params, stride=stride))
        ref = jax.block_until_ready(reference_forward(x, params, stride))

        ho = (16 + 2 - 3) // stride + 1
        assert out.shape == (2, planes, ho, ho), (name, out.shape)
        err = float(jnp.max(jnp.abs(out - ref)))
        # bf16 activation-stream contract -> ~1e-2-level worst-case deviation
        # from the f32-BN reference is expected; 4e-2 (<1% of output range).
        assert err < 4e-2, f"{name}: max abs error vs reference: {err}"

    print("KERNEL_OK")
</pallas_src>

<mosaic_0001>
module attributes {stable_mosaic.version = 11 : i64} {
  func.func @_bn_affine_kernel(%arg0: i32, %arg1: memref<512x128xbf16, #tpu.memory_space<vmem>>, %arg2: memref<1x128xf32, #tpu.memory_space<vmem>>, %arg3: memref<1x128xf32, #tpu.memory_space<vmem>>, %arg4: memref<512x128xbf16, #tpu.memory_space<vmem>>) attributes {dimension_semantics = [#tpu.dimension_semantics<parallel>], iteration_bounds = array<i64: 1>, scalar_prefetch = 0 : i64, scratch_operands = 0 : i64, tpu.core_type = #tpu.core_type<tc>, window_params = [{transform_indices = @transform_0, window_bounds = array<i64: 512, 128>}, {pipeline_mode = #tpu.pipeline_mode<synchronous>, transform_indices = @transform_1, window_bounds = array<i64: 1, 128>}, {pipeline_mode = #tpu.pipeline_mode<synchronous>, transform_indices = @transform_2, window_bounds = array<i64: 1, 128>}, {transform_indices = @transform_3, window_bounds = array<i64: 512, 128>}]} {
    %c0 = arith.constant 0 : index
    %c0_0 = arith.constant 0 : index
    %0 = vector.load %arg1[%c0, %c0_0] : memref<512x128xbf16, #tpu.memory_space<vmem>>, vector<512x128xbf16>
    %1 = arith.extf %0 : vector<512x128xbf16> to vector<512x128xf32>
    %c0_1 = arith.constant 0 : index
    %c0_2 = arith.constant 0 : index
    %2 = vector.load %arg2[%c0_1, %c0_2] : memref<1x128xf32, #tpu.memory_space<vmem>>, vector<1x128xf32>
    %3 = vector.broadcast %2 : vector<1x128xf32> to vector<512x128xf32>
    %4 = arith.mulf %1, %3 : vector<512x128xf32>
    %c0_3 = arith.constant 0 : index
    %c0_4 = arith.constant 0 : index
    %5 = vector.load %arg3[%c0_3, %c0_4] : memref<1x128xf32, #tpu.memory_space<vmem>>, vector<1x128xf32>
    %6 = vector.broadcast %5 : vector<1x128xf32> to vector<512x128xf32>
    %7 = arith.addf %4, %6 : vector<512x128xf32>
    %cst = arith.constant 0.000000e+00 : f32
    %8 = vector.broadcast %cst : f32 to vector<512x128xf32>
    %9 = arith.maximumf %7, %8 : vector<512x128xf32>
    %10 = arith.truncf %9 : vector<512x128xf32> to vector<512x128xbf16>
    %c0_5 = arith.constant 0 : index
    %c0_6 = arith.constant 0 : index
    %11 = vector.load %arg4[%c0_5, %c0_6] : memref<512x128xbf16, #tpu.memory_space<vmem>>, vector<512x128xbf16>
    tpu.vector_store %arg4[%c0_5, %c0_6], %10 {strides = array<i32>} : memref<512x128xbf16, #tpu.memory_space<vmem>>, vector<512x128xbf16>,
    return
  }
  func.func @transform_0(%arg0: i32) -> (i32, i32) {
    %c0_i32 = arith.constant 0 : i32
    %c0_i32_0 = arith.constant 0 : i32
    return %arg0, %c0_i32 : i32, i32
  }
  func.func @transform_1(%arg0: i32) -> (i32, i32) {
    %c0_i32 = arith.constant 0 : i32
    %c0_i32_0 = arith.constant 0 : i32
    %c0_i32_1 = arith.constant 0 : i32
    return %c0_i32, %c0_i32_0 : i32, i32
  }
  func.func @transform_2(%arg0: i32) -> (i32, i32) {
    %c0_i32 = arith.constant 0 : i32
    %c0_i32_0 = arith.constant 0 : i32
    %c0_i32_1 = arith.constant 0 : i32
    return %c0_i32, %c0_i32_0 : i32, i32
  }
  func.func @transform_3(%arg0: i32) -> (i32, i32) {
    %c0_i32 = arith.constant 0 : i32
    %c0_i32_0 = arith.constant 0 : i32
    return %arg0, %c0_i32 : i32, i32
  }
}

module attributes {stable_mosaic.version = 11 : i64} {
  func.func @_mm_stats_proj_kernel(%arg0: i32, %arg1: memref<512x36xbf16, #tpu.memory_space<vmem>>, %arg2: memref<36x128xbf16, #tpu.memory_space<vmem>>, %arg3: memref<4x128xbf16, #tpu.memory_space<vmem>>, %arg4: memref<512x128xbf16, #tpu.memory_space<vmem>>, %arg5: memref<1x1x128xf32, #tpu.memory_space<vmem>>, %arg6: memref<1x1x128xf32, #tpu.memory_space<vmem>>, %arg7: memref<512x128xbf16, #tpu.memory_space<vmem>>, %arg8: memref<1x1x128xf32, #tpu.memory_space<vmem>>, %arg9: memref<1x1x128xf32, #tpu.memory_space<vmem>>) attributes {dimension_semantics = [#tpu.dimension_semantics<parallel>], iteration_bounds = array<i64: 1>, scalar_prefetch = 0 : i64, scratch_operands = 0 : i64, tpu.core_type = #tpu.core_type<tc>, window_params = [{transform_indices = @transform_0, window_bounds = array<i64: 512, 36>}, {pipeline_mode = #tpu.pipeline_mode<synchronous>, transform_indices = @transform_1, window_bounds = array<i64: 36, 128>}, {pipeline_mode = #tpu.pipeline_mode<synchronous>, transform_indices = @transform_2, window_bounds = array<i64: 4, 128>}, {transform_indices = @transform_3, window_bounds = array<i64: 512, 128>}, {transform_indices = @transform_4, window_bounds = array<i64: 1, 1, 128>}, {transform_indices = @transform_5, window_bounds = array<i64: 1, 1, 128>}, {transform_indices = @transform_6, window_bounds = array<i64: 512, 128>}, {transform_indices = @transform_7, window_bounds = array<i64: 1, 1, 128>}, {transform_indices = @transform_8, window_bounds = array<i64: 1, 1, 128>}]} {
    %c0 = arith.constant 0 : index
    %c0_0 = arith.constant 0 : index
    %0 = vector.load %arg1[%c0, %c0_0] : memref<512x36xbf16, #tpu.memory_space<vmem>>, vector<512x36xbf16>
    %c0_1 = arith.constant 0 : index
    %c0_2 = arith.constant 0 : index
    %1 = vector.load %arg2[%c0_1, %c0_2] : memref<36x128xbf16, #tpu.memory_space<vmem>>, vector<36x128xbf16>
    %cst = arith.constant dense<0.000000e+00> : vector<512x128xf32>
    %2 = tpu.matmul %0, %1, %cst {dimension_numbers = #tpu.dot_dimension_numbers<[1], [0], [0], [1], [0, 0, 1, 1], [], []>} : vector<512x36xbf16>, vector<36x128xbf16>, vector<512x128xf32> -> vector<512x128xf32>
    %3 = arith.truncf %2 : vector<512x128xf32> to vector<512x128xbf16>
    %c0_3 = arith.constant 0 : index
    %c0_4 = arith.constant 0 : index
    %4 = vector.load %arg4[%c0_3, %c0_4] : memref<512x128xbf16, #tpu.memory_space<vmem>>, vector<512x128xbf16>
    tpu.vector_store %arg4[%c0_3, %c0_4], %3 {strides = array<i32>} : memref<512x128xbf16, #tpu.memory_space<vmem>>, vector<512x128xbf16>,
    %cst_5 = arith.constant dense<0.000000e+00> : vector<128xf32>
    %5 = vector.multi_reduction <add>, %2, %cst_5 [0] : vector<512x128xf32> to vector<128xf32>
    %6 = vector.shape_cast %5 : vector<128xf32> to vector<1x1x128xf32>
    %c0_6 = arith.constant 0 : index
    %c0_7 = arith.constant 0 : index
    %c0_8 = arith.constant 0 : index
    %7 = vector.load %arg5[%c0_6, %c0_7, %c0_8] : memref<1x1x128xf32, #tpu.memory_space<vmem>>, vector<1x1x128xf32>
    tpu.vector_store %arg5[%c0_6, %c0_7, %c0_8], %6 {strides = array<i32>} : memref<1x1x128xf32, #tpu.memory_space<vmem>>, vector<1x1x128xf32>,
    %8 = arith.mulf %2, %2 : vector<512x128xf32>
    %cst_9 = arith.constant dense<0.000000e+00> : vector<128xf32>
    %9 = vector.multi_reduction <add>, %8, %cst_9 [0] : vector<512x128xf32> to vector<128xf32>
    %10 = vector.shape_cast %9 : vector<128xf32> to vector<1x1x128xf32>
    %c0_10 = arith.constant 0 : index
    %c0_11 = arith.constant 0 : index
    %c0_12 = arith.constant 0 : index
    %11 = vector.load %arg6[%c0_10, %c0_11, %c0_12] : memref<1x1x128xf32, #tpu.memory_space<vmem>>, vector<1x1x128xf32>
    tpu.vector_store %arg6[%c0_10, %c0_11, %c0_12], %10 {strides = array<i32>} : memref<1x1x128xf32, #tpu.memory_space<vmem>>, vector<1x1x128xf32>,
    %12 = vector.extract_strided_slice %0 {offsets = [0, 16], sizes = [512, 4], strides = [1, 1]} : vector<512x36xbf16> to vector<512x4xbf16>
    %c0_13 = arith.constant 0 : index
    %c0_14 = arith.constant 0 : index
    %13 = vector.load %arg3[%c0_13, %c0_14] : memref<4x128xbf16, #tpu.memory_space<vmem>>, vector<4x128xbf16>
    %cst_15 = arith.constant dense<0.000000e+00> : vector<512x128xf32>
    %14 = tpu.matmul %12, %13, %cst_15 {dimension_numbers = #tpu.dot_dimension_numbers<[1], [0], [0], [1], [0, 0, 1, 1], [], []>} : vector<512x4xbf16>, vector<4x128xbf16>, vector<512x128xf32> -> vector<512x128xf32>
    %15 = arith.truncf %14 : vector<512x128xf32> to vector<512x128xbf16>
    %c0_16 = arith.constant 0 : index
    %c0_17 = arith.constant 0 : index
    %16 = vector.load %arg7[%c0_16, %c0_17] : memref<512x128xbf16, #tpu.memory_space<vmem>>, vector<512x128xbf16>
    tpu.vector_store %arg7[%c0_16, %c0_17], %15 {strides = array<i32>} : memref<512x128xbf16, #tpu.memory_space<vmem>>, vector<512x128xbf16>,
    %cst_18 = arith.constant dense<0.000000e+00> : vector<128xf32>
    %17 = vector.multi_reduction <add>, %14, %cst_18 [0] : vector<512x128xf32> to vector<128xf32>
    %18 = vector.shape_cast %17 : vector<128xf32> to vector<1x1x128xf32>
    %c0_19 = arith.constant 0 : index
    %c0_20 = arith.constant 0 : index
    %c0_21 = arith.constant 0 : index
    %19 = vector.load %arg8[%c0_19, %c0_20, %c0_21] : memref<1x1x128xf32, #tpu.memory_space<vmem>>, vector<1x1x128xf32>
    tpu.vector_store %arg8[%c0_19, %c0_20, %c0_21], %18 {strides = array<i32>} : memref<1x1x128xf32, #tpu.memory_space<vmem>>, vector<1x1x128xf32>,
    %20 = arith.mulf %14, %14 : vector<512x128xf32>
    %cst_22 = arith.constant dense<0.000000e+00> : vector<128xf32>
    %21 = vector.multi_reduction <add>, %20, %cst_22 [0] : vector<512x128xf32> to vector<128xf32>
    %22 = vector.shape_cast %21 : vector<128xf32> to vector<1x1x128xf32>
    %c0_23 = arith.constant 0 : index
    %c0_24 = arith.constant 0 : index
    %c0_25 = arith.constant 0 : index
    %23 = vector.load %arg9[%c0_23, %c0_24, %c0_25] : memref<1x1x128xf32, #tpu.memory_space<vmem>>, vector<1x1x128xf32>
    tpu.vector_store %arg9[%c0_23, %c0_24, %c0_25], %22 {strides = array<i32>} : memref<1x1x128xf32, #tpu.memory_space<vmem>>, vector<1x1x128xf32>,
    return
  }
  func.func @transform_0(%arg0: i32) -> (i32, i32) {
    %c0_i32 = arith.constant 0 : i32
    %c0_i32_0 = arith.constant 0 : i32
    return %arg0, %c0_i32 : i32, i32
  }
  func.func @transform_1(%arg0: i32) -> (i32, i32) {
    %c0_i32 = arith.constant 0 : i32
    %c0_i32_0 = arith.constant 0 : i32
    %c0_i32_1 = arith.constant 0 : i32
    return %c0_i32, %c0_i32_0 : i32, i32
  }
  func.func @transform_2(%arg0: i32) -> (i32, i32) {
    %c0_i32 = arith.constant 0 : i32
    %c0_i32_0 = arith.constant 0 : i32
    %c0_i32_1 = arith.constant 0 : i32
    return %c0_i32, %c0_i32_0 : i32, i32
  }
  func.func @transform_3(%arg0: i32) -> (i32, i32) {
    %c0_i32 = arith.constant 0 : i32
    %c0_i32_0 = arith.constant 0 : i32
    return %arg0, %c0_i32 : i32, i32
  }
  func.func @transform_4(%arg0: i32) -> (i32, i32, i32) {
    %c0_i32 = arith.constant 0 : i32
    %c0_i32_0 = arith.constant 0 : i32
    %c0_i32_1 = arith.constant 0 : i32
    return %arg0, %c0_i32, %c0_i32_0 : i32, i32, i32
  }
  func.func @transform_5(%arg0: i32) -> (i32, i32, i32) {
    %c0_i32 = arith.constant 0 : i32
    %c0_i32_0 = arith.constant 0 : i32
    %c0_i32_1 = arith.constant 0 : i32
    return %arg0, %c0_i32, %c0_i32_0 : i32, i32, i32
  }
  func.func @transform_6(%arg0: i32) -> (i32, i32) {
    %c0_i32 = arith.constant 0 : i32
    %c0_i32_0 = arith.constant 0 : i32
    return %arg0, %c0_i32 : i32, i32
  }
  func.func @transform_7(%arg0: i32) -> (i32, i32, i32) {
    %c0_i32 = arith.constant 0 : i32
    %c0_i32_0 = arith.constant 0 : i32
    %c0_i32_1 = arith.constant 0 : i32
    return %arg0, %c0_i32, %c0_i32_0 : i32, i32, i32
  }
  func.func @transform_8(%arg0: i32) -> (i32, i32, i32) {
    %c0_i32 = arith.constant 0 : i32
    %c0_i32_0 = arith.constant 0 : i32
    %c0_i32_1 = arith.constant 0 : i32
    return %arg0, %c0_i32, %c0_i32_0 : i32, i32, i32
  }
}

module attributes {stable_mosaic.version = 11 : i64} {
  func.func @_mm_stats_kernel(%arg0: i32, %arg1: memref<512x72xbf16, #tpu.memory_space<vmem>>, %arg2: memref<72x128xbf16, #tpu.memory_space<vmem>>, %arg3: memref<512x128xbf16, #tpu.memory_space<vmem>>, %arg4: memref<1x1x128xf32, #tpu.memory_space<vmem>>, %arg5: memref<1x1x128xf32, #tpu.memory_space<vmem>>) attributes {dimension_semantics = [#tpu.dimension_semantics<parallel>], iteration_bounds = array<i64: 1>, scalar_prefetch = 0 : i64, scratch_operands = 0 : i64, tpu.core_type = #tpu.core_type<tc>, window_params = [{transform_indices = @transform_0, window_bounds = array<i64: 512, 72>}, {pipeline_mode = #tpu.pipeline_mode<synchronous>, transform_indices = @transform_1, window_bounds = array<i64: 72, 128>}, {transform_indices = @transform_2, window_bounds = array<i64: 512, 128>}, {transform_indices = @transform_3, window_bounds = array<i64: 1, 1, 128>}, {transform_indices = @transform_4, window_bounds = array<i64: 1, 1, 128>}]} {
    %c0 = arith.constant 0 : index
    %c0_0 = arith.constant 0 : index
    %0 = vector.load %arg1[%c0, %c0_0] : memref<512x72xbf16, #tpu.memory_space<vmem>>, vector<512x72xbf16>
    %c0_1 = arith.constant 0 : index
    %c0_2 = arith.constant 0 : index
    %1 = vector.load %arg2[%c0_1, %c0_2] : memref<72x128xbf16, #tpu.memory_space<vmem>>, vector<72x128xbf16>
    %cst = arith.constant dense<0.000000e+00> : vector<512x128xf32>
    %2 = tpu.matmul %0, %1, %cst {dimension_numbers = #tpu.dot_dimension_numbers<[1], [0], [0], [1], [0, 0, 1, 1], [], []>} : vector<512x72xbf16>, vector<72x128xbf16>, vector<512x128xf32> -> vector<512x128xf32>
    %3 = arith.truncf %2 : vector<512x128xf32> to vector<512x128xbf16>
    %c0_3 = arith.constant 0 : index
    %c0_4 = arith.constant 0 : index
    %4 = vector.load %arg3[%c0_3, %c0_4] : memref<512x128xbf16, #tpu.memory_space<vmem>>, vector<512x128xbf16>
    tpu.vector_store %arg3[%c0_3, %c0_4], %3 {strides = array<i32>} : memref<512x128xbf16, #tpu.memory_space<vmem>>, vector<512x128xbf16>,
    %cst_5 = arith.constant dense<0.000000e+00> : vector<128xf32>
    %5 = vector.multi_reduction <add>, %2, %cst_5 [0] : vector<512x128xf32> to vector<128xf32>
    %6 = vector.shape_cast %5 : vector<128xf32> to vector<1x1x128xf32>
    %c0_6 = arith.constant 0 : index
    %c0_7 = arith.constant 0 : index
    %c0_8 = arith.constant 0 : index
    %7 = vector.load %arg4[%c0_6, %c0_7, %c0_8] : memref<1x1x128xf32, #tpu.memory_space<vmem>>, vector<1x1x128xf32>
    tpu.vector_store %arg4[%c0_6, %c0_7, %c0_8], %6 {strides = array<i32>} : memref<1x1x128xf32, #tpu.memory_space<vmem>>, vector<1x1x128xf32>,
    %8 = arith.mulf %2, %2 : vector<512x128xf32>
    %cst_9 = arith.constant dense<0.000000e+00> : vector<128xf32>
    %9 = vector.multi_reduction <add>, %8, %cst_9 [0] : vector<512x128xf32> to vector<128xf32>
    %10 = vector.shape_cast %9 : vector<128xf32> to vector<1x1x128xf32>
    %c0_10 = arith.constant 0 : index
    %c0_11 = arith.constant 0 : index
    %c0_12 = arith.constant 0 : index
    %11 = vector.load %arg5[%c0_10, %c0_11, %c0_12] : memref<1x1x128xf32, #tpu.memory_space<vmem>>, vector<1x1x128xf32>
    tpu.vector_store %arg5[%c0_10, %c0_11, %c0_12], %10 {strides = array<i32>} : memref<1x1x128xf32, #tpu.memory_space<vmem>>, vector<1x1x128xf32>,
    return
  }
  func.func @transform_0(%arg0: i32) -> (i32, i32) {
    %c0_i32 = arith.constant 0 : i32
    %c0_i32_0 = arith.constant 0 : i32
    return %arg0, %c0_i32 : i32, i32
  }
  func.func @transform_1(%arg0: i32) -> (i32, i32) {
    %c0_i32 = arith.constant 0 : i32
    %c0_i32_0 = arith.constant 0 : i32
    %c0_i32_1 = arith.constant 0 : i32
    return %c0_i32, %c0_i32_0 : i32, i32
  }
  func.func @transform_2(%arg0: i32) -> (i32, i32) {
    %c0_i32 = arith.constant 0 : i32
    %c0_i32_0 = arith.constant 0 : i32
    return %arg0, %c0_i32 : i32, i32
  }
  func.func @transform_3(%arg0: i32) -> (i32, i32, i32) {
    %c0_i32 = arith.constant 0 : i32
    %c0_i32_0 = arith.constant 0 : i32
    %c0_i32_1 = arith.constant 0 : i32
    return %arg0, %c0_i32, %c0_i32_0 : i32, i32, i32
  }
  func.func @transform_4(%arg0: i32) -> (i32, i32, i32) {
    %c0_i32 = arith.constant 0 : i32
    %c0_i32_0 = arith.constant 0 : i32
    %c0_i32_1 = arith.constant 0 : i32
    return %arg0, %c0_i32, %c0_i32_0 : i32, i32, i32
  }
}

module attributes {stable_mosaic.version = 11 : i64} {
  func.func @_bn_affine_kernel(%arg0: i32, %arg1: memref<512x128xbf16, #tpu.memory_space<vmem>>, %arg2: memref<1x128xf32, #tpu.memory_space<vmem>>, %arg3: memref<1x128xf32, #tpu.memory_space<vmem>>, %arg4: memref<512x128xbf16, #tpu.memory_space<vmem>>, %arg5: memref<1x128xf32, #tpu.memory_space<vmem>>, %arg6: memref<1x128xf32, #tpu.memory_space<vmem>>, %arg7: memref<512x128xf32, #tpu.memory_space<vmem>>) attributes {dimension_semantics = [#tpu.dimension_semantics<parallel>], iteration_bounds = array<i64: 1>, scalar_prefetch = 0 : i64, scratch_operands = 0 : i64, tpu.core_type = #tpu.core_type<tc>, window_params = [{transform_indices = @transform_0, window_bounds = array<i64: 512, 128>}, {pipeline_mode = #tpu.pipeline_mode<synchronous>, transform_indices = @transform_1, window_bounds = array<i64: 1, 128>}, {pipeline_mode = #tpu.pipeline_mode<synchronous>, transform_indices = @transform_2, window_bounds = array<i64: 1, 128>}, {transform_indices = @transform_3, window_bounds = array<i64: 512, 128>}, {pipeline_mode = #tpu.pipeline_mode<synchronous>, transform_indices = @transform_4, window_bounds = array<i64: 1, 128>}, {pipeline_mode = #tpu.pipeline_mode<synchronous>, transform_indices = @transform_5, window_bounds = array<i64: 1, 128>}, {transform_indices = @transform_6, window_bounds = array<i64: 512, 128>}]} {
    %c0 = arith.constant 0 : index
    %c0_0 = arith.constant 0 : index
    %0 = vector.load %arg1[%c0, %c0_0] : memref<512x128xbf16, #tpu.memory_space<vmem>>, vector<512x128xbf16>
    %1 = arith.extf %0 : vector<512x128xbf16> to vector<512x128xf32>
    %c0_1 = arith.constant 0 : index
    %c0_2 = arith.constant 0 : index
    %2 = vector.load %arg2[%c0_1, %c0_2] : memref<1x128xf32, #tpu.memory_space<vmem>>, vector<1x128xf32>
    %3 = vector.broadcast %2 : vector<1x128xf32> to vector<512x128xf32>
    %4 = arith.mulf %1, %3 : vector<512x128xf32>
    %c0_3 = arith.constant 0 : index
    %c0_4 = arith.constant 0 : index
    %5 = vector.load %arg3[%c0_3, %c0_4] : memref<1x128xf32, #tpu.memory_space<vmem>>, vector<1x128xf32>
    %6 = vector.broadcast %5 : vector<1x128xf32> to vector<512x128xf32>
    %7 = arith.addf %4, %6 : vector<512x128xf32>
    %c0_5 = arith.constant 0 : index
    %c0_6 = arith.constant 0 : index
    %8 = vector.load %arg4[%c0_5, %c0_6] : memref<512x128xbf16, #tpu.memory_space<vmem>>, vector<512x128xbf16>
    %9 = arith.extf %8 : vector<512x128xbf16> to vector<512x128xf32>
    %c0_7 = arith.constant 0 : index
    %c0_8 = arith.constant 0 : index
    %10 = vector.load %arg5[%c0_7, %c0_8] : memref<1x128xf32, #tpu.memory_space<vmem>>, vector<1x128xf32>
    %11 = vector.broadcast %10 : vector<1x128xf32> to vector<512x128xf32>
    %12 = arith.mulf %9, %11 : vector<512x128xf32>
    %13 = arith.addf %7, %12 : vector<512x128xf32>
    %c0_9 = arith.constant 0 : index
    %c0_10 = arith.constant 0 : index
    %14 = vector.load %arg6[%c0_9, %c0_10] : memref<1x128xf32, #tpu.memory_space<vmem>>, vector<1x128xf32>
    %15 = vector.broadcast %14 : vector<1x128xf32> to vector<512x128xf32>
    %16 = arith.addf %13, %15 : vector<512x128xf32>
    %cst = arith.constant 0.000000e+00 : f32
    %17 = vector.broadcast %cst : f32 to vector<512x128xf32>
    %18 = arith.maximumf %16, %17 : vector<512x128xf32>
    %c0_11 = arith.constant 0 : index
    %c0_12 = arith.constant 0 : index
    %19 = vector.load %arg7[%c0_11, %c0_12] : memref<512x128xf32, #tpu.memory_space<vmem>>, vector<512x128xf32>
    tpu.vector_store %arg7[%c0_11, %c0_12], %18 {strides = array<i32>} : memref<512x128xf32, #tpu.memory_space<vmem>>, vector<512x128xf32>,
    return
  }
  func.func @transform_0(%arg0: i32) -> (i32, i32) {
    %c0_i32 = arith.constant 0 : i32
    %c0_i32_0 = arith.constant 0 : i32
    return %arg0, %c0_i32 : i32, i32
  }
  func.func @transform_1(%arg0: i32) -> (i32, i32) {
    %c0_i32 = arith.constant 0 : i32
    %c0_i32_0 = arith.constant 0 : i32
    %c0_i32_1 = arith.constant 0 : i32
    return %c0_i32, %c0_i32_0 : i32, i32
  }
  func.func @transform_2(%arg0: i32) -> (i32, i32) {
    %c0_i32 = arith.constant 0 : i32
    %c0_i32_0 = arith.constant 0 : i32
    %c0_i32_1 = arith.constant 0 : i32
    return %c0_i32, %c0_i32_0 : i32, i32
  }
  func.func @transform_3(%arg0: i32) -> (i32, i32) {
    %c0_i32 = arith.constant 0 : i32
    %c0_i32_0 = arith.constant 0 : i32
    return %arg0, %c0_i32 : i32, i32
  }
  func.func @transform_4(%arg0: i32) -> (i32, i32) {
    %c0_i32 = arith.constant 0 : i32
    %c0_i32_0 = arith.constant 0 : i32
    %c0_i32_1 = arith.constant 0 : i32
    return %c0_i32, %c0_i32_0 : i32, i32
  }
  func.func @transform_5(%arg0: i32) -> (i32, i32) {
    %c0_i32 = arith.constant 0 : i32
    %c0_i32_0 = arith.constant 0 : i32
    %c0_i32_1 = arith.constant 0 : i32
    return %c0_i32, %c0_i32_0 : i32, i32
  }
  func.func @transform_6(%arg0: i32) -> (i32, i32) {
    %c0_i32 = arith.constant 0 : i32
    %c0_i32_0 = arith.constant 0 : i32
    return %arg0, %c0_i32 : i32, i32
  }
}

</mosaic_0001>

<bundles_post_ra>
// kernel: basic_block_forward.5
= control target key start
LH: loop header
LB: loop body
LE: loop exit
PB: predicated region body
PF: predicated region fallthrough
CT: control target
= control target key end

     0   :  { %s1176_s0 = inlined_call_operand.vmem [shape: bf16[512,128], index: 0, kind: input, shape index: {}]   ;;  %s1177_s1 = inlined_call_operand.vmem [shape: f32[1,128], index: 1, kind: input, shape index: {}]   ;;  %s1178_s2 = inlined_call_operand.vmem [shape: f32[1,128], index: 2, kind: input, shape index: {}]   ;;  %s1179_s3 = inlined_call_operand.vmem [shape: bf16[512,128], index: 3, kind: output, shape index: {}]  }
   0x1   :  { %v475_v0 = vld [vmem:[%s1176_s0] sm:$0xff]   ;;  %v762_v5 = vld [vmem:[%s1176_s0 + $0x8] sm:$0xff]   ;;  %v763_v8 = vld [vmem:[%s1176_s0 + $0x10] sm:$0xff]  }
   0x2   :  { %v852_v1 = vld [vmem:[%s1177_s1] ss:$0 sm:$0xff]  ;;  %v476_v2 = vunpack.c.l.bf16 %v475_v0  ;;  %v477_v3 = vunpack.c.h.bf16 %v475_v0  ;;  %v480_v6 = vunpack.c.l.bf16 %v762_v5  ;;  %v481_v7 = vunpack.c.h.bf16 %v762_v5  ;;  %v764_v9 = vld [vmem:[%s1176_s0 + $0x18] sm:$0xff]   ;;  %v766_v35 = vld [vmem:[%s1176_s0 + $0x28] sm:$0xff]  }
   0x3   :  { %v857_v4 = vld [vmem:[%s1178_s2] ss:$0 sm:$0xff]  ;;  %v484_v12 = vunpack.c.l.bf16 %v763_v8  ;;  %v485_v13 = vunpack.c.h.bf16 %v763_v8  ;;  %v488_v16 = vunpack.c.l.bf16 %v764_v9  ;;  %v489_v17 = vunpack.c.h.bf16 %v764_v9  ;;  %v767_v40 = vld [vmem:[%s1176_s0 + $0x30] sm:$0xff]   ;;  %v768_v45 = vld [vmem:[%s1176_s0 + $0x38] sm:$0xff]  }
   0x4   :  { %v146_v10 = vmul.f32 %v852_v1, %v476_v2  ;;  %v147_v11 = vmul.f32 %v852_v1, %v477_v3  ;;  %v148_v14 = vmul.f32 %v852_v1, %v480_v6  ;;  %v149_v15 = vmul.f32 %v852_v1, %v481_v7  ;;  %v765_v26 = vld [vmem:[%s1176_s0 + $0x20] sm:$0xff]  }
   0x5   :  { %v150_v20 = vmul.f32 %v852_v1, %v484_v12  ;;  %v151_v21 = vmul.f32 %v852_v1, %v485_v13  ;;  %v152_v24 = vmul.f32 %v852_v1, %v488_v16  ;;  %v153_v25 = vmul.f32 %v852_v1, %v489_v17  ;;  %v769_v62 = vld [vmem:[%s1176_s0 + $0x40] sm:$0xff]   ;;  %v770_v13 = vld [vmem:[%s1176_s0 + $0x48] sm:$0xff]  }
   0x6   :  { %v214_v18 = vadd.f32 %v857_v4, %v146_v10  ;;  %v215_v19 = vadd.f32 %v857_v4, %v147_v11  ;;  %v216_v22 = vadd.f32 %v857_v4, %v148_v14  ;;  %v217_v23 = vadd.f32 %v857_v4, %v149_v15 }
   0x7   :  { %v218_v29 = vadd.f32 %v857_v4, %v150_v20  ;;  %v219_v30 = vadd.f32 %v857_v4, %v151_v21  ;;  %v220_v33 = vadd.f32 %v857_v4, %v152_v24  ;;  %v221_v34 = vadd.f32 %v857_v4, %v153_v25 }
   0x8   :  { %v278_v27 = vmax.f32 %v214_v18, 0.0  ;;  %v279_v28 = vmax.f32 %v215_v19, 0.0  ;;  %v280_v31 = vmax.f32 %v216_v22, 0.0  ;;  %v281_v32 = vmax.f32 %v217_v23, 0.0  ;;  %v771_v18 = vld [vmem:[%s1176_s0 + $0x50] sm:$0xff]   ;;  %v772_v23 = vld [vmem:[%s1176_s0 + $0x58] sm:$0xff]  }
   0x9   :  { %v282_v37 = vmax.f32 %v218_v29, 0.0  ;;  %v283_v38 = vmax.f32 %v219_v30, 0.0  ;;  %v492_v39 = vunpack.c.l.bf16 %v765_v26  ;;  %v284_v42 = vmax.f32 %v220_v33, 0.0 }
   0xa   :  { %v605_v36 = vpack.c.bf16 %v279_v28, %v278_v27  ;;  %v610_v41 = vpack.c.bf16 %v281_v32, %v280_v31  ;;  %v285_v43 = vmax.f32 %v221_v34, 0.0  ;;  %v493_v44 = vunpack.c.h.bf16 %v765_v26 }
   0xb   :  { %v615_v46 = vpack.c.bf16 %v283_v38, %v282_v37  ;;  %v154_v47 = vmul.f32 %v852_v1, %v492_v39  ;;  %v496_v48 = vunpack.c.l.bf16 %v766_v35  ;;  %v497_v49 = vunpack.c.h.bf16 %v766_v35 }
   0xc   :  { %606 = vst [vmem:[%s1179_s3] sm:$0xff] %v605_v36   ;;  %v620_v50 = vpack.c.bf16 %v285_v43, %v284_v42  ;;  %v155_v51 = vmul.f32 %v852_v1, %v493_v44  ;;  %v500_v52 = vunpack.c.l.bf16 %v767_v40  ;;  %v501_v53 = vunpack.c.h.bf16 %v767_v40  ;;  %v773_v36 = vld [vmem:[%s1176_s0 + $0x60] sm:$0xff]  }
   0xd   :  { %793 = vst [vmem:[%s1179_s3 + $0x8] sm:$0xff] %v610_v41   ;;  %v222_v54 = vadd.f32 %v857_v4, %v154_v47  ;;  %v156_v55 = vmul.f32 %v852_v1, %v496_v48  ;;  %v157_v56 = vmul.f32 %v852_v1, %v497_v49  ;;  %v504_v57 = vunpack.c.l.bf16 %v768_v45 }
   0xe   :  { %794 = vst [vmem:[%s1179_s3 + $0x10] sm:$0xff] %v615_v46   ;;  %v223_v58 = vadd.f32 %v857_v4, %v155_v51  ;;  %v158_v59 = vmul.f32 %v852_v1, %v500_v52  ;;  %v159_v60 = vmul.f32 %v852_v1, %v501_v53  ;;  %v505_v61 = vunpack.c.h.bf16 %v768_v45  ;;  %v774_v53 = vld [vmem:[%s1176_s0 + $0x68] sm:$0xff]  }
   0xf   :  { %795 = vst [vmem:[%s1179_s3 + $0x18] sm:$0xff] %v620_v50   ;;  %v286_v63 = vmax.f32 %v222_v54, 0.0  ;;  %v224_v0 = vadd.f32 %v857_v4, %v156_v55  ;;  %v225_v2 = vadd.f32 %v857_v4, %v157_v56  ;;  %v160_v3 = vmul.f32 %v852_v1, %v504_v57 }
  0x10   :  { %v287_v5 = vmax.f32 %v223_v58, 0.0  ;;  %v226_v6 = vadd.f32 %v857_v4, %v158_v59  ;;  %v227_v7 = vadd.f32 %v857_v4, %v159_v60  ;;  %v161_v8 = vmul.f32 %v852_v1, %v505_v61  ;;  %v775_v58 = vld [vmem:[%s1176_s0 + $0x70] sm:$0xff]  }
  0x11   :  { %v288_v9 = vmax.f32 %v224_v0, 0.0  ;;  %v289_v10 = vmax.f32 %v225_v2, 0.0  ;;  %v228_v11 = vadd.f32 %v857_v4, %v160_v3  ;;  %v508_v12 = vunpack.c.l.bf16 %v769_v62 }
  0x12   :  { %v625_v14 = vpack.c.bf16 %v287_v5, %v286_v63  ;;  %v290_v15 = vmax.f32 %v226_v6, 0.0  ;;  %v291_v16 = vmax.f32 %v227_v7, 0.0  ;;  %v229_v17 = vadd.f32 %v857_v4, %v161_v8  ;;  %v776_v63 = vld [vmem:[%s1176_s0 + $0x78] sm:$0xff]  }
  0x13   :  { %v630_v19 = vpack.c.bf16 %v289_v10, %v288_v9  ;;  %v292_v20 = vmax.f32 %v228_v11, 0.0  ;;  %v509_v21 = vunpack.c.h.bf16 %v769_v62  ;;  %v162_v22 = vmul.f32 %v852_v1, %v508_v12 }
  0x14   :  { %796 = vst [vmem:[%s1179_s3 + $0x20] sm:$0xff] %v625_v14   ;;  %v635_v24 = vpack.c.bf16 %v291_v16, %v290_v15  ;;  %v293_v25 = vmax.f32 %v229_v17, 0.0  ;;  %v512_v26 = vunpack.c.l.bf16 %v770_v13  ;;  %v513_v27 = vunpack.c.h.bf16 %v770_v13  ;;  %v777_v14 = vld [vmem:[%s1176_s0 + $0x80] sm:$0xff]  }
  0x15   :  { %797 = vst [vmem:[%s1179_s3 + $0x28] sm:$0xff] %v630_v19   ;;  %v163_v28 = vmul.f32 %v852_v1, %v509_v21  ;;  %v230_v29 = vadd.f32 %v857_v4, %v162_v22  ;;  %v516_v30 = vunpack.c.l.bf16 %v771_v18  ;;  %v517_v31 = vunpack.c.h.bf16 %v771_v18 }
  0x16   :  { %798 = vst [vmem:[%s1179_s3 + $0x30] sm:$0xff] %v635_v24   ;;  %v640_v32 = vpack.c.bf16 %v293_v25, %v292_v20  ;;  %v164_v33 = vmul.f32 %v852_v1, %v512_v26  ;;  %v165_v34 = vmul.f32 %v852_v1, %v513_v27  ;;  %v520_v35 = vunpack.c.l.bf16 %v772_v23  ;;  %v778_v27 = vld [vmem:[%s1176_s0 + $0x88] sm:$0xff]  }
  0x17   :  { %v231_v37 = vadd.f32 %v857_v4, %v163_v28  ;;  %v294_v38 = vmax.f32 %v230_v29, 0.0  ;;  %v166_v39 = vmul.f32 %v852_v1, %v516_v30  ;;  %v167_v40 = vmul.f32 %v852_v1, %v517_v31 }
  0x18   :  { %799 = vst [vmem:[%s1179_s3 + $0x38] sm:$0xff] %v640_v32   ;;  %v232_v41 = vadd.f32 %v857_v4, %v164_v33  ;;  %v233_v42 = vadd.f32 %v857_v4, %v165_v34  ;;  %v521_v43 = vunpack.c.h.bf16 %v772_v23  ;;  %v168_v44 = vmul.f32 %v852_v1, %v520_v35 }
  0x19   :  { %v295_v45 = vmax.f32 %v231_v37, 0.0  ;;  %v234_v46 = vadd.f32 %v857_v4, %v166_v39  ;;  %v235_v47 = vadd.f32 %v857_v4, %v167_v40  ;;  %v524_v48 = vunpack.c.l.bf16 %v773_v36 }
  0x1a   :  { %v296_v49 = vmax.f32 %v232_v41, 0.0  ;;  %v297_v50 = vmax.f32 %v233_v42, 0.0  ;;  %v169_v51 = vmul.f32 %v852_v1, %v521_v43  ;;  %v236_v52 = vadd.f32 %v857_v4, %v168_v44  ;;  %v780_v41 = vld [vmem:[%s1176_s0 + $0x98] sm:$0xff]  }
  0x1b   :  { %v645_v54 = vpack.c.bf16 %v295_v45, %v294_v38  ;;  %v298_v55 = vmax.f32 %v234_v46, 0.0  ;;  %v299_v56 = vmax.f32 %v235_v47, 0.0  ;;  %v525_v57 = vunpack.c.h.bf16 %v773_v36  ;;  %v779_v36 = vld [vmem:[%s1176_s0 + $0x90] sm:$0xff]  }
  0x1c   :  { %v650_v59 = vpack.c.bf16 %v297_v50, %v296_v49  ;;  %v237_v60 = vadd.f32 %v857_v4, %v169_v51  ;;  %v300_v61 = vmax.f32 %v236_v52, 0.0  ;;  %v170_v62 = vmul.f32 %v852_v1, %v524_v48 }
  0x1d   :  { %800 = vst [vmem:[%s1179_s3 + $0x40] sm:$0xff] %v645_v54   ;;  %v655_v0 = vpack.c.bf16 %v299_v56, %v298_v55  ;;  %v171_v2 = vmul.f32 %v852_v1, %v525_v57  ;;  %v528_v3 = vunpack.c.l.bf16 %v774_v53  ;;  %v529_v5 = vunpack.c.h.bf16 %v774_v53  ;;  %v781_v54 = vld [vmem:[%s1176_s0 + $0xa0] sm:$0xff]  }
  0x1e   :  { %801 = vst [vmem:[%s1179_s3 + $0x48] sm:$0xff] %v650_v59   ;;  %v301_v6 = vmax.f32 %v237_v60, 0.0  ;;  %v238_v7 = vadd.f32 %v857_v4, %v170_v62  ;;  %v532_v8 = vunpack.c.l.bf16 %v775_v58  ;;  %v533_v9 = vunpack.c.h.bf16 %v775_v58 }
  0x1f   :  { %802 = vst [vmem:[%s1179_s3 + $0x50] sm:$0xff] %v655_v0   ;;  %v239_v10 = vadd.f32 %v857_v4, %v171_v2  ;;  %v172_v11 = vmul.f32 %v852_v1, %v528_v3  ;;  %v173_v12 = vmul.f32 %v852_v1, %v529_v5  ;;  %v536_v13 = vunpack.c.l.bf16 %v776_v63  ;;  %v782_v5 = vld [vmem:[%s1176_s0 + $0xa8] sm:$0xff]  }
  0x20   :  { %v660_v15 = vpack.c.bf16 %v301_v6, %v300_v61  ;;  %v302_v16 = vmax.f32 %v238_v7, 0.0  ;;  %v174_v17 = vmul.f32 %v852_v1, %v532_v8  ;;  %v175_v18 = vmul.f32 %v852_v1, %v533_v9 }
  0x21   :  { %v303_v19 = vmax.f32 %v239_v10, 0.0  ;;  %v240_v20 = vadd.f32 %v857_v4, %v172_v11  ;;  %v241_v21 = vadd.f32 %v857_v4, %v173_v12  ;;  %v537_v22 = vunpack.c.h.bf16 %v776_v63 }
  0x22   :  { %803 = vst [vmem:[%s1179_s3 + $0x58] sm:$0xff] %v660_v15   ;;  %v242_v23 = vadd.f32 %v857_v4, %v174_v17  ;;  %v243_v24 = vadd.f32 %v857_v4, %v175_v18  ;;  %v176_v25 = vmul.f32 %v852_v1, %v536_v13  ;;  %v540_v26 = vunpack.c.l.bf16 %v777_v14 }
  0x23   :  { %v665_v28 = vpack.c.bf16 %v303_v19, %v302_v16  ;;  %v304_v29 = vmax.f32 %v240_v20, 0.0  ;;  %v305_v30 = vmax.f32 %v241_v21, 0.0  ;;  %v177_v31 = vmul.f32 %v852_v1, %v537_v22 }
  0x24   :  { %v306_v32 = vmax.f32 %v242_v23, 0.0  ;;  %v307_v33 = vmax.f32 %v243_v24, 0.0  ;;  %v244_v34 = vadd.f32 %v857_v4, %v176_v25  ;;  %v541_v35 = vunpack.c.h.bf16 %v777_v14  ;;  %v783_v14 = vld [vmem:[%s1176_s0 + $0xb0] sm:$0xff]   ;;  %v784_v23 = vld [vmem:[%s1176_s0 + $0xb8] sm:$0xff]  }
  0x25   :  { %804 = vst [vmem:[%s1179_s3 + $0x60] sm:$0xff] %v665_v28   ;;  %v670_v37 = vpack.c.bf16 %v305_v30, %v304_v29  ;;  %v245_v38 = vadd.f32 %v857_v4, %v177_v31  ;;  %v178_v39 = vmul.f32 %v852_v1, %v540_v26  ;;  %v544_v40 = vunpack.c.l.bf16 %v778_v27 }
  0x26   :  { %v675_v42 = vpack.c.bf16 %v307_v33, %v306_v32  ;;  %v308_v43 = vmax.f32 %v244_v34, 0.0  ;;  %v179_v44 = vmul.f32 %v852_v1, %v541_v35  ;;  %v545_v45 = vunpack.c.h.bf16 %v778_v27  ;;  %v785_v32 = vld [vmem:[%s1176_s0 + $0xc0] sm:$0xff]  }
  0x27   :  { %805 = vst [vmem:[%s1179_s3 + $0x68] sm:$0xff] %v670_v37   ;;  %v309_v46 = vmax.f32 %v245_v38, 0.0  ;;  %v246_v47 = vadd.f32 %v857_v4, %v178_v39  ;;  %v180_v48 = vmul.f32 %v852_v1, %v544_v40  ;;  %v548_v49 = vunpack.c.l.bf16 %v779_v36 }
  0x28   :  { %806 = vst [vmem:[%s1179_s3 + $0x70] sm:$0xff] %v675_v42   ;;  %v247_v50 = vadd.f32 %v857_v4, %v179_v44  ;;  %v181_v51 = vmul.f32 %v852_v1, %v545_v45  ;;  %v549_v52 = vunpack.c.h.bf16 %v779_v36  ;;  %v552_v53 = vunpack.c.l.bf16 %v780_v41  ;;  %v786_v45 = vld [vmem:[%s1176_s0 + $0xc8] sm:$0xff]  }
  0x29   :  { %v680_v55 = vpack.c.bf16 %v309_v46, %v308_v43  ;;  %v310_v56 = vmax.f32 %v246_v47, 0.0  ;;  %v248_v57 = vadd.f32 %v857_v4, %v180_v48  ;;  %v182_v58 = vmul.f32 %v852_v1, %v548_v49 }
  0x2a   :  { %v311_v59 = vmax.f32 %v247_v50, 0.0  ;;  %v249_v60 = vadd.f32 %v857_v4, %v181_v51  ;;  %v183_v61 = vmul.f32 %v852_v1, %v549_v52  ;;  %v553_v62 = vunpack.c.h.bf16 %v780_v41 }
  0x2b   :  { %807 = vst [vmem:[%s1179_s3 + $0x78] sm:$0xff] %v680_v55   ;;  %v312_v63 = vmax.f32 %v248_v57, 0.0  ;;  %v250_v0 = vadd.f32 %v857_v4, %v182_v58  ;;  %v184_v2 = vmul.f32 %v852_v1, %v552_v53  ;;  %v556_v3 = vunpack.c.l.bf16 %v781_v54 }
  0x2c   :  { %v685_v6 = vpack.c.bf16 %v311_v59, %v310_v56  ;;  %v313_v7 = vmax.f32 %v249_v60, 0.0  ;;  %v251_v8 = vadd.f32 %v857_v4, %v183_v61  ;;  %v185_v9 = vmul.f32 %v852_v1, %v553_v62 }
  0x2d   :  { %v314_v10 = vmax.f32 %v250_v0, 0.0  ;;  %v252_v11 = vadd.f32 %v857_v4, %v184_v2  ;;  %v557_v12 = vunpack.c.h.bf16 %v781_v54  ;;  %v186_v13 = vmul.f32 %v852_v1, %v556_v3  ;;  %v787_v54 = vld [vmem:[%s1176_s0 + $0xd0] sm:$0xff]  }
  0x2e   :  { %808 = vst [vmem:[%s1179_s3 + $0x80] sm:$0xff] %v685_v6   ;;  %v690_v15 = vpack.c.bf16 %v313_v7, %v312_v63  ;;  %v315_v16 = vmax.f32 %v251_v8, 0.0  ;;  %v253_v17 = vadd.f32 %v857_v4, %v185_v9  ;;  %v560_v18 = vunpack.c.l.bf16 %v782_v5  ;;  %v788_v63 = vld [vmem:[%s1176_s0 + $0xd8] sm:$0xff]  }
  0x2f   :  { %v316_v19 = vmax.f32 %v252_v11, 0.0  ;;  %v187_v20 = vmul.f32 %v852_v1, %v557_v12  ;;  %v254_v21 = vadd.f32 %v857_v4, %v186_v13  ;;  %v561_v22 = vunpack.c.h.bf16 %v782_v5 }
  0x30   :  { %809 = vst [vmem:[%s1179_s3 + $0x88] sm:$0xff] %v690_v15   ;;  %v695_v24 = vpack.c.bf16 %v315_v16, %v314_v10  ;;  %v317_v25 = vmax.f32 %v253_v17, 0.0  ;;  %v188_v26 = vmul.f32 %v852_v1, %v560_v18  ;;  %v564_v27 = vunpack.c.l.bf16 %v783_v14  ;;  %v789_v10 = vld [vmem:[%s1176_s0 + $0xe0] sm:$0xff]  }
  0x31   :  { %v255_v28 = vadd.f32 %v857_v4, %v187_v20  ;;  %v318_v29 = vmax.f32 %v254_v21, 0.0  ;;  %v189_v30 = vmul.f32 %v852_v1, %v561_v22  ;;  %v565_v31 = vunpack.c.h.bf16 %v783_v14 }
  0x32   :  { %810 = vst [vmem:[%s1179_s3 + $0x90] sm:$0xff] %v695_v24   ;;  %v700_v33 = vpack.c.bf16 %v317_v25, %v316_v19  ;;  %v256_v34 = vadd.f32 %v857_v4, %v188_v26  ;;  %v190_v35 = vmul.f32 %v852_v1, %v564_v27  ;;  %v568_v36 = vunpack.c.l.bf16 %v784_v23 }
  0x33   :  { %v319_v37 = vmax.f32 %v255_v28, 0.0  ;;  %v257_v38 = vadd.f32 %v857_v4, %v189_v30  ;;  %v191_v39 = vmul.f32 %v852_v1, %v565_v31  ;;  %v569_v40 = vunpack.c.h.bf16 %v784_v23  ;;  %v790_v23 = vld [vmem:[%s1176_s0 + $0xe8] sm:$0xff]  }
  0x34   :  { %811 = vst [vmem:[%s1179_s3 + $0x98] sm:$0xff] %v700_v33   ;;  %v320_v41 = vmax.f32 %v256_v34, 0.0  ;;  %v258_v42 = vadd.f32 %v857_v4, %v190_v35  ;;  %v192_v43 = vmul.f32 %v852_v1, %v568_v36  ;;  %v572_v44 = vunpack.c.l.bf16 %v785_v32 }
  0x35   :  { %v705_v46 = vpack.c.bf16 %v319_v37, %v318_v29  ;;  %v321_v47 = vmax.f32 %v257_v38, 0.0  ;;  %v259_v48 = vadd.f32 %v857_v4, %v191_v39  ;;  %v193_v49 = vmul.f32 %v852_v1, %v569_v40 }
  0x36   :  { %v322_v50 = vmax.f32 %v258_v42, 0.0  ;;  %v260_v51 = vadd.f32 %v857_v4, %v192_v43  ;;  %v573_v52 = vunpack.c.h.bf16 %v785_v32  ;;  %v194_v53 = vmul.f32 %v852_v1, %v572_v44  ;;  %v791_v32 = vld [vmem:[%s1176_s0 + $0xf0] sm:$0xff]  }
  0x37   :  { %812 = vst [vmem:[%s1179_s3 + $0xa0] sm:$0xff] %v705_v46   ;;  %v710_v55 = vpack.c.bf16 %v321_v47, %v320_v41  ;;  %v323_v56 = vmax.f32 %v259_v48, 0.0  ;;  %v261_v57 = vadd.f32 %v857_v4, %v193_v49  ;;  %v576_v58 = vunpack.c.l.bf16 %v786_v45  ;;  %v792_v41 = vld [vmem:[%s1176_s0 + $0xf8] sm:$0xff]  }
  0x38   :  { %v324_v59 = vmax.f32 %v260_v51, 0.0  ;;  %v195_v60 = vmul.f32 %v852_v1, %v573_v52  ;;  %v262_v61 = vadd.f32 %v857_v4, %v194_v53  ;;  %v577_v62 = vunpack.c.h.bf16 %v786_v45 }
  0x39   :  { %813 = vst [vmem:[%s1179_s3 + $0xa8] sm:$0xff] %v710_v55   ;;  %v715_v0 = vpack.c.bf16 %v323_v56, %v322_v50  ;;  %v325_v2 = vmax.f32 %v261_v57, 0.0  ;;  %v196_v3 = vmul.f32 %v852_v1, %v576_v58  ;;  %v580_v5 = vunpack.c.l.bf16 %v787_v54 }
  0x3a   :  { %v263_v6 = vadd.f32 %v857_v4, %v195_v60  ;;  %v326_v7 = vmax.f32 %v262_v61, 0.0  ;;  %v197_v8 = vmul.f32 %v852_v1, %v577_v62  ;;  %v581_v9 = vunpack.c.h.bf16 %v787_v54 }
  0x3b   :  { %814 = vst [vmem:[%s1179_s3 + $0xb0] sm:$0xff] %v715_v0   ;;  %v720_v11 = vpack.c.bf16 %v325_v2, %v324_v59  ;;  %v264_v12 = vadd.f32 %v857_v4, %v196_v3  ;;  %v198_v13 = vmul.f32 %v852_v1, %v580_v5  ;;  %v584_v14 = vunpack.c.l.bf16 %v788_v63 }
  0x3c   :  { %v327_v15 = vmax.f32 %v263_v6, 0.0  ;;  %v265_v16 = vadd.f32 %v857_v4, %v197_v8  ;;  %v199_v17 = vmul.f32 %v852_v1, %v581_v9  ;;  %v585_v18 = vunpack.c.h.bf16 %v788_v63 }
  0x3d   :  { %815 = vst [vmem:[%s1179_s3 + $0xb8] sm:$0xff] %v720_v11   ;;  %v328_v19 = vmax.f32 %v264_v12, 0.0  ;;  %v266_v20 = vadd.f32 %v857_v4, %v198_v13  ;;  %v200_v21 = vmul.f32 %v852_v1, %v584_v14  ;;  %v588_v22 = vunpack.c.l.bf16 %v789_v10 }
  0x3e   :  { %v725_v24 = vpack.c.bf16 %v327_v15, %v326_v7  ;;  %v329_v25 = vmax.f32 %v265_v16, 0.0  ;;  %v267_v26 = vadd.f32 %v857_v4, %v199_v17  ;;  %v201_v27 = vmul.f32 %v852_v1, %v585_v18 }
  0x3f   :  { %v330_v28 = vmax.f32 %v266_v20, 0.0  ;;  %v268_v29 = vadd.f32 %v857_v4, %v200_v21  ;;  %v589_v30 = vunpack.c.h.bf16 %v789_v10  ;;  %v202_v31 = vmul.f32 %v852_v1, %v588_v22 }
  0x40   :  { %816 = vst [vmem:[%s1179_s3 + $0xc0] sm:$0xff] %v725_v24   ;;  %v730_v33 = vpack.c.bf16 %v329_v25, %v328_v19  ;;  %v331_v34 = vmax.f32 %v267_v26, 0.0  ;;  %v269_v35 = vadd.f32 %v857_v4, %v201_v27  ;;  %v592_v36 = vunpack.c.l.bf16 %v790_v23 }
  0x41   :  { %v332_v37 = vmax.f32 %v268_v29, 0.0  ;;  %v203_v38 = vmul.f32 %v852_v1, %v589_v30  ;;  %v270_v39 = vadd.f32 %v857_v4, %v202_v31  ;;  %v593_v40 = vunpack.c.h.bf16 %v790_v23 }
  0x42   :  { %817 = vst [vmem:[%s1179_s3 + $0xc8] sm:$0xff] %v730_v33   ;;  %v735_v42 = vpack.c.bf16 %v331_v34, %v330_v28  ;;  %v333_v43 = vmax.f32 %v269_v35, 0.0  ;;  %v204_v44 = vmul.f32 %v852_v1, %v592_v36  ;;  %v596_v45 = vunpack.c.l.bf16 %v791_v32 }
  0x43   :  { %v271_v46 = vadd.f32 %v857_v4, %v203_v38  ;;  %v334_v47 = vmax.f32 %v270_v39, 0.0  ;;  %v205_v48 = vmul.f32 %v852_v1, %v593_v40  ;;  %v597_v49 = vunpack.c.h.bf16 %v791_v32 }
  0x44   :  { %818 = vst [vmem:[%s1179_s3 + $0xd0] sm:$0xff] %v735_v42   ;;  %v740_v50 = vpack.c.bf16 %v333_v43, %v332_v37  ;;  %v272_v51 = vadd.f32 %v857_v4, %v204_v44  ;;  %v206_v52 = vmul.f32 %v852_v1, %v596_v45  ;;  %v600_v53 = vunpack.c.l.bf16 %v792_v41 }
  0x45   :  { %v335_v54 = vmax.f32 %v271_v46, 0.0  ;;  %v273_v55 = vadd.f32 %v857_v4, %v205_v48  ;;  %v207_v56 = vmul.f32 %v852_v1, %v597_v49  ;;  %v601_v57 = vunpack.c.h.bf16 %v792_v41 }
  0x46   :  { %819 = vst [vmem:[%s1179_s3 + $0xd8] sm:$0xff] %v740_v50   ;;  %v336_v58 = vmax.f32 %v272_v51, 0.0  ;;  %v274_v59 = vadd.f32 %v857_v4, %v206_v52  ;;  %v208_v60 = vmul.f32 %v852_v1, %v600_v53 }
  0x47   :  { %v745_v61 = vpack.c.bf16 %v335_v54, %v334_v47  ;;  %v337_v62 = vmax.f32 %v273_v55, 0.0  ;;  %v275_v63 = vadd.f32 %v857_v4, %v207_v56  ;;  %v209_v0 = vmul.f32 %v852_v1, %v601_v57 }
  0x48   :  { %v338_v2 = vmax.f32 %v274_v59, 0.0  ;;  %v276_v3 = vadd.f32 %v857_v4, %v208_v60 }
  0x49   :  { %820 = vst [vmem:[%s1179_s3 + $0xe0] sm:$0xff] %v745_v61   ;;  %v750_v5 = vpack.c.bf16 %v337_v62, %v336_v58  ;;  %v339_v6 = vmax.f32 %v275_v63, 0.0  ;;  %v277_v7 = vadd.f32 %v857_v4, %v209_v0 }
  0x4a   :  { %v340_v8 = vmax.f32 %v276_v3, 0.0 }
  0x4b   :  { %821 = vst [vmem:[%s1179_s3 + $0xe8] sm:$0xff] %v750_v5   ;;  %v755_v9 = vpack.c.bf16 %v339_v6, %v338_v2  ;;  %v341_v10 = vmax.f32 %v277_v7, 0.0 }
  0x4d   :  { %822 = vst [vmem:[%s1179_s3 + $0xf0] sm:$0xff] %v755_v9   ;;  %v760_v1 = vpack.c.bf16 %v341_v10, %v340_v8 }
  0x4f   :  { %823 = vst [vmem:[%s1179_s3 + $0xf8] sm:$0xff] %v760_v1  }

// kernel: basic_block_forward.4
= control target key start
LH: loop header
LB: loop body
LE: loop exit
PB: predicated region body
PF: predicated region fallthrough
CT: control target
= control target key end

     0   :  { %s2178_s11 = smov 112   ;;  %vm362_vm0 = vcmask 1041408   ;;  %vm265_vm1 = vcmask 293888   ;;  %vm932_vm2 = vcmask 31744   ;;  %s3076_s0 = inlined_call_operand.vmem [shape: bf16[512,36], index: 0, kind: input, shape index: {}]   ;;  %s3077_s1 = inlined_call_operand.vmem [shape: bf16[36,128], index: 1, kind: input, shape index: {}]   ;;  %s3078_s2 = inlined_call_operand.vmem [shape: bf16[4,128], index: 2, kind: input, shape index: {}]   ;;  %s3079_s3 = inlined_call_operand.vmem [shape: bf16[512,128], index: 3, kind: output, shape index: {0}]   ;;  %s3080_s6 = inlined_call_operand.vmem [shape: bf16[512,128], index: 6, kind: output, shape index: {3}]   ;;  %s3081_s4 = inlined_call_operand.vmem [shape: f32[1,1,128], index: 4, kind: output, shape index: {1}]   ;;  %s3082_s5 = inlined_call_operand.vmem [shape: f32[1,1,128], index: 5, kind: output, shape index: {2}]   ;;  %s3083_s7 = inlined_call_operand.vmem [shape: f32[1,1,128], index: 7, kind: output, shape index: {4}]   ;;  %s3084_s8 = inlined_call_operand.vmem [shape: f32[1,1,128], index: 8, kind: output, shape index: {5}]  }
   0x1   :  { %v1757_v0 = vld [vmem:[%s3076_s0] sm:$0xff]  ;;  %v89_v1 = vld [vmem:[%s3077_s1 + $0x10] sm:$0x3]  ;;  %v1790_v6 = vld [vmem:[%s3077_s1 + $0x8] sm:$0xff] }
   0x2   :  { %v259_v2 = vunpack.c.l.b16 %v89_v1  ;;  %v1759_v3 = vld [vmem:[%s3076_s0 + $0x10] sm:$0xff]  ;;  %868 = vrot.lane.b32.xlu0 %v1757_v0, %s2178_s11  ;;  %v1758_v7 = vld [vmem:[%s3076_s0 + $0x8] sm:$0xff]  ;;  %v1789_v8 = vld [vmem:[%s3077_s1] sm:$0xff] }
   0x3   :  { %872 = vrot.lane.b32.xlu1 %v1759_v3, %s2178_s11  ;;  %v1760_v9 = vld [vmem:[%s3076_s0 + $0x18] sm:$0xff]  ;;  %v2255_v10 = vld [vmem:[%s3076_s0 + $0x80] sm:$0xff]  ;;  %v1774_v11 = vld [vmem:[%s3076_s0 + $0x88] sm:$0xff] }
   0x4   :  { %v262_v4 = vpack.c.b16 %v259_v2, %v259_v2  ;;  %v1761_v12 = vld [vmem:[%s3076_s0 + $0x20] sm:$0xff]  ;;  %v1762_v13 = vld [vmem:[%s3076_s0 + $0x28] sm:$0xff]  ;;  %v1763_v14 = vld [vmem:[%s3076_s0 + $0x30] sm:$0xff] }
   0x5   :  { %876 = vrot.lane.b32.xlu2 %v1761_v12, %s2178_s11  ;;  %v1775_v15 = vld [vmem:[%s3076_s0 + $0x90] sm:$0xff]  ;;  %v1776_v16 = vld [vmem:[%s3076_s0 + $0x98] sm:$0xff]  ;;  %v867_v17 = vld [vmem:[%s3078_s2] sm:$0x3] }
   0x6   :  { %v364_v5 = vsel %vm362_vm0, %v262_v4, 0  ;;  %v1764_v18 = vld [vmem:[%s3076_s0 + $0x38] sm:$0xff]  ;;  %v1030_v19 = vsel %vm362_vm0, %v867_v17, 0  ;;  %v1777_v20 = vld [vmem:[%s3076_s0 + $0xa0] sm:$0xff]  ;;  %v1766_v22 = vld [vmem:[%s3076_s0 + $0x48] sm:$0xff] }
   0x7   :  { %371 = vmatpush.bf16.msra.mxu0 %v364_v5  ;;  %2173 = vmatpush.bf16.msra.mxu2 %v364_v5  ;;  %v1765_v21 = vld [vmem:[%s3076_s0 + $0x40] sm:$0xff]  ;;  %v1778_v24 = vld [vmem:[%s3076_s0 + $0xa8] sm:$0xff]  ;;  %v1779_v25 = vld [vmem:[%s3076_s0 + $0xb0] sm:$0xff] }
   0x8   :  { %1039 = vmatpush.bf16.msra.mxu1 %v1030_v19  ;;  %2176 = vmatpush.bf16.msra.mxu3 %v1030_v19  ;;  %v1767_v26 = vld [vmem:[%s3076_s0 + $0x50] sm:$0xff]  ;;  %v1780_v29 = vld [vmem:[%s3076_s0 + $0xb8] sm:$0xff]  ;;  %v2345_v41 = vld [vmem:[%s3076_s0 + $0x60] sm:$0xff] }
   0x9   :  { %v1768_v40 = vld [vmem:[%s3076_s0 + $0x58] sm:$0xff]  ;;  %v1781_v52 = vld [vmem:[%s3076_s0 + $0xc0] sm:$0xff]  ;;  %v1782_v55 = vld [vmem:[%s3076_s0 + $0xc8] sm:$0xff] }
   0xa   :  { %870 = vrot.lane.b32.xlu0 %v1758_v7, %s2178_s11  ;;  %v2370_v58 = vld [vmem:[%s3076_s0 + $0x68] sm:$0xff] }
   0xb   :  { %372 = vmatpush.bf16.msra.mxu0 %v1790_v6  ;;  %2174 = vmatpush.bf16.msra.mxu2 %v1790_v6 }
   0xc   :  { %874 = vrot.lane.b32.xlu1 %v1760_v9, %s2178_s11 }
   0xd   :  { %878 = vrot.lane.b32.xlu2 %v1762_v13, %s2178_s11 }
   0xf   :  { %373 = vmatpush.bf16.msra.mxu0 %v1789_v8  ;;  %2175 = vmatpush.bf16.msra.mxu2 %v1789_v8 }
  0x12   :  { %1693 = vmatmul.msk.bf16.vlgmr.msra.gmra.mxu0 %vm265_vm1, %v1757_v0  ;;  %1709 = vmatmul.msk.bf16.vlgmr.msra.gmra.mxu2 %vm265_vm1, %v2255_v10 }
  0x13   :  { %902 = vrot.lane.b32.xlu0 %v1774_v11, %s2178_s11 }
  0x14   :  { %880 = vrot.lane.b32.xlu1 %v1763_v14, %s2178_s11 }
  0x15   :  { %904 = vrot.lane.b32.xlu2 %v1775_v15, %s2178_s11 }
  0x1b   :  { %882 = vrot.lane.b32.xlu0 %v1764_v18, %s2178_s11 }
  0x1c   :  { %906 = vrot.lane.b32.xlu1 %v1776_v16, %s2178_s11 }
  0x1d   :  { %884 = vrot.lane.b32.xlu2 %v1765_v21, %s2178_s11 }
  0x22   :  { %1694 = vmatmul.msk.bf16.gmra.mxu0 %vm265_vm1, %v1758_v7  ;;  %1710 = vmatmul.msk.bf16.gmra.mxu2 %vm265_vm1, %v1774_v11  ;;  %v1783_v7 = vld [vmem:[%s3076_s0 + $0xd0] sm:$0xff] }
  0x23   :  { %908 = vrot.lane.b32.xlu0 %v1777_v20, %s2178_s11 }
  0x24   :  { %886 = vrot.lane.b32.xlu1 %v1766_v22, %s2178_s11 }
  0x25   :  { %910 = vrot.lane.b32.xlu2 %v1778_v24, %s2178_s11 }
  0x2b   :  { %888 = vrot.lane.b32.xlu0 %v1767_v26, %s2178_s11 }
  0x2c   :  { %912 = vrot.lane.b32.xlu1 %v1779_v25, %s2178_s11 }
  0x2d   :  { %890 = vrot.lane.b32.xlu2 %v1768_v40, %s2178_s11 }
  0x32   :  { %1695 = vmatmul.msk.bf16.gmra.mxu0 %vm265_vm1, %v1759_v3  ;;  %1711 = vmatmul.msk.bf16.gmra.mxu2 %vm265_vm1, %v1775_v15 }
  0x33   :  { %914 = vrot.lane.b32.xlu0 %v1780_v29, %s2178_s11 }
  0x34   :  { %892 = vrot.lane.b32.xlu1 %v2345_v41, %s2178_s11 }
  0x35   :  { %916 = vrot.lane.b32.xlu2 %v1781_v52, %s2178_s11 }
  0x3b   :  { %894 = vrot.lane.b32.xlu0 %v2370_v58, %s2178_s11 }
  0x3c   :  { %918 = vrot.lane.b32.xlu1 %v1782_v55, %s2178_s11 }
  0x42   :  { %1696 = vmatmul.msk.bf16.gmra.mxu0 %vm265_vm1, %v1760_v9  ;;  %1712 = vmatmul.msk.bf16.gmra.mxu2 %vm265_vm1, %v1776_v16 }
  0x43   :  { %920 = vrot.lane.b32.xlu0 %v1783_v7, %s2178_s11 }
  0x4b   :  { %900 = vrot.lane.b32.xlu0 %v2255_v10, %s2178_s11 }
  0x52   :  { %1697 = vmatmul.msk.bf16.gmra.mxu0 %vm265_vm1, %v1761_v12  ;;  %1713 = vmatmul.msk.bf16.gmra.mxu2 %vm265_vm1, %v1777_v20 }
  0x5f   :  { %v877_v43 = vpop.permute.xlu2 %876 }
  0x62   :  { %1698 = vmatmul.msk.bf16.gmra.mxu0 %vm265_vm1, %v1762_v13  ;;  %1714 = vmatmul.msk.bf16.gmra.mxu2 %vm265_vm1, %v1778_v24  ;;  %v1771_v24 = vld [vmem:[%s3076_s0 + $0x70] sm:$0xff] }
  0x63   :  { %896 = vrot.lane.b32.xlu2 %v1771_v24, %s2178_s11 }
  0x67   :  { %v879_v51 = vpop.permute.xlu2 %878 }
  0x6f   :  { %v905_v60 = vpop.permute.xlu2 %904 }
  0x72   :  { %1699 = vmatmul.msk.bf16.gmra.mxu0 %vm265_vm1, %v1763_v14  ;;  %1715 = vmatmul.msk.bf16.gmra.mxu2 %vm265_vm1, %v1779_v25  ;;  %v2418_v25 = vld [vmem:[%s3076_s0 + $0x78] sm:$0xff] }
  0x73   :  { %898 = vrot.lane.b32.xlu1 %v2418_v25, %s2178_s11 }
  0x74   :  { %v869_v23 = vpop.permute.xlu0 %868 }
  0x75   :  { %1725 = vmatmul.msk.bf16.vlgmr.msra.gmra.mxu1 %vm932_vm2, %v869_v23  ;;  %v873_v30 = vpop.permute.xlu1 %872 }
  0x7c   :  { %v871_v27 = vpop.permute.xlu0 %870 }
  0x7e   :  { %v875_v45 = vpop.permute.xlu1 %874 }
  0x82   :  { %1700 = vmatmul.msk.bf16.gmra.mxu0 %vm265_vm1, %v1764_v18  ;;  %1716 = vmatmul.msk.bf16.gmra.mxu2 %vm265_vm1, %v1780_v29 }
  0x85   :  { %1726 = vmatmul.msk.bf16.gmra.mxu1 %vm932_vm2, %v871_v27  ;;  %v903_v44 = vpop.permute.xlu0 %902 }
  0x86   :  { %1742 = vmatmul.msk.bf16.vlgmr.msra.gmra.mxu3 %vm932_vm2, %v903_v44  ;;  %v881_v3 = vpop.permute.xlu1 %880 }
  0x8d   :  { %v883_v20 = vpop.permute.xlu0 %882 }
  0x8e   :  { %v907_v12 = vpop.permute.xlu1 %906 }
  0x8f   :  { %v375_v28 = vpop.f32.mrf.mxu0 }
  0x90   :  { %v733_v31 = vmul.f32 %v375_v28, %v375_v28 }
  0x92   :  { %1701 = vmatmul.msk.bf16.gmra.mxu0 %vm265_vm1, %v1765_v21  ;;  %1717 = vmatmul.msk.bf16.gmra.mxu2 %vm265_vm1, %v1781_v52 }
  0x95   :  { %1727 = vmatmul.msk.bf16.gmra.mxu1 %vm932_vm2, %v873_v30  ;;  %v2361_v54 = vpop.f32.mrf.mxu2  ;;  %v909_v27 = vpop.permute.xlu0 %908 }
  0x96   :  { %1743 = vmatmul.msk.bf16.gmra.mxu3 %vm932_vm2, %v905_v60 }
  0x97   :  { %v377_v32 = vpop.f32.mrf.mxu0 }
  0x98   :  { %v1794_v33 = vpack.c.bf16 %v377_v32, %v375_v28  ;;  %v734_v34 = vmul.f32 %v377_v32, %v377_v32  ;;  %v663_v35 = vadd.f32 %v377_v32, %v375_v28 }
  0x9a   :  { %1795 = vst [vmem:[%s3079_s3] sm:$0xff] %v1794_v33   ;;  %v797_v36 = vadd.f32 %v734_v34, %v733_v31  ;;  %v885_v34 = vpop.permute.xlu2 %884 }
  0x9d   :  { %v2377_v62 = vpop.f32.mrf.mxu2 }
  0x9e   :  { %v1874_v4 = vpack.c.bf16 %v2377_v62, %v2361_v54 }
  0x9f   :  { %v380_v37 = vpop.f32.mrf.mxu0 }
  0xa0   :  { %v664_v38 = vadd.f32 %v663_v35, %v380_v37  ;;  %v735_v39 = vmul.f32 %v380_v37, %v380_v37  ;;  %2126 = vst [vmem:[%s3079_s3 + $0x80] sm:$0xff] %v1874_v4   ;;  %v1786_v4 = vld [vmem:[%s3076_s0 + $0xe8] sm:$0xff] }
  0xa2   :  { %v798_v42 = vadd.f32 %v797_v36, %v735_v39  ;;  %1702 = vmatmul.msk.bf16.gmra.mxu0 %vm265_vm1, %v1766_v22  ;;  %1718 = vmatmul.msk.bf16.gmra.mxu2 %vm265_vm1, %v1782_v55  ;;  %v1784_v36 = vld [vmem:[%s3076_s0 + $0xd8] sm:$0xff]  ;;  %v1785_v39 = vld [vmem:[%s3076_s0 + $0xe0] sm:$0xff] }
  0xa3   :  { %922 = vrot.lane.b32.xlu2 %v1784_v36, %s2178_s11  ;;  %924 = vrot.lane.b32.xlu1 %v1785_v39, %s2178_s11 }
  0xa5   :  { %1728 = vmatmul.msk.bf16.gmra.mxu1 %vm932_vm2, %v875_v45  ;;  %v2388_v6 = vpop.f32.mrf.mxu2 }
  0xa6   :  { %1744 = vmatmul.msk.bf16.gmra.mxu3 %vm932_vm2, %v907_v12 }
  0xa7   :  { %v382_v46 = vpop.f32.mrf.mxu0 }
  0xa8   :  { %v1799_v47 = vpack.c.bf16 %v382_v46, %v380_v37  ;;  %v736_v48 = vmul.f32 %v382_v46, %v382_v46  ;;  %v665_v49 = vadd.f32 %v664_v38, %v382_v46 }
  0xaa   :  { %2111 = vst [vmem:[%s3079_s3 + $0x8] sm:$0xff] %v1799_v47   ;;  %v799_v50 = vadd.f32 %v798_v42, %v736_v48 }
  0xab   :  { %926 = vrot.lane.b32.xlu2 %v1786_v4, %s2178_s11 }
  0xad   :  { %v2397_v14 = vpop.f32.mrf.mxu2 }
  0xae   :  { %v1879_v19 = vpack.c.bf16 %v2397_v14, %v2388_v6 }
  0xaf   :  { %v385_v53 = vpop.f32.mrf.mxu0 }
  0xb0   :  { %v666_v56 = vadd.f32 %v665_v49, %v385_v53  ;;  %v737_v57 = vmul.f32 %v385_v53, %v385_v53  ;;  %2127 = vst [vmem:[%s3079_s3 + $0x88] sm:$0xff] %v1879_v19  }
  0xb2   :  { %v800_v59 = vadd.f32 %v799_v50, %v737_v57  ;;  %1703 = vmatmul.msk.bf16.gmra.mxu0 %vm265_vm1, %v1767_v26  ;;  %1719 = vmatmul.msk.bf16.gmra.mxu2 %vm265_vm1, %v1783_v7 }
  0xb5   :  { %1729 = vmatmul.msk.bf16.gmra.mxu1 %vm932_vm2, %v877_v43  ;;  %v2410_v22 = vpop.f32.mrf.mxu2  ;;  %v911_v43 = vpop.permute.xlu2 %910 }
  0xb6   :  { %1745 = vmatmul.msk.bf16.gmra.mxu3 %vm932_vm2, %v909_v27 }
  0xb7   :  { %v387_v61 = vpop.f32.mrf.mxu0 }
  0xb8   :  { %v1804_v63 = vpack.c.bf16 %v387_v61, %v385_v53  ;;  %v738_v0 = vmul.f32 %v387_v61, %v387_v61  ;;  %v667_v1 = vadd.f32 %v666_v56, %v387_v61 }
  0xba   :  { %2112 = vst [vmem:[%s3079_s3 + $0x10] sm:$0xff] %v1804_v63   ;;  %v801_v2 = vadd.f32 %v800_v59, %v738_v0 }
  0xbd   :  { %v2427_v29 = vpop.f32.mrf.mxu2 }
  0xbe   :  { %v1884_v35 = vpack.c.bf16 %v2427_v29, %v2410_v22 }
  0xbf   :  { %v390_v5 = vpop.f32.mrf.mxu0 }
  0xc0   :  { %v668_v8 = vadd.f32 %v667_v1, %v390_v5  ;;  %v739_v9 = vmul.f32 %v390_v5, %v390_v5  ;;  %2128 = vst [vmem:[%s3079_s3 + $0x90] sm:$0xff] %v1884_v35  }
  0xc2   :  { %v802_v11 = vadd.f32 %v801_v2, %v739_v9  ;;  %1704 = vmatmul.msk.bf16.gmra.mxu0 %vm265_vm1, %v1768_v40  ;;  %1720 = vmatmul.msk.bf16.gmra.mxu2 %vm265_vm1, %v1784_v36 }
  0xc5   :  { %1730 = vmatmul.msk.bf16.gmra.mxu1 %vm932_vm2, %v879_v51  ;;  %v2442_v38 = vpop.f32.mrf.mxu2  ;;  %v887_v51 = vpop.permute.xlu1 %886 }
  0xc6   :  { %1746 = vmatmul.msk.bf16.gmra.mxu3 %vm932_vm2, %v911_v43  ;;  %v1788_v43 = vld [vmem:[%s3076_s0 + $0xf8] sm:$0xff] }
  0xc7   :  { %v392_v13 = vpop.f32.mrf.mxu0  ;;  %930 = vrot.lane.b32.xlu1 %v1788_v43, %s2178_s11 }
  0xc8   :  { %v1809_v15 = vpack.c.bf16 %v392_v13, %v390_v5  ;;  %v740_v16 = vmul.f32 %v392_v13, %v392_v13  ;;  %v669_v17 = vadd.f32 %v668_v8, %v392_v13  ;;  %v889_v8 = vpop.permute.xlu0 %888 }
  0xca   :  { %2113 = vst [vmem:[%s3079_s3 + $0x18] sm:$0xff] %v1809_v15   ;;  %v803_v18 = vadd.f32 %v802_v11, %v740_v16 }
  0xcd   :  { %v2452_v45 = vpop.f32.mrf.mxu2  ;;  %v913_v59 = vpop.permute.xlu1 %912 }
  0xce   :  { %v1889_v50 = vpack.c.bf16 %v2452_v45, %v2442_v38 }
  0xcf   :  { %v395_v21 = vpop.f32.mrf.mxu0 }
  0xd0   :  { %v670_v23 = vadd.f32 %v669_v17, %v395_v21  ;;  %v741_v10 = vmul.f32 %v395_v21, %v395_v21  ;;  %2129 = vst [vmem:[%s3079_s3 + $0x98] sm:$0xff] %v1889_v50   ;;  %v1787_v17 = vld [vmem:[%s3076_s0 + $0xf0] sm:$0xff] }
  0xd1   :  { %928 = vrot.lane.b32.xlu0 %v1787_v17, %s2178_s11 }
  0xd2   :  { %v804_v26 = vadd.f32 %v803_v18, %v741_v10  ;;  %1705 = vmatmul.msk.bf16.gmra.mxu0 %vm265_vm1, %v2345_v41  ;;  %1721 = vmatmul.msk.bf16.gmra.mxu2 %vm265_vm1, %v1785_v39 }
  0xd5   :  { %1731 = vmatmul.msk.bf16.gmra.mxu1 %vm932_vm2, %v881_v3  ;;  %v2463_v53 = vpop.f32.mrf.mxu2 }
  0xd6   :  { %1747 = vmatmul.msk.bf16.gmra.mxu3 %vm932_vm2, %v913_v59 }
  0xd7   :  { %v397_v28 = vpop.f32.mrf.mxu0 }
  0xd8   :  { %v1814_v30 = vpack.c.bf16 %v397_v28, %v395_v21  ;;  %v671_v31 = vadd.f32 %v670_v23, %v397_v28  ;;  %v742_v32 = vmul.f32 %v397_v28, %v397_v28  ;;  %v915_v23 = vpop.permute.xlu0 %914 }
  0xda   :  { %2114 = vst [vmem:[%s3079_s3 + $0x20] sm:$0xff] %v1814_v30   ;;  %v805_v33 = vadd.f32 %v804_v26, %v742_v32 }
  0xdd   :  { %v2468_v61 = vpop.f32.mrf.mxu2 }
  0xde   :  { %v1894_v3 = vpack.c.bf16 %v2468_v61, %v2463_v53 }
  0xdf   :  { %v400_v37 = vpop.f32.mrf.mxu0 }
  0xe0   :  { %v672_v40 = vadd.f32 %v671_v31, %v400_v37  ;;  %v743_v41 = vmul.f32 %v400_v37, %v400_v37  ;;  %2130 = vst [vmem:[%s3079_s3 + $0xa0] sm:$0xff] %v1894_v3  }
  0xe2   :  { %v806_v42 = vadd.f32 %v805_v33, %v743_v41  ;;  %1706 = vmatmul.msk.bf16.gmra.mxu0 %vm265_vm1, %v2370_v58  ;;  %1722 = vmatmul.msk.bf16.gmra.mxu2 %vm265_vm1, %v1786_v4  ;;  %v891_v33 = vpop.permute.xlu2 %890 }
  0xe5   :  { %1732 = vmatmul.msk.bf16.gmra.mxu1 %vm932_vm2, %v883_v20  ;;  %v2486_v16 = vpop.f32.mrf.mxu2 }
  0xe6   :  { %1748 = vmatmul.msk.bf16.gmra.mxu3 %vm932_vm2, %v915_v23 }
  0xe7   :  { %v402_v44 = vpop.f32.mrf.mxu0 }
  0xe8   :  { %v1819_v46 = vpack.c.bf16 %v402_v44, %v400_v37  ;;  %v673_v47 = vadd.f32 %v672_v40, %v402_v44  ;;  %v744_v48 = vmul.f32 %v402_v44, %v402_v44 }
  0xea   :  { %2115 = vst [vmem:[%s3079_s3 + $0x28] sm:$0xff] %v1819_v46   ;;  %v807_v49 = vadd.f32 %v806_v42, %v744_v48  ;;  %v917_v48 = vpop.permute.xlu2 %916 }
  0xed   :  { %v2496_v28 = vpop.f32.mrf.mxu2 }
  0xef   :  { %v405_v52 = vpop.f32.mrf.mxu0 }
  0xf0   :  { %v674_v55 = vadd.f32 %v673_v47, %v405_v52  ;;  %v745_v56 = vmul.f32 %v405_v52, %v405_v52 }
  0xf2   :  { %v808_v57 = vadd.f32 %v807_v49, %v745_v56  ;;  %1707 = vmatmul.msk.bf16.gmra.mxu0 %vm265_vm1, %v1771_v24  ;;  %v1041_v58 = vpop.f32.mrf.mxu1  ;;  %1723 = vmatmul.msk.bf16.gmra.mxu2 %vm265_vm1, %v1787_v17 }
  0xf3   :  { %v1399_v5 = vmul.f32 %v1041_v58, %v1041_v58 }
  0xf5   :  { %1733 = vmatmul.msk.bf16.gmra.mxu1 %vm932_vm2, %v885_v34  ;;  %v1899_v34 = vpack.c.bf16 %v2496_v28, %v2486_v16  ;;  %v2510_v42 = vpop.f32.mrf.mxu2 }
  0xf6   :  { %1749 = vmatmul.msk.bf16.gmra.mxu3 %vm932_vm2, %v917_v48 }
  0xf7   :  { %v407_v60 = vpop.f32.mrf.mxu0  ;;  %2131 = vst [vmem:[%s3079_s3 + $0xa8] sm:$0xff] %v1899_v34  }
  0xf8   :  { %v1824_v63 = vpack.c.bf16 %v407_v60, %v405_v52  ;;  %v675_v0 = vadd.f32 %v674_v55, %v407_v60  ;;  %v746_v1 = vmul.f32 %v407_v60, %v407_v60 }
  0xfa   :  { %2116 = vst [vmem:[%s3079_s3 + $0x30] sm:$0xff] %v1824_v63   ;;  %v809_v2 = vadd.f32 %v808_v57, %v746_v1  ;;  %v1043_v7 = vpop.f32.mrf.mxu1  ;;  %v893_v1 = vpop.permute.xlu1 %892 }
  0xfb   :  { %v1954_v9 = vpack.c.bf16 %v1043_v7, %v1041_v58  ;;  %v1400_v11 = vmul.f32 %v1043_v7, %v1043_v7  ;;  %v1329_v12 = vadd.f32 %v1043_v7, %v1041_v58 }
  0xfd   :  { %1955 = vst [vmem:[%s3080_s6] sm:$0xff] %v1954_v9   ;;  %v1463_v13 = vadd.f32 %v1400_v11, %v1399_v5  ;;  %v2518_v56 = vpop.f32.mrf.mxu2 }
  0xfe   :  { %v1904_v63 = vpack.c.bf16 %v2518_v56, %v2510_v42 }
  0xff   :  { %v410_v15 = vpop.f32.mrf.mxu0 }
 0x100   :  { %v676_v18 = vadd.f32 %v675_v0, %v410_v15  ;;  %v747_v19 = vmul.f32 %v410_v15, %v410_v15  ;;  %2132 = vst [vmem:[%s3079_s3 + $0xb0] sm:$0xff] %v1904_v63  }
 0x102   :  { %v810_v20 = vadd.f32 %v809_v2, %v747_v19  ;;  %1708 = vmatmul.msk.bf16.gmra.mxu0 %vm265_vm1, %v2418_v25  ;;  %v1046_v21 = vpop.f32.mrf.mxu1  ;;  %1724 = vmatmul.msk.bf16.gmra.mxu2 %vm265_vm1, %v1788_v43 }
 0x103   :  { %v1330_v10 = vadd.f32 %v1329_v12, %v1046_v21  ;;  %v1401_v24 = vmul.f32 %v1046_v21, %v1046_v21 }
 0x105   :  { %v1464_v26 = vadd.f32 %v1463_v13, %v1401_v24  ;;  %1734 = vmatmul.msk.bf16.gmra.mxu1 %vm932_vm2, %v887_v51 }
 0x107   :  { %v412_v27 = vpop.f32.mrf.mxu0 }
 0x108   :  { %v1829_v30 = vpack.c.bf16 %v412_v27, %v410_v15  ;;  %v677_v31 = vadd.f32 %v676_v18, %v412_v27  ;;  %v748_v32 = vmul.f32 %v412_v27, %v412_v27  ;;  %v919_v15 = vpop.permute.xlu1 %918 }
 0x109   :  { %1750 = vmatmul.msk.bf16.gmra.mxu3 %vm932_vm2, %v919_v15 }
 0x10a   :  { %2117 = vst [vmem:[%s3079_s3 + $0x38] sm:$0xff] %v1829_v30   ;;  %v811_v25 = vadd.f32 %v810_v20, %v748_v32  ;;  %v1048_v35 = vpop.f32.mrf.mxu1  ;;  %v895_v32 = vpop.permute.xlu0 %894 }
 0x10b   :  { %v1959_v36 = vpack.c.bf16 %v1048_v35, %v1046_v21  ;;  %v1402_v37 = vmul.f32 %v1048_v35, %v1048_v35  ;;  %v1331_v39 = vadd.f32 %v1330_v10, %v1048_v35 }
 0x10d   :  { %2142 = vst [vmem:[%s3080_s6 + $0x8] sm:$0xff] %v1959_v36   ;;  %v1465_v40 = vadd.f32 %v1464_v26, %v1402_v37  ;;  %v2538_v26 = vpop.f32.mrf.mxu3 }
 0x10f   :  { %v415_v41 = vpop.f32.mrf.mxu0 }
 0x110   :  { %v678_v44 = vadd.f32 %v677_v31, %v415_v41  ;;  %v749_v46 = vmul.f32 %v415_v41, %v415_v41 }
 0x112   :  { %v812_v47 = vadd.f32 %v811_v25, %v749_v46  ;;  %v1051_v49 = vpop.f32.mrf.mxu1 }
 0x113   :  { %v1332_v50 = vadd.f32 %v1331_v39, %v1051_v49  ;;  %v1403_v51 = vmul.f32 %v1051_v49, %v1051_v49 }
 0x115   :  { %v1466_v52 = vadd.f32 %v1465_v40, %v1403_v51  ;;  %1735 = vmatmul.msk.bf16.gmra.mxu1 %vm932_vm2, %v889_v8  ;;  %v2532_v8 = vpop.f32.mrf.mxu2 }
 0x117   :  { %v417_v55 = vpop.f32.mrf.mxu0 }
 0x118   :  { %v1834_v57 = vpack.c.bf16 %v417_v55, %v415_v41  ;;  %v679_v58 = vadd.f32 %v678_v44, %v417_v55  ;;  %v750_v59 = vmul.f32 %v417_v55, %v417_v55  ;;  %v2555_v41 = vpop.f32.mrf.mxu3 }
 0x119   :  { %v2039_v43 = vpack.c.bf16 %v2555_v41, %v2538_v26 }
 0x11a   :  { %2118 = vst [vmem:[%s3079_s3 + $0x40] sm:$0xff] %v1834_v57   ;;  %v813_v60 = vadd.f32 %v812_v47, %v750_v59  ;;  %v1053_v0 = vpop.f32.mrf.mxu1  ;;  %v921_v47 = vpop.permute.xlu0 %920 }
 0x11b   :  { %v1964_v2 = vpack.c.bf16 %v1053_v0, %v1051_v49  ;;  %v1404_v3 = vmul.f32 %v1053_v0, %v1053_v0  ;;  %v1333_v4 = vadd.f32 %v1332_v50, %v1053_v0  ;;  %2158 = vst [vmem:[%s3080_s6 + $0x88] sm:$0xff] %v2039_v43   ;;  %1751 = vmatmul.msk.bf16.gmra.mxu3 %vm932_vm2, %v921_v47 }
 0x11d   :  { %2143 = vst [vmem:[%s3080_s6 + $0x10] sm:$0xff] %v1964_v2   ;;  %v1467_v5 = vadd.f32 %v1466_v52, %v1404_v3  ;;  %v2536_v21 = vpop.f32.mrf.mxu2 }
 0x11e   :  { %v1909_v30 = vpack.c.bf16 %v2536_v21, %v2532_v8 }
 0x11f   :  { %v420_v7 = vpop.f32.mrf.mxu0 }
 0x120   :  { %v680_v9 = vadd.f32 %v679_v58, %v420_v7  ;;  %v751_v11 = vmul.f32 %v420_v7, %v420_v7  ;;  %2133 = vst [vmem:[%s3079_s3 + $0xb8] sm:$0xff] %v1909_v30   ;;  %v2571_v57 = vpop.f32.mrf.mxu3  ;;  %v897_v58 = vpop.permute.xlu2 %896 }
 0x122   :  { %v814_v12 = vadd.f32 %v813_v60, %v751_v11  ;;  %v1056_v13 = vpop.f32.mrf.mxu1 }
 0x123   :  { %v1334_v17 = vadd.f32 %v1333_v4, %v1056_v13  ;;  %v1405_v18 = vmul.f32 %v1056_v13, %v1056_v13 }
 0x125   :  { %v1468_v19 = vadd.f32 %v1467_v5, %v1405_v18  ;;  %1736 = vmatmul.msk.bf16.gmra.mxu1 %vm932_vm2, %v891_v33  ;;  %v2551_v37 = vpop.f32.mrf.mxu2 }
 0x127   :  { %v422_v20 = vpop.f32.mrf.mxu0 }
 0x128   :  { %v1839_v23 = vpack.c.bf16 %v422_v20, %v420_v7  ;;  %v681_v10 = vadd.f32 %v680_v9, %v422_v20  ;;  %v752_v24 = vmul.f32 %v422_v20, %v422_v20  ;;  %v2588_v5 = vpop.f32.mrf.mxu3  ;;  %v923_v9 = vpop.permute.xlu2 %922 }
 0x129   :  { %v2044_v7 = vpack.c.bf16 %v2588_v5, %v2571_v57 }
 0x12a   :  { %2119 = vst [vmem:[%s3079_s3 + $0x48] sm:$0xff] %v1839_v23   ;;  %v815_v27 = vadd.f32 %v814_v12, %v752_v24  ;;  %v1058_v31 = vpop.f32.mrf.mxu1  ;;  %v899_v24 = vpop.permute.xlu1 %898 }
 0x12b   :  { %v1969_v25 = vpack.c.bf16 %v1058_v31, %v1056_v13  ;;  %v1406_v33 = vmul.f32 %v1058_v31, %v1058_v31  ;;  %v1335_v34 = vadd.f32 %v1334_v17, %v1058_v31  ;;  %2159 = vst [vmem:[%s3080_s6 + $0x90] sm:$0xff] %v2044_v7   ;;  %1752 = vmatmul.msk.bf16.gmra.mxu3 %vm932_vm2, %v923_v9 }
 0x12d   :  { %2144 = vst [vmem:[%s3080_s6 + $0x18] sm:$0xff] %v1969_v25   ;;  %v1469_v35 = vadd.f32 %v1468_v19, %v1406_v33  ;;  %v2568_v52 = vpop.f32.mrf.mxu2 }
 0x12e   :  { %v1914_v59 = vpack.c.bf16 %v2568_v52, %v2551_v37 }
 0x12f   :  { %v425_v36 = vpop.f32.mrf.mxu0 }
 0x130   :  { %v2553_v39 = vadd.f32 %v681_v10, %v425_v36  ;;  %v753_v40 = vmul.f32 %v425_v36, %v425_v36  ;;  %2134 = vst [vmem:[%s3079_s3 + $0xc0] sm:$0xff] %v1914_v59   ;;  %v2603_v20 = vpop.f32.mrf.mxu3 }
 0x132   :  { %v2559_v44 = vadd.f32 %v815_v27, %v753_v40  ;;  %v1061_v46 = vpop.f32.mrf.mxu1  ;;  %v925_v40 = vpop.permute.xlu1 %924 }
 0x133   :  { %v1336_v48 = vadd.f32 %v1335_v34, %v1061_v46  ;;  %v1407_v49 = vmul.f32 %v1061_v46, %v1061_v46 }
 0x135   :  { %v1470_v50 = vadd.f32 %v1469_v35, %v1407_v49  ;;  %1737 = vmatmul.msk.bf16.gmra.mxu1 %vm932_vm2, %v893_v1  ;;  %v2586_v4 = vpop.f32.mrf.mxu2 }
 0x137   :  { %v2566_v51 = vpop.f32.mrf.mxu0 }
 0x138   :  { %v1844_v55 = vpack.c.bf16 %v2566_v51, %v425_v36  ;;  %v2620_v34 = vpop.f32.mrf.mxu3 }
 0x139   :  { %v2049_v35 = vpack.c.bf16 %v2620_v34, %v2603_v20 }
 0x13a   :  { %2120 = vst [vmem:[%s3079_s3 + $0x50] sm:$0xff] %v1844_v55   ;;  %v1063_v60 = vpop.f32.mrf.mxu1 }
 0x13b   :  { %v1974_v63 = vpack.c.bf16 %v1063_v60, %v1061_v46  ;;  %v1408_v0 = vmul.f32 %v1063_v60, %v1063_v60  ;;  %v1337_v1 = vadd.f32 %v1336_v48, %v1063_v60  ;;  %2160 = vst [vmem:[%s3080_s6 + $0x98] sm:$0xff] %v2049_v35   ;;  %1753 = vmatmul.msk.bf16.gmra.mxu3 %vm932_vm2, %v925_v40 }
 0x13d   :  { %2145 = vst [vmem:[%s3080_s6 + $0x20] sm:$0xff] %v1974_v63   ;;  %v1471_v2 = vadd.f32 %v1470_v50, %v1408_v0  ;;  %v2599_v18 = vpop.f32.mrf.mxu2 }
 0x13e   :  { %v1919_v23 = vpack.c.bf16 %v2599_v18, %v2586_v4 }
 0x13f   :  { %v2584_v3 = vpop.f32.mrf.mxu0 }
 0x140   :  { %2135 = vst [vmem:[%s3079_s3 + $0xc8] sm:$0xff] %v1919_v23   ;;  %v2635_v55 = vpop.f32.mrf.mxu3 }
 0x142   :  { %v1066_v11 = vpop.f32.mrf.mxu1 }
 0x143   :  { %v1338_v12 = vadd.f32 %v1337_v1, %v1066_v11  ;;  %v1409_v13 = vmul.f32 %v1066_v11, %v1066_v11 }
 0x145   :  { %v1472_v15 = vadd.f32 %v1471_v2, %v1409_v13  ;;  %1738 = vmatmul.msk.bf16.gmra.mxu1 %vm932_vm2, %v895_v32  ;;  %v2618_v33 = vpop.f32.mrf.mxu2 }
 0x147   :  { %v2597_v17 = vpop.f32.mrf.mxu0 }
 0x148   :  { %v1849_v19 = vpack.c.bf16 %v2597_v17, %v2584_v3  ;;  %v2650_v9 = vpop.f32.mrf.mxu3 }
 0x14a   :  { %2121 = vst [vmem:[%s3079_s3 + $0x58] sm:$0xff] %v1849_v19   ;;  %v1068_v10 = vpop.f32.mrf.mxu1 }
 0x14b   :  { %v1979_v27 = vpack.c.bf16 %v1068_v10, %v1066_v11  ;;  %v1339_v30 = vadd.f32 %v1338_v12, %v1068_v10  ;;  %v1410_v31 = vmul.f32 %v1068_v10, %v1068_v10  ;;  %v2054_v11 = vpack.c.bf16 %v2650_v9, %v2635_v55  ;;  %v927_v12 = vpop.permute.xlu2 %926 }
 0x14c   :  { %1754 = vmatmul.msk.bf16.gmra.mxu3 %vm932_vm2, %v927_v12 }
 0x14d   :  { %2146 = vst [vmem:[%s3080_s6 + $0x28] sm:$0xff] %v1979_v27   ;;  %v1473_v32 = vadd.f32 %v1472_v15, %v1410_v31  ;;  %v2631_v49 = vpop.f32.mrf.mxu2 }
 0x14e   :  { %v1924_v59 = vpack.c.bf16 %v2631_v49, %v2618_v33  ;;  %2161 = vst [vmem:[%s3080_s6 + $0xa0] sm:$0xff] %v2054_v11  }
 0x14f   :  { %v2616_v25 = vpop.f32.mrf.mxu0 }
 0x150   :  { %2136 = vst [vmem:[%s3079_s3 + $0xd0] sm:$0xff] %v1924_v59   ;;  %v2661_v31 = vpop.f32.mrf.mxu3  ;;  %v754_v59 = vmul.f32 %v2566_v51, %v2566_v51 }
 0x152   :  { %v1071_v36 = vpop.f32.mrf.mxu1 }
 0x153   :  { %v1340_v43 = vadd.f32 %v1339_v30, %v1071_v36  ;;  %v1411_v46 = vmul.f32 %v1071_v36, %v1071_v36 }
 0x155   :  { %v1474_v47 = vadd.f32 %v1473_v32, %v1411_v46  ;;  %1739 = vmatmul.msk.bf16.gmra.mxu1 %vm932_vm2, %v897_v58  ;;  %v2648_v7 = vpop.f32.mrf.mxu2 }
 0x157   :  { %v2629_v48 = vpop.f32.mrf.mxu0 }
 0x158   :  { %v1854_v50 = vpack.c.bf16 %v2629_v48, %v2616_v25 }
 0x15a   :  { %2122 = vst [vmem:[%s3079_s3 + $0x60] sm:$0xff] %v1854_v50   ;;  %v1073_v60 = vpop.f32.mrf.mxu1  ;;  %v2671_v50 = vpop.f32.mrf.mxu3 }
 0x15b   :  { %v1984_v63 = vpack.c.bf16 %v1073_v60, %v1071_v36  ;;  %v1341_v0 = vadd.f32 %v1340_v43, %v1073_v60  ;;  %v1412_v58 = vmul.f32 %v1073_v60, %v1073_v60  ;;  %v901_v43 = vpop.permute.xlu0 %900  ;;  %v2059_v60 = vpack.c.bf16 %v2671_v50, %v2661_v31 }
 0x15d   :  { %2147 = vst [vmem:[%s3080_s6 + $0x30] sm:$0xff] %v1984_v63   ;;  %v1475_v1 = vadd.f32 %v1474_v47, %v1412_v58  ;;  %v2659_v27 = vpop.f32.mrf.mxu2  ;;  %v755_v63 = vmul.f32 %v2584_v3, %v2584_v3  ;;  %v683_v58 = vadd.f32 %v2553_v39, %v2566_v51 }
 0x15e   :  { %2162 = vst [vmem:[%s3080_s6 + $0xa8] sm:$0xff] %v2059_v60  }
 0x15f   :  { %v440_v2 = vpop.f32.mrf.mxu0 }
 0x162   :  { %v1076_v13 = vpop.f32.mrf.mxu1 }
 0x163   :  { %v1342_v15 = vadd.f32 %v1341_v0, %v1076_v13  ;;  %v1413_v19 = vmul.f32 %v1076_v13, %v1076_v13  ;;  %v929_v12 = vpop.permute.xlu0 %928 }
 0x164   :  { %1755 = vmatmul.msk.bf16.gmra.mxu3 %vm932_vm2, %v929_v12 }
 0x165   :  { %v1476_v23 = vadd.f32 %v1475_v1, %v1413_v19  ;;  %1740 = vmatmul.msk.bf16.gmra.mxu1 %vm932_vm2, %v899_v24  ;;  %v2669_v47 = vpop.f32.mrf.mxu2  ;;  %v684_v19 = vadd.f32 %v683_v58, %v2584_v3 }
 0x167   :  { %v442_v10 = vpop.f32.mrf.mxu0  ;;  %v685_v51 = vadd.f32 %v684_v19, %v2597_v17 }
 0x168   :  { %v1859_v30 = vpack.c.bf16 %v442_v10, %v440_v2 }
 0x169   :  { %v686_v3 = vadd.f32 %v685_v51, %v2616_v25 }
 0x16a   :  { %2123 = vst [vmem:[%s3079_s3 + $0x68] sm:$0xff] %v1859_v30   ;;  %v1078_v32 = vpop.f32.mrf.mxu1 }
 0x16b   :  { %v1989_v35 = vpack.c.bf16 %v1078_v32, %v1076_v13  ;;  %v1343_v36 = vadd.f32 %v1342_v15, %v1078_v32  ;;  %v1414_v40 = vmul.f32 %v1078_v32, %v1078_v32  ;;  %v817_v13 = vadd.f32 %v2559_v44, %v754_v59  ;;  %v2695_v44 = vpop.f32.mrf.mxu3 }
 0x16c   :  { %v756_v15 = vmul.f32 %v2597_v17, %v2597_v17  ;;  %v757_v32 = vmul.f32 %v2616_v25, %v2616_v25  ;;  %v758_v59 = vmul.f32 %v2629_v48, %v2629_v48  ;;  %v687_v17 = vadd.f32 %v686_v3, %v2629_v48 }
 0x16d   :  { %2148 = vst [vmem:[%s3080_s6 + $0x38] sm:$0xff] %v1989_v35   ;;  %v1477_v24 = vadd.f32 %v1476_v23, %v1414_v40  ;;  %v818_v30 = vadd.f32 %v817_v13, %v755_v63  ;;  %v760_v13 = vmul.f32 %v442_v10, %v442_v10 }
 0x16f   :  { %v445_v46 = vpop.f32.mrf.mxu0  ;;  %v819_v40 = vadd.f32 %v818_v30, %v756_v15  ;;  %v688_v15 = vadd.f32 %v687_v17, %v440_v2  ;;  %v931_v17 = vpop.permute.xlu1 %930 }
 0x170   :  { %v761_v30 = vmul.f32 %v445_v46, %v445_v46 }
 0x172   :  { %v1081_v0 = vpop.f32.mrf.mxu1 }
 0x173   :  { %v1344_v1 = vadd.f32 %v1343_v36, %v1081_v0  ;;  %v1415_v11 = vmul.f32 %v1081_v0, %v1081_v0  ;;  %v2693_v36 = vpop.f32.mrf.mxu2 }
 0x174   :  { %1756 = vmatmul.msk.bf16.gmra.mxu3 %vm932_vm2, %v931_v17 }
 0x175   :  { %v1478_v23 = vadd.f32 %v1477_v24, %v1415_v11  ;;  %1741 = vmatmul.msk.bf16.gmra.mxu1 %vm932_vm2, %v901_v43  ;;  %v820_v43 = vadd.f32 %v819_v40, %v757_v32  ;;  %v759_v24 = vmul.f32 %v440_v2, %v440_v2  ;;  %v2709_v40 = vpop.f32.mrf.mxu3  ;;  %v1929_v2 = vpack.c.bf16 %v2659_v27, %v2648_v7 }
 0x177   :  { %v447_v39 = vpop.f32.mrf.mxu0  ;;  %v821_v12 = vadd.f32 %v820_v43, %v758_v59  ;;  %2137 = vst [vmem:[%s3079_s3 + $0xd8] sm:$0xff] %v1929_v2  }
 0x178   :  { %v1864_v35 = vpack.c.bf16 %v447_v39, %v445_v46  ;;  %v762_v59 = vmul.f32 %v447_v39, %v447_v39 }
 0x179   :  { %v822_v19 = vadd.f32 %v821_v12, %v759_v24 }
 0x17a   :  { %2124 = vst [vmem:[%s3079_s3 + $0x70] sm:$0xff] %v1864_v35   ;;  %v1083_v60 = vpop.f32.mrf.mxu1  ;;  %v689_v35 = vadd.f32 %v688_v15, %v442_v10 }
 0x17b   :  { %v1994_v63 = vpack.c.bf16 %v1083_v60, %v1081_v0  ;;  %v1345_v58 = vadd.f32 %v1344_v1, %v1083_v60  ;;  %v1416_v11 = vmul.f32 %v1083_v60, %v1083_v60  ;;  %v2707_v32 = vpop.f32.mrf.mxu2  ;;  %v823_v48 = vadd.f32 %v822_v19, %v760_v13 }
 0x17c   :  { %v2064_v0 = vpack.c.bf16 %v2709_v40, %v2695_v44  ;;  %v690_v1 = vadd.f32 %v689_v35, %v445_v46 }
 0x17d   :  { %2149 = vst [vmem:[%s3080_s6 + $0x40] sm:$0xff] %v1994_v63   ;;  %v1479_v25 = vadd.f32 %v1478_v23, %v1416_v11  ;;  %v824_v3 = vadd.f32 %v823_v48, %v761_v30 }
 0x17e   :  { %2163 = vst [vmem:[%s3080_s6 + $0xb0] sm:$0xff] %v2064_v0   ;;  %v691_v10 = vadd.f32 %v690_v1, %v447_v39  ;;  %v2724_v39 = vpop.f32.mrf.mxu3 }
 0x17f   :  { %v450_v51 = vpop.f32.mrf.mxu0  ;;  %v825_v46 = vadd.f32 %v824_v3, %v762_v59 }
 0x180   :  { %v763_v23 = vmul.f32 %v450_v51, %v450_v51  ;;  %v692_v63 = vadd.f32 %v691_v10, %v450_v51 }
 0x182   :  { %v1086_v43 = vpop.f32.mrf.mxu1  ;;  %v826_v13 = vadd.f32 %v825_v46, %v763_v23  ;;  %v767_v23 = vmul.f32 %v2388_v6, %v2388_v6  ;;  %v768_v46 = vmul.f32 %v2397_v14, %v2397_v14 }
 0x183   :  { %v1346_v24 = vadd.f32 %v1345_v58, %v1086_v43  ;;  %v1417_v60 = vmul.f32 %v1086_v43, %v1086_v43  ;;  %v2722_v35 = vpop.f32.mrf.mxu2  ;;  %v765_v58 = vmul.f32 %v2361_v54, %v2361_v54 }
 0x185   :  { %v1480_v11 = vadd.f32 %v1479_v25, %v1417_v60  ;;  %v766_v25 = vmul.f32 %v2377_v62, %v2377_v62 }
 0x187   :  { %v452_v12 = vpop.f32.mrf.mxu0 }
 0x188   :  { %v1869_v15 = vpack.c.bf16 %v452_v12, %v450_v51  ;;  %v693_v19 = vadd.f32 %v692_v63, %v452_v12  ;;  %v764_v30 = vmul.f32 %v452_v12, %v452_v12 }
 0x18a   :  { %2125 = vst [vmem:[%s3079_s3 + $0x78] sm:$0xff] %v1869_v15   ;;  %v694_v48 = vadd.f32 %v693_v19, %v2361_v54  ;;  %v827_v0 = vadd.f32 %v826_v13, %v764_v30  ;;  %v1088_v51 = vpop.f32.mrf.mxu1 }
 0x18b   :  { %v1999_v2 = vpack.c.bf16 %v1088_v51, %v1086_v43  ;;  %v1347_v3 = vadd.f32 %v1346_v24, %v1088_v51  ;;  %v1418_v10 = vmul.f32 %v1088_v51, %v1088_v51  ;;  %v2744_v43 = vpop.f32.mrf.mxu2  ;;  %v2746_v24 = vpop.f32.mrf.mxu3 }
 0x18c   :  { %v695_v1 = vadd.f32 %v694_v48, %v2377_v62  ;;  %v828_v59 = vadd.f32 %v827_v0, %v765_v58  ;;  %v2069_v12 = vpack.c.bf16 %v2746_v24, %v2724_v39  ;;  %v771_v0 = vmul.f32 %v2442_v38, %v2442_v38 }
 0x18d   :  { %2150 = vst [vmem:[%s3080_s6 + $0x48] sm:$0xff] %v1999_v2   ;;  %v1481_v54 = vadd.f32 %v1480_v11, %v1418_v10  ;;  %v770_v11 = vmul.f32 %v2427_v29, %v2427_v29 }
 0x18e   :  { %v696_v60 = vadd.f32 %v695_v1, %v2388_v6  ;;  %v829_v17 = vadd.f32 %v828_v59, %v766_v25  ;;  %v769_v6 = vmul.f32 %v2410_v22, %v2410_v22  ;;  %2164 = vst [vmem:[%s3080_s6 + $0xb8] sm:$0xff] %v2069_v12   ;;  %v772_v1 = vmul.f32 %v2452_v45, %v2452_v45 }
 0x190   :  { %v697_v62 = vadd.f32 %v696_v60, %v2397_v14  ;;  %v830_v63 = vadd.f32 %v829_v17, %v767_v23 }
 0x192   :  { %v698_v13 = vadd.f32 %v697_v62, %v2410_v22  ;;  %v831_v15 = vadd.f32 %v830_v63, %v768_v46  ;;  %v1091_v19 = vpop.f32.mrf.mxu1 }
 0x193   :  { %v1348_v58 = vadd.f32 %v1347_v3, %v1091_v19  ;;  %v1419_v48 = vmul.f32 %v1091_v19, %v1091_v19  ;;  %v2765_v10 = vpop.f32.mrf.mxu2  ;;  %v2767_v23 = vpop.f32.mrf.mxu3 }
 0x194   :  { %v699_v14 = vadd.f32 %v698_v13, %v2427_v29  ;;  %v832_v30 = vadd.f32 %v831_v15, %v769_v6  ;;  %v773_v29 = vmul.f32 %v2463_v53, %v2463_v53  ;;  %v775_v6 = vmul.f32 %v2486_v16, %v2486_v16 }
 0x195   :  { %v1482_v51 = vadd.f32 %v1481_v54, %v1419_v48  ;;  %v776_v15 = vmul.f32 %v2496_v28, %v2496_v28  ;;  %v777_v48 = vmul.f32 %v2510_v42, %v2510_v42 }
 0x196   :  { %v700_v25 = vadd.f32 %v699_v14, %v2442_v38  ;;  %v833_v22 = vadd.f32 %v832_v30, %v770_v11  ;;  %v774_v38 = vmul.f32 %v2468_v61, %v2468_v61  ;;  %v1939_v14 = vpack.c.bf16 %v2722_v35, %v2707_v32 }
 0x198   :  { %v701_v59 = vadd.f32 %v700_v25, %v2452_v45  ;;  %v834_v2 = vadd.f32 %v833_v22, %v771_v0  ;;  %v1934_v45 = vpack.c.bf16 %v2693_v36, %v2669_v47  ;;  %2139 = vst [vmem:[%s3079_s3 + $0xe8] sm:$0xff] %v1939_v14   ;;  %v779_v22 = vmul.f32 %v2532_v8, %v2532_v8 }
 0x199   :  { %v785_v14 = vmul.f32 %v2618_v33, %v2618_v33 }
 0x19a   :  { %v702_v3 = vadd.f32 %v701_v59, %v2463_v53  ;;  %v835_v60 = vadd.f32 %v834_v2, %v772_v1  ;;  %v1093_v17 = vpop.f32.mrf.mxu1  ;;  %2138 = vst [vmem:[%s3079_s3 + $0xe0] sm:$0xff] %v1934_v45  }
 0x19b   :  { %v2004_v62 = vpack.c.bf16 %v1093_v17, %v1091_v19  ;;  %v1349_v63 = vadd.f32 %v1348_v58, %v1093_v17  ;;  %v1420_v12 = vmul.f32 %v1093_v17, %v1093_v17  ;;  %v2793_v30 = vpop.f32.mrf.mxu3 }
 0x19c   :  { %v703_v54 = vadd.f32 %v702_v3, %v2468_v61  ;;  %v836_v46 = vadd.f32 %v835_v60, %v773_v29  ;;  %v2074_v58 = vpack.c.bf16 %v2793_v30, %v2767_v23  ;;  %v1944_v29 = vpack.c.bf16 %v2765_v10, %v2744_v43 }
 0x19d   :  { %2151 = vst [vmem:[%s3080_s6 + $0x50] sm:$0xff] %v2004_v62   ;;  %v1483_v61 = vadd.f32 %v1482_v51, %v1420_v12  ;;  %v780_v3 = vmul.f32 %v2536_v21, %v2536_v21 }
 0x19e   :  { %v704_v13 = vadd.f32 %v703_v54, %v2486_v16  ;;  %v837_v53 = vadd.f32 %v836_v46, %v774_v38  ;;  %v2791_v16 = vpop.f32.mrf.mxu2  ;;  %2165 = vst [vmem:[%s3080_s6 + $0xc0] sm:$0xff] %v2074_v58  }
 0x19f   :  { %2140 = vst [vmem:[%s3079_s3 + $0xf0] sm:$0xff] %v1944_v29  }
 0x1a0   :  { %v705_v11 = vadd.f32 %v704_v13, %v2496_v28  ;;  %v838_v19 = vadd.f32 %v837_v53, %v775_v6  ;;  %v778_v28 = vmul.f32 %v2518_v56, %v2518_v56 }
 0x1a2   :  { %v839_v0 = vadd.f32 %v838_v19, %v776_v15  ;;  %v706_v25 = vadd.f32 %v705_v11, %v2510_v42  ;;  %v1096_v51 = vpop.f32.mrf.mxu1  ;;  %v784_v11 = vmul.f32 %v2599_v18, %v2599_v18 }
 0x1a3   :  { %v2811_v2 = vadd.f32 %v1349_v63, %v1096_v51  ;;  %v1421_v42 = vmul.f32 %v1096_v51, %v1096_v51  ;;  %v2828_v62 = vpop.f32.mrf.mxu3  ;;  %v782_v63 = vmul.f32 %v2568_v52, %v2568_v52 }
 0x1a4   :  { %v707_v1 = vadd.f32 %v706_v25, %v2518_v56  ;;  %v840_v59 = vadd.f32 %v839_v0, %v777_v48  ;;  %v781_v56 = vmul.f32 %v2551_v37, %v2551_v37  ;;  %v786_v25 = vmul.f32 %v2631_v49, %v2631_v49 }
 0x1a5   :  { %v2818_v38 = vadd.f32 %v1483_v61, %v1421_v42  ;;  %v788_v42 = vmul.f32 %v2659_v27, %v2659_v27 }
 0x1a6   :  { %v708_v60 = vadd.f32 %v707_v1, %v2532_v8  ;;  %v841_v17 = vadd.f32 %v840_v59, %v778_v28  ;;  %v2826_v45 = vpop.f32.mrf.mxu2 }
 0x1a7   :  { %v1949_v8 = vpack.c.bf16 %v2826_v45, %v2791_v16 }
 0x1a8   :  { %v709_v54 = vadd.f32 %v708_v60, %v2536_v21  ;;  %v842_v46 = vadd.f32 %v841_v17, %v779_v22  ;;  %v783_v21 = vmul.f32 %v2586_v4, %v2586_v4  ;;  %v789_v60 = vmul.f32 %v2669_v47, %v2669_v47 }
 0x1a9   :  { %2141 = vst [vmem:[%s3079_s3 + $0xf8] sm:$0xff] %v1949_v8  }
 0x1aa   :  { %v710_v12 = vadd.f32 %v709_v54, %v2551_v37  ;;  %v843_v6 = vadd.f32 %v842_v46, %v780_v3  ;;  %v2835_v13 = vpop.f32.mrf.mxu1 }
 0x1ab   :  { %v2009_v15 = vpack.c.bf16 %v2835_v13, %v1096_v51 }
 0x1ac   :  { %v711_v53 = vadd.f32 %v710_v12, %v2568_v52  ;;  %v844_v61 = vadd.f32 %v843_v6, %v781_v56  ;;  %v2853_v52 = vpop.f32.mrf.mxu3 }
 0x1ad   :  { %2152 = vst [vmem:[%s3080_s6 + $0x58] sm:$0xff] %v2009_v15   ;;  %v2079_v0 = vpack.c.bf16 %v2853_v52, %v2828_v62 }
 0x1ae   :  { %v712_v37 = vadd.f32 %v711_v53, %v2586_v4  ;;  %v845_v19 = vadd.f32 %v844_v61, %v782_v63 }
 0x1af   :  { %2166 = vst [vmem:[%s3080_s6 + $0xc8] sm:$0xff] %v2079_v0  }
 0x1b0   :  { %v713_v58 = vadd.f32 %v712_v37, %v2599_v18  ;;  %v846_v48 = vadd.f32 %v845_v19, %v783_v21  ;;  %v787_v18 = vmul.f32 %v2648_v7, %v2648_v7  ;;  %v794_v37 = vmul.f32 %v2765_v10, %v2765_v10 }
 0x1b2   :  { %v714_v4 = vadd.f32 %v713_v58, %v2618_v33  ;;  %v847_v28 = vadd.f32 %v846_v48, %v784_v11  ;;  %v2860_v22 = vpop.f32.mrf.mxu1  ;;  %v795_v58 = vmul.f32 %v2791_v16, %v2791_v16 }
 0x1b4   :  { %v715_v51 = vadd.f32 %v714_v4, %v2631_v49  ;;  %v848_v1 = vadd.f32 %v847_v28, %v785_v14  ;;  %v2874_v17 = vpop.f32.mrf.mxu3  ;;  %v790_v49 = vmul.f32 %v2693_v36, %v2693_v36 }
 0x1b6   :  { %v716_v59 = vadd.f32 %v715_v51, %v2648_v7  ;;  %v849_v29 = vadd.f32 %v848_v1, %v786_v25 }
 0x1b8   :  { %v717_v33 = vadd.f32 %v716_v59, %v2659_v27  ;;  %v850_v3 = vadd.f32 %v849_v29, %v787_v18  ;;  %v791_v27 = vmul.f32 %v2707_v32, %v2707_v32 }
 0x1ba   :  { %v851_v56 = vadd.f32 %v850_v3, %v788_v42  ;;  %v718_v54 = vadd.f32 %v717_v33, %v2669_v47  ;;  %v2879_v46 = vpop.f32.mrf.mxu1  ;;  %v792_v47 = vmul.f32 %v2722_v35, %v2722_v35 }
 0x1bb   :  { %v2014_v63 = vpack.c.bf16 %v2879_v46, %v2860_v22 }
 0x1bc   :  { %v852_v7 = vadd.f32 %v851_v56, %v789_v60  ;;  %v719_v8 = vadd.f32 %v718_v54, %v2693_v36  ;;  %v793_v36 = vmul.f32 %v2744_v43, %v2744_v43  ;;  %v2895_v61 = vpop.f32.mrf.mxu3 }
 0x1bd   :  { %2153 = vst [vmem:[%s3080_s6 + $0x60] sm:$0xff] %v2014_v63   ;;  %v2084_v15 = vpack.c.bf16 %v2895_v61, %v2874_v17 }
 0x1be   :  { %v853_v12 = vadd.f32 %v852_v7, %v790_v49  ;;  %v720_v6 = vadd.f32 %v719_v8, %v2707_v32 }
 0x1bf   :  { %2167 = vst [vmem:[%s3080_s6 + $0xd0] sm:$0xff] %v2084_v15   ;;  %v1351_v15 = vadd.f32 %v2811_v2, %v2835_v13 }
 0x1c0   :  { %v854_v21 = vadd.f32 %v853_v12, %v791_v27  ;;  %v721_v53 = vadd.f32 %v720_v6, %v2722_v35 }
 0x1c2   :  { %v855_v11 = vadd.f32 %v854_v21, %v792_v47  ;;  %v722_v32 = vadd.f32 %v721_v53, %v2744_v43  ;;  %v1106_v19 = vpop.f32.mrf.mxu1  ;;  %v796_v43 = vmul.f32 %v2826_v45, %v2826_v45 }
 0x1c4   :  { %v856_v35 = vadd.f32 %v855_v11, %v793_v36  ;;  %v723_v14 = vadd.f32 %v722_v32, %v2765_v10  ;;  %v2912_v28 = vpop.f32.mrf.mxu3  ;;  %v1422_v36 = vmul.f32 %v2835_v13, %v2835_v13  ;;  %v1423_v11 = vmul.f32 %v2860_v22, %v2860_v22 }
 0x1c6   :  { %v857_v48 = vadd.f32 %v856_v35, %v794_v37  ;;  %v724_v0 = vadd.f32 %v723_v14, %v2791_v16  ;;  %v1485_v37 = vadd.f32 %v2818_v38, %v1422_v36  ;;  %v1352_v35 = vadd.f32 %v1351_v15, %v2860_v22 }
 0x1c7   :  { %v1424_v14 = vmul.f32 %v2879_v46, %v2879_v46 }
 0x1c8   :  { %v858_v25 = vadd.f32 %v857_v48, %v795_v58  ;;  %v725_v4 = vadd.f32 %v724_v0, %v2826_v45  ;;  %v1486_v48 = vadd.f32 %v1485_v37, %v1423_v11  ;;  %v1353_v0 = vadd.f32 %v1352_v35, %v2879_v46 }
 0x1c9   :  { %v1433_v37 = vmul.f32 %v2538_v26, %v2538_v26  ;;  %v1434_v35 = vmul.f32 %v2555_v41, %v2555_v41 }
 0x1ca   :  { %v726_v18 = vrot.slane %v725_v4, 4  ;;  %v859_v51 = vadd.f32 %v858_v25, %v796_v43  ;;  %v1108_v1 = vpop.f32.mrf.mxu1  ;;  %v1425_v43 = vmul.f32 %v1106_v19, %v1106_v19  ;;  %v1354_v2 = vadd.f32 %v1353_v0, %v1106_v19 }
 0x1cb   :  { %v2019_v10 = vpack.c.bf16 %v1108_v1, %v1106_v19  ;;  %v1426_v13 = vmul.f32 %v1108_v1, %v1108_v1 }
 0x1cc   :  { %v727_v59 = vadd.f32 %v726_v18, %v725_v4  ;;  %v860_v42 = vrot.slane %v859_v51, 4  ;;  %v2917_v60 = vpop.f32.mrf.mxu3  ;;  %v1487_v4 = vadd.f32 %v1486_v48, %v1424_v14  ;;  %v1355_v38 = vadd.f32 %v1354_v2, %v1108_v1 }
 0x1cd   :  { %2154 = vst [vmem:[%s3080_s6 + $0x68] sm:$0xff] %v2019_v10   ;;  %v2089_v45 = vpack.c.bf16 %v2917_v60, %v2912_v28 }
 0x1ce   :  { %v728_v29 = vrot.slane %v727_v59, 2  ;;  %v861_v33 = vadd.f32 %v860_v42, %v859_v51  ;;  %v1488_v18 = vadd.f32 %v1487_v4, %v1425_v43  ;;  %v1435_v43 = vmul.f32 %v2571_v57, %v2571_v57 }
 0x1cf   :  { %2168 = vst [vmem:[%s3080_s6 + $0xd8] sm:$0xff] %v2089_v45  }
 0x1d0   :  { %v729_v16 = vadd.f32 %v728_v29, %v727_v59  ;;  %v862_v3 = vrot.slane %v861_v33, 2  ;;  %v1489_v42 = vadd.f32 %v1488_v18, %v1426_v13  ;;  %v1437_v13 = vmul.f32 %v2603_v20, %v2603_v20 }
 0x1d2   :  { %v730_v56 = vrot.slane %v729_v16, 1  ;;  %v863_v54 = vadd.f32 %v862_v3, %v861_v33  ;;  %v1111_v49 = vpop.f32.mrf.mxu1 }
 0x1d3   :  { %v1427_v51 = vmul.f32 %v1111_v49, %v1111_v49  ;;  %v1356_v10 = vadd.f32 %v1355_v38, %v1111_v49 }
 0x1d4   :  { %v731_v7 = vadd.f32 %v730_v56, %v729_v16  ;;  %v864_v8 = vrot.slane %v863_v54, 1  ;;  %v2930_v63 = vpop.f32.mrf.mxu3 }
 0x1d5   :  { %v1490_v19 = vadd.f32 %v1489_v42, %v1427_v51 }
 0x1d6   :  { %732 = vst [vmem:[%s3081_s4] sm:$0x1] %v731_v7  ;;  %v865_v27 = vadd.f32 %v864_v8, %v863_v54 }
 0x1d8   :  { %866 = vst [vmem:[%s3082_s5] sm:$0x1] %v865_v27 }
 0x1da   :  { %v1113_v12 = vpop.f32.mrf.mxu1 }
 0x1db   :  { %v2024_v6 = vpack.c.bf16 %v1113_v12, %v1111_v49  ;;  %v1428_v46 = vmul.f32 %v1113_v12, %v1113_v12  ;;  %v1357_v33 = vadd.f32 %v1356_v10, %v1113_v12  ;;  %v1439_v10 = vmul.f32 %v2635_v55, %v2635_v55 }
 0x1dc   :  { %v2935_v47 = vpop.f32.mrf.mxu3 }
 0x1dd   :  { %2155 = vst [vmem:[%s3080_s6 + $0x70] sm:$0xff] %v2024_v6   ;;  %v2094_v21 = vpack.c.bf16 %v2935_v47, %v2930_v63  ;;  %v1491_v3 = vadd.f32 %v1490_v19, %v1428_v46 }
 0x1df   :  { %2169 = vst [vmem:[%s3080_s6 + $0xe0] sm:$0xff] %v2094_v21  }
 0x1e2   :  { %v1116_v53 = vpop.f32.mrf.mxu1 }
 0x1e3   :  { %v1429_v16 = vmul.f32 %v1116_v53, %v1116_v53  ;;  %v1358_v45 = vadd.f32 %v1357_v33, %v1116_v53  ;;  %v1441_v33 = vmul.f32 %v2661_v31, %v2661_v31 }
 0x1e4   :  { %v2948_v32 = vpop.f32.mrf.mxu3 }
 0x1e5   :  { %v1492_v56 = vadd.f32 %v1491_v3, %v1429_v16  ;;  %v1442_v3 = vmul.f32 %v2671_v50, %v2671_v50 }
 0x1ea   :  { %v1118_v58 = vpop.f32.mrf.mxu1 }
 0x1eb   :  { %v2029_v25 = vpack.c.bf16 %v1118_v58, %v1116_v53  ;;  %v1430_v1 = vmul.f32 %v1118_v58, %v1118_v58  ;;  %v1359_v54 = vadd.f32 %v1358_v45, %v1118_v58 }
 0x1ec   :  { %v2958_v22 = vpop.f32.mrf.mxu3 }
 0x1ed   :  { %2156 = vst [vmem:[%s3080_s6 + $0x78] sm:$0xff] %v2029_v25   ;;  %v2099_v59 = vpack.c.bf16 %v2958_v22, %v2948_v32  ;;  %v1493_v27 = vadd.f32 %v1492_v56, %v1430_v1 }
 0x1ef   :  { %2170 = vst [vmem:[%s3080_s6 + $0xe8] sm:$0xff] %v2099_v59  }
 0x1f2   :  { %v1121_v29 = vpop.f32.mrf.mxu1 }
 0x1f3   :  { %v1431_v7 = vmul.f32 %v1121_v29, %v1121_v29  ;;  %v1360_v6 = vadd.f32 %v1359_v54, %v1121_v29  ;;  %v1443_v54 = vmul.f32 %v2695_v44, %v2695_v44 }
 0x1f4   :  { %v2965_v8 = vpop.f32.mrf.mxu3 }
 0x1f5   :  { %v1494_v21 = vadd.f32 %v1493_v27, %v1431_v7 }
 0x1fa   :  { %v1123_v49 = vpop.f32.mrf.mxu1 }
 0x1fb   :  { %v2034_v36 = vpack.c.bf16 %v1123_v49, %v1121_v29  ;;  %v1361_v15 = vadd.f32 %v1360_v6, %v1123_v49  ;;  %v1432_v11 = vmul.f32 %v1123_v49, %v1123_v49  ;;  %v1440_v29 = vmul.f32 %v2650_v9, %v2650_v9 }
 0x1fc   :  { %v2976_v48 = vpop.f32.mrf.mxu3  ;;  %v1445_v6 = vmul.f32 %v2724_v39, %v2724_v39 }
 0x1fd   :  { %2157 = vst [vmem:[%s3080_s6 + $0x80] sm:$0xff] %v2034_v36   ;;  %v1362_v12 = vadd.f32 %v1361_v15, %v2538_v26  ;;  %v1495_v53 = vadd.f32 %v1494_v21, %v1432_v11  ;;  %v2104_v0 = vpack.c.bf16 %v2976_v48, %v2965_v8  ;;  %v1436_v26 = vmul.f32 %v2588_v5, %v2588_v5 }
 0x1fe   :  { %v1447_v11 = vmul.f32 %v2767_v23, %v2767_v23 }
 0x1ff   :  { %v1363_v14 = vadd.f32 %v1362_v12, %v2555_v41  ;;  %v1496_v58 = vadd.f32 %v1495_v53, %v1433_v37  ;;  %2171 = vst [vmem:[%s3080_s6 + $0xf0] sm:$0xff] %v2104_v0  }
 0x201   :  { %v1364_v25 = vadd.f32 %v1363_v14, %v2571_v57  ;;  %v1497_v4 = vadd.f32 %v1496_v58, %v1434_v35  ;;  %v1438_v57 = vmul.f32 %v2620_v34, %v2620_v34 }
 0x203   :  { %v1365_v41 = vadd.f32 %v1364_v25, %v2588_v5  ;;  %v1498_v2 = vadd.f32 %v1497_v4, %v1435_v43 }
 0x204   :  { %v2995_v42 = vpop.f32.mrf.mxu3 }
 0x205   :  { %v1366_v18 = vadd.f32 %v1365_v41, %v2603_v20  ;;  %v1499_v38 = vadd.f32 %v1498_v2, %v1436_v26 }
 0x207   :  { %v1367_v51 = vadd.f32 %v1366_v18, %v2620_v34  ;;  %v1500_v59 = vadd.f32 %v1499_v38, %v1437_v13 }
 0x209   :  { %v1368_v5 = vadd.f32 %v1367_v51, %v2635_v55  ;;  %v1501_v46 = vadd.f32 %v1500_v59, %v1438_v57  ;;  %v1456_v59 = vmul.f32 %v2935_v47, %v2935_v47 }
 0x20b   :  { %v1369_v20 = vadd.f32 %v1368_v5, %v2650_v9  ;;  %v1502_v19 = vadd.f32 %v1501_v46, %v1439_v10  ;;  %v1457_v46 = vmul.f32 %v2948_v32, %v2948_v32 }
 0x20c   :  { %v1198_v55 = vpop.f32.mrf.mxu3 }
 0x20d   :  { %v1370_v34 = vadd.f32 %v1369_v20, %v2661_v31  ;;  %v1503_v16 = vadd.f32 %v1502_v19, %v1440_v29  ;;  %v2109_v56 = vpack.c.bf16 %v1198_v55, %v2995_v42  ;;  %v1444_v31 = vmul.f32 %v2709_v40, %v2709_v40 }
 0x20e   :  { %v1458_v20 = vmul.f32 %v2958_v22, %v2958_v22 }
 0x20f   :  { %v1371_v45 = vadd.f32 %v1370_v34, %v2671_v50  ;;  %v1504_v1 = vadd.f32 %v1503_v16, %v1441_v33  ;;  %2172 = vst [vmem:[%s3080_s6 + $0xf8] sm:$0xff] %v2109_v56   ;;  %v1459_v33 = vmul.f32 %v2965_v8, %v2965_v8  ;;  %v1460_v16 = vmul.f32 %v2976_v48, %v2976_v48 }
 0x210   :  { %v1462_v56 = vmul.f32 %v1198_v55, %v1198_v55 }
 0x211   :  { %v1372_v9 = vadd.f32 %v1371_v45, %v2695_v44  ;;  %v1505_v7 = vadd.f32 %v1504_v1, %v1442_v3  ;;  %v1446_v44 = vmul.f32 %v2746_v24, %v2746_v24  ;;  %v1461_v45 = vmul.f32 %v2995_v42, %v2995_v42 }
 0x213   :  { %v1373_v27 = vadd.f32 %v1372_v9, %v2709_v40  ;;  %v1506_v50 = vadd.f32 %v1505_v7, %v1443_v54  ;;  %v1448_v40 = vmul.f32 %v2793_v30, %v2793_v30 }
 0x215   :  { %v1507_v49 = vadd.f32 %v1506_v50, %v1444_v31  ;;  %v1374_v21 = vadd.f32 %v1373_v27, %v2724_v39  ;;  %v1449_v39 = vmul.f32 %v2828_v62, %v2828_v62 }
 0x217   :  { %v1375_v36 = vadd.f32 %v1374_v21, %v2746_v24  ;;  %v1508_v15 = vadd.f32 %v1507_v49, %v1445_v6  ;;  %v1450_v24 = vmul.f32 %v2853_v52, %v2853_v52 }
 0x219   :  { %v1376_v37 = vadd.f32 %v1375_v36, %v2767_v23  ;;  %v1509_v12 = vadd.f32 %v1508_v15, %v1446_v44  ;;  %v1451_v23 = vmul.f32 %v2874_v17, %v2874_v17 }
 0x21b   :  { %v1377_v53 = vadd.f32 %v1376_v37, %v2793_v30  ;;  %v1510_v35 = vadd.f32 %v1509_v12, %v1447_v11  ;;  %v1452_v30 = vmul.f32 %v2895_v61, %v2895_v61 }
 0x21d   :  { %v1378_v14 = vadd.f32 %v1377_v53, %v2828_v62  ;;  %v1511_v58 = vadd.f32 %v1510_v35, %v1448_v40  ;;  %v1453_v62 = vmul.f32 %v2912_v28, %v2912_v28 }
 0x21f   :  { %v1379_v0 = vadd.f32 %v1378_v14, %v2853_v52  ;;  %v1512_v43 = vadd.f32 %v1511_v58, %v1449_v39  ;;  %v1454_v52 = vmul.f32 %v2917_v60, %v2917_v60 }
 0x221   :  { %v1380_v25 = vadd.f32 %v1379_v0, %v2874_v17  ;;  %v1513_v4 = vadd.f32 %v1512_v43, %v1450_v24  ;;  %v1455_v17 = vmul.f32 %v2930_v63, %v2930_v63 }
 0x223   :  { %v1381_v26 = vadd.f32 %v1380_v25, %v2895_v61  ;;  %v1514_v41 = vadd.f32 %v1513_v4, %v1451_v23 }
 0x225   :  { %v1382_v2 = vadd.f32 %v1381_v26, %v2912_v28  ;;  %v1515_v13 = vadd.f32 %v1514_v41, %v1452_v30 }
 0x227   :  { %v1383_v18 = vadd.f32 %v1382_v2, %v2917_v60  ;;  %v1516_v38 = vadd.f32 %v1515_v13, %v1453_v62 }
 0x229   :  { %v1384_v57 = vadd.f32 %v1383_v18, %v2930_v63  ;;  %v1517_v51 = vadd.f32 %v1516_v38, %v1454_v52 }
 0x22b   :  { %v1385_v61 = vadd.f32 %v1384_v57, %v2935_v47  ;;  %v1518_v10 = vadd.f32 %v1517_v51, %v1455_v17 }
 0x22d   :  { %v1519_v28 = vadd.f32 %v1518_v10, %v1456_v59  ;;  %v1386_v5 = vadd.f32 %v1385_v61, %v2948_v32 }
 0x22f   :  { %v1520_v60 = vadd.f32 %v1519_v28, %v1457_v46  ;;  %v1387_v29 = vadd.f32 %v1386_v5, %v2958_v22 }
 0x231   :  { %v1521_v63 = vadd.f32 %v1520_v60, %v1458_v20  ;;  %v1388_v19 = vadd.f32 %v1387_v29, %v2965_v8 }
 0x233   :  { %v1522_v47 = vadd.f32 %v1521_v63, %v1459_v33  ;;  %v1389_v34 = vadd.f32 %v1388_v19, %v2976_v48 }
 0x235   :  { %v1523_v3 = vadd.f32 %v1522_v47, %v1460_v16  ;;  %v1390_v32 = vadd.f32 %v1389_v34, %v2995_v42 }
 0x237   :  { %v1524_v1 = vadd.f32 %v1523_v3, %v1461_v45  ;;  %v1391_v22 = vadd.f32 %v1390_v32, %v1198_v55 }
 0x239   :  { %v1392_v54 = vrot.slane %v1391_v22, 4  ;;  %v1525_v9 = vadd.f32 %v1524_v1, %v1462_v56 }
 0x23b   :  { %v1393_v7 = vadd.f32 %v1392_v54, %v1391_v22  ;;  %v1526_v31 = vrot.slane %v1525_v9, 4 }
 0x23d   :  { %v1394_v8 = vrot.slane %v1393_v7, 2  ;;  %v1527_v27 = vadd.f32 %v1526_v31, %v1525_v9 }
 0x23f   :  { %v1395_v50 = vadd.f32 %v1394_v8, %v1393_v7  ;;  %v1528_v6 = vrot.slane %v1527_v27, 2 }
 0x241   :  { %v1396_v49 = vrot.slane %v1395_v50, 1  ;;  %v1529_v21 = vadd.f32 %v1528_v6, %v1527_v27 }
 0x243   :  { %v1397_v48 = vadd.f32 %v1396_v49, %v1395_v50  ;;  %v1530_v44 = vrot.slane %v1529_v21, 1 }
 0x245   :  { %1398 = vst [vmem:[%s3083_s7] sm:$0x1] %v1397_v48  ;;  %v1531_v42 = vadd.f32 %v1530_v44, %v1529_v21 }
 0x247   :  { %1532 = vst [vmem:[%s3084_s8] sm:$0x1] %v1531_v42 }

// kernel: basic_block_forward.6
= control target key start
LH: loop header
LB: loop body
LE: loop exit
PB: predicated region body
PF: predicated region fallthrough
CT: control target
= control target key end

     0   :  { %vm372_vm0 = vcmask 1043456   ;;  %vm275_vm1 = vcmask 588800   ;;  %s1865_s1 = inlined_call_operand.vmem [shape: bf16[72,128], index: 1, kind: input, shape index: {}]   ;;  %s1866_s0 = inlined_call_operand.vmem [shape: bf16[512,72], index: 0, kind: input, shape index: {}]   ;;  %s1867_s2 = inlined_call_operand.vmem [shape: bf16[512,128], index: 2, kind: output, shape index: {0}]   ;;  %s1868_s3 = inlined_call_operand.vmem [shape: f32[1,1,128], index: 3, kind: output, shape index: {1}]   ;;  %s1869_s4 = inlined_call_operand.vmem [shape: f32[1,1,128], index: 4, kind: output, shape index: {2}]  }
   0x1   :  { %v87_v0 = vld [vmem:[%s1865_s1 + $0x20] sm:$0xf]  ;;  %v1100_v4 = vld [vmem:[%s1865_s1 + $0x18] sm:$0xff]  ;;  %v1099_v5 = vld [vmem:[%s1865_s1 + $0x10] sm:$0xff] }
   0x2   :  { %v265_v1 = vunpack.c.l.b16 %v87_v0  ;;  %v1098_v6 = vld [vmem:[%s1865_s1 + $0x8] sm:$0xff]  ;;  %v1097_v7 = vld [vmem:[%s1865_s1] sm:$0xff]  ;;  %v1067_v13 = vld [vmem:[%s1866_s0 + $0x10] sm:$0xff] }
   0x3   :  { %v1065_v8 = vld [vmem:[%s1866_s0] sm:$0xff]  ;;  %v1066_v10 = vld [vmem:[%s1866_s0 + $0x8] sm:$0xff]  ;;  %v1075_v14 = vld [vmem:[%s1866_s0 + $0x50] sm:$0xff] }
   0x4   :  { %v270_v2 = vpack.c.b16 %v265_v1, %v265_v1  ;;  %v1073_v9 = vld [vmem:[%s1866_s0 + $0x40] sm:$0xff]  ;;  %v1074_v11 = vld [vmem:[%s1866_s0 + $0x48] sm:$0xff]  ;;  %v1068_v16 = vld [vmem:[%s1866_s0 + $0x18] sm:$0xff] }
   0x5   :  { %v1081_v12 = vld [vmem:[%s1866_s0 + $0x80] sm:$0xff]  ;;  %v1082_v15 = vld [vmem:[%s1866_s0 + $0x88] sm:$0xff]  ;;  %v1076_v17 = vld [vmem:[%s1866_s0 + $0x58] sm:$0xff] }
   0x6   :  { %v374_v3 = vsel %vm372_vm0, %v270_v2, 0  ;;  %v1083_v18 = vld [vmem:[%s1866_s0 + $0x90] sm:$0xff]  ;;  %v1089_v19 = vld [vmem:[%s1866_s0 + $0xc0] sm:$0xff]  ;;  %v1084_v22 = vld [vmem:[%s1866_s0 + $0x98] sm:$0xff] }
   0x7   :  { %379 = vmatpush.bf16.msra.mxu0 %v374_v3  ;;  %1292 = vmatpush.bf16.msra.mxu1 %v374_v3  ;;  %v1069_v20 = vld [vmem:[%s1866_s0 + $0x20] sm:$0xff]  ;;  %v1090_v23 = vld [vmem:[%s1866_s0 + $0xc8] sm:$0xff]  ;;  %v1091_v27 = vld [vmem:[%s1866_s0 + $0xd0] sm:$0xff] }
   0x8   :  { %1293 = vmatpush.bf16.msra.mxu2 %v374_v3  ;;  %1294 = vmatpush.bf16.msra.mxu3 %v374_v3  ;;  %v1077_v21 = vld [vmem:[%s1866_s0 + $0x60] sm:$0xff]  ;;  %v1070_v24 = vld [vmem:[%s1866_s0 + $0x28] sm:$0xff]  ;;  %v1071_v28 = vld [vmem:[%s1866_s0 + $0x30] sm:$0xff] }
   0x9   :  { %v1078_v25 = vld [vmem:[%s1866_s0 + $0x68] sm:$0xff]  ;;  %v1085_v26 = vld [vmem:[%s1866_s0 + $0xa0] sm:$0xff]  ;;  %v1079_v29 = vld [vmem:[%s1866_s0 + $0x70] sm:$0xff] }
   0xa   :  { %v1086_v30 = vld [vmem:[%s1866_s0 + $0xa8] sm:$0xff]  ;;  %v1092_v31 = vld [vmem:[%s1866_s0 + $0xd8] sm:$0xff]  ;;  %v1087_v34 = vld [vmem:[%s1866_s0 + $0xb0] sm:$0xff] }
   0xb   :  { %380 = vmatpush.bf16.msra.mxu0 %v1100_v4  ;;  %1295 = vmatpush.bf16.msra.mxu1 %v1100_v4  ;;  %v1072_v32 = vld [vmem:[%s1866_s0 + $0x38] sm:$0xff]  ;;  %v1093_v35 = vld [vmem:[%s1866_s0 + $0xe0] sm:$0xff]  ;;  %v1094_v39 = vld [vmem:[%s1866_s0 + $0xe8] sm:$0xff] }
   0xc   :  { %1296 = vmatpush.bf16.msra.mxu2 %v1100_v4  ;;  %1297 = vmatpush.bf16.msra.mxu3 %v1100_v4  ;;  %v1080_v33 = vld [vmem:[%s1866_s0 + $0x78] sm:$0xff]  ;;  %v1095_v53 = vld [vmem:[%s1866_s0 + $0xf0] sm:$0xff] }
   0xd   :  { %v1088_v38 = vld [vmem:[%s1866_s0 + $0xb8] sm:$0xff] }
   0xf   :  { %381 = vmatpush.bf16.msra.mxu0 %v1099_v5  ;;  %1298 = vmatpush.bf16.msra.mxu1 %v1099_v5 }
  0x10   :  { %1299 = vmatpush.bf16.msra.mxu2 %v1099_v5  ;;  %1300 = vmatpush.bf16.msra.mxu3 %v1099_v5  ;;  %v1096_v5 = vld [vmem:[%s1866_s0 + $0xf8] sm:$0xff] }
  0x13   :  { %382 = vmatpush.bf16.msra.mxu0 %v1098_v6  ;;  %1301 = vmatpush.bf16.msra.mxu1 %v1098_v6 }
  0x14   :  { %1302 = vmatpush.bf16.msra.mxu2 %v1098_v6  ;;  %1303 = vmatpush.bf16.msra.mxu3 %v1098_v6 }
  0x17   :  { %383 = vmatpush.bf16.msra.mxu0 %v1097_v7  ;;  %1304 = vmatpush.bf16.msra.mxu1 %v1097_v7 }
  0x18   :  { %1305 = vmatpush.bf16.msra.mxu2 %v1097_v7  ;;  %1306 = vmatpush.bf16.msra.mxu3 %v1097_v7 }
  0x1a   :  { %1033 = vmatmul.msk.bf16.vlgmr.msra.gmra.mxu0 %vm275_vm1, %v1065_v8  ;;  %1041 = vmatmul.msk.bf16.vlgmr.msra.gmra.mxu1 %vm275_vm1, %v1073_v9 }
  0x1b   :  { %1049 = vmatmul.msk.bf16.vlgmr.msra.gmra.mxu2 %vm275_vm1, %v1081_v12  ;;  %1057 = vmatmul.msk.bf16.vlgmr.msra.gmra.mxu3 %vm275_vm1, %v1089_v19 }
  0x2a   :  { %1034 = vmatmul.msk.bf16.gmra.mxu0 %vm275_vm1, %v1066_v10  ;;  %1042 = vmatmul.msk.bf16.gmra.mxu1 %vm275_vm1, %v1074_v11 }
  0x2b   :  { %1050 = vmatmul.msk.bf16.gmra.mxu2 %vm275_vm1, %v1082_v15  ;;  %1058 = vmatmul.msk.bf16.gmra.mxu3 %vm275_vm1, %v1090_v23 }
  0x3a   :  { %1035 = vmatmul.msk.bf16.gmra.mxu0 %vm275_vm1, %v1067_v13  ;;  %1043 = vmatmul.msk.bf16.gmra.mxu1 %vm275_vm1, %v1075_v14 }
  0x3b   :  { %1051 = vmatmul.msk.bf16.gmra.mxu2 %vm275_vm1, %v1083_v18  ;;  %1059 = vmatmul.msk.bf16.gmra.mxu3 %vm275_vm1, %v1091_v27 }
  0x4a   :  { %1036 = vmatmul.msk.bf16.gmra.mxu0 %vm275_vm1, %v1068_v16  ;;  %1044 = vmatmul.msk.bf16.gmra.mxu1 %vm275_vm1, %v1076_v17 }
  0x4b   :  { %1052 = vmatmul.msk.bf16.gmra.mxu2 %vm275_vm1, %v1084_v22  ;;  %1060 = vmatmul.msk.bf16.gmra.mxu3 %vm275_vm1, %v1092_v31 }
  0x5a   :  { %1037 = vmatmul.msk.bf16.gmra.mxu0 %vm275_vm1, %v1069_v20  ;;  %1045 = vmatmul.msk.bf16.gmra.mxu1 %vm275_vm1, %v1077_v21 }
  0x5b   :  { %1053 = vmatmul.msk.bf16.gmra.mxu2 %vm275_vm1, %v1085_v26  ;;  %1061 = vmatmul.msk.bf16.gmra.mxu3 %vm275_vm1, %v1093_v35 }
  0x6a   :  { %1038 = vmatmul.msk.bf16.gmra.mxu0 %vm275_vm1, %v1070_v24  ;;  %1046 = vmatmul.msk.bf16.gmra.mxu1 %vm275_vm1, %v1078_v25 }
  0x6b   :  { %1054 = vmatmul.msk.bf16.gmra.mxu2 %vm275_vm1, %v1086_v30  ;;  %1062 = vmatmul.msk.bf16.gmra.mxu3 %vm275_vm1, %v1094_v39 }
  0x7a   :  { %1039 = vmatmul.msk.bf16.gmra.mxu0 %vm275_vm1, %v1071_v28  ;;  %1047 = vmatmul.msk.bf16.gmra.mxu1 %vm275_vm1, %v1079_v29 }
  0x7b   :  { %1055 = vmatmul.msk.bf16.gmra.mxu2 %vm275_vm1, %v1087_v34  ;;  %1063 = vmatmul.msk.bf16.gmra.mxu3 %vm275_vm1, %v1095_v53 }
  0x8a   :  { %1040 = vmatmul.msk.bf16.gmra.mxu0 %vm275_vm1, %v1072_v32  ;;  %1048 = vmatmul.msk.bf16.gmra.mxu1 %vm275_vm1, %v1080_v33 }
  0x8b   :  { %1056 = vmatmul.msk.bf16.gmra.mxu2 %vm275_vm1, %v1088_v38  ;;  %1064 = vmatmul.msk.bf16.gmra.mxu3 %vm275_vm1, %v1096_v5 }
  0x97   :  { %v385_v36 = vpop.f32.mrf.mxu0  ;;  %v1459_v37 = vpop.f32.mrf.mxu1 }
  0x98   :  { %v743_v40 = vmul.f32 %v385_v36, %v385_v36 }
  0x9e   :  { %v1489_v60 = vpop.f32.mrf.mxu2  ;;  %v1541_v20 = vpop.f32.mrf.mxu3 }
  0x9f   :  { %v387_v41 = vpop.f32.mrf.mxu0  ;;  %v1469_v42 = vpop.f32.mrf.mxu1 }
  0xa0   :  { %v1104_v43 = vpack.c.bf16 %v387_v41, %v385_v36  ;;  %v673_v44 = vadd.f32 %v387_v41, %v385_v36  ;;  %v744_v45 = vmul.f32 %v387_v41, %v387_v41  ;;  %v1144_v46 = vpack.c.bf16 %v1469_v42, %v1459_v37 }
  0xa2   :  { %1105 = vst [vmem:[%s1867_s2] sm:$0xff] %v1104_v43   ;;  %v807_v47 = vadd.f32 %v744_v45, %v743_v40 }
  0xa3   :  { %1268 = vst [vmem:[%s1867_s2 + $0x40] sm:$0xff] %v1144_v46  }
  0xa6   :  { %v1501_v2 = vpop.f32.mrf.mxu2  ;;  %v1553_v24 = vpop.f32.mrf.mxu3 }
  0xa7   :  { %v390_v48 = vpop.f32.mrf.mxu0  ;;  %v1479_v49 = vpop.f32.mrf.mxu1  ;;  %v1184_v3 = vpack.c.bf16 %v1501_v2, %v1489_v60  ;;  %v1224_v26 = vpack.c.bf16 %v1553_v24, %v1541_v20 }
  0xa8   :  { %v674_v50 = vadd.f32 %v673_v44, %v390_v48  ;;  %v745_v51 = vmul.f32 %v390_v48, %v390_v48 }
  0xa9   :  { %1276 = vst [vmem:[%s1867_s2 + $0x80] sm:$0xff] %v1184_v3  }
  0xaa   :  { %v808_v52 = vadd.f32 %v807_v47, %v745_v51  ;;  %1284 = vst [vmem:[%s1867_s2 + $0xc0] sm:$0xff] %v1224_v26  }
  0xae   :  { %v1518_v10 = vpop.f32.mrf.mxu2  ;;  %v1571_v32 = vpop.f32.mrf.mxu3 }
  0xaf   :  { %v392_v54 = vpop.f32.mrf.mxu0  ;;  %v1485_v55 = vpop.f32.mrf.mxu1 }
  0xb0   :  { %v1109_v56 = vpack.c.bf16 %v392_v54, %v390_v48  ;;  %v675_v57 = vadd.f32 %v674_v50, %v392_v54  ;;  %v746_v58 = vmul.f32 %v392_v54, %v392_v54  ;;  %v1149_v59 = vpack.c.bf16 %v1485_v55, %v1479_v49 }
  0xb2   :  { %1261 = vst [vmem:[%s1867_s2 + $0x8] sm:$0xff] %v1109_v56   ;;  %v809_v61 = vadd.f32 %v808_v52, %v746_v58 }
  0xb3   :  { %1269 = vst [vmem:[%s1867_s2 + $0x48] sm:$0xff] %v1149_v59  }
  0xb6   :  { %v1528_v13 = vpop.f32.mrf.mxu2  ;;  %v1583_v36 = vpop.f32.mrf.mxu3 }
  0xb7   :  { %v395_v62 = vpop.f32.mrf.mxu0  ;;  %v1497_v63 = vpop.f32.mrf.mxu1  ;;  %v1189_v14 = vpack.c.bf16 %v1528_v13, %v1518_v10  ;;  %v1229_v39 = vpack.c.bf16 %v1583_v36, %v1571_v32 }
  0xb8   :  { %v1499_v0 = vadd.f32 %v675_v57, %v395_v62  ;;  %v747_v1 = vmul.f32 %v395_v62, %v395_v62 }
  0xb9   :  { %1277 = vst [vmem:[%s1867_s2 + $0x88] sm:$0xff] %v1189_v14  }
  0xba   :  { %v1505_v4 = vadd.f32 %v809_v61, %v747_v1  ;;  %1285 = vst [vmem:[%s1867_s2 + $0xc8] sm:$0xff] %v1229_v39  }
  0xbe   :  { %v1539_v19 = vpop.f32.mrf.mxu2  ;;  %v1601_v46 = vpop.f32.mrf.mxu3 }
  0xbf   :  { %v397_v6 = vpop.f32.mrf.mxu0  ;;  %v1514_v7 = vpop.f32.mrf.mxu1 }
  0xc0   :  { %v1114_v8 = vpack.c.bf16 %v397_v6, %v395_v62  ;;  %v1154_v9 = vpack.c.bf16 %v1514_v7, %v1497_v63  ;;  %v748_v52 = vmul.f32 %v397_v6, %v397_v6  ;;  %v677_v57 = vadd.f32 %v1499_v0, %v397_v6 }
  0xc2   :  { %1262 = vst [vmem:[%s1867_s2 + $0x10] sm:$0xff] %v1114_v8   ;;  %v811_v58 = vadd.f32 %v1505_v4, %v748_v52 }
  0xc3   :  { %1270 = vst [vmem:[%s1867_s2 + $0x50] sm:$0xff] %v1154_v9  }
  0xc6   :  { %v1551_v23 = vpop.f32.mrf.mxu2  ;;  %v1613_v51 = vpop.f32.mrf.mxu3 }
  0xc7   :  { %v400_v11 = vpop.f32.mrf.mxu0  ;;  %v1526_v12 = vpop.f32.mrf.mxu1  ;;  %v1194_v25 = vpack.c.bf16 %v1551_v23, %v1539_v19  ;;  %v1234_v54 = vpack.c.bf16 %v1613_v51, %v1601_v46 }
  0xc8   :  { %v749_v56 = vmul.f32 %v400_v11, %v400_v11  ;;  %v678_v61 = vadd.f32 %v677_v57, %v400_v11 }
  0xc9   :  { %1278 = vst [vmem:[%s1867_s2 + $0x90] sm:$0xff] %v1194_v25  }
  0xca   :  { %1286 = vst [vmem:[%s1867_s2 + $0xd0] sm:$0xff] %v1234_v54   ;;  %v812_v62 = vadd.f32 %v811_v58, %v749_v56 }
  0xce   :  { %v1569_v31 = vpop.f32.mrf.mxu2  ;;  %v1633_v0 = vpop.f32.mrf.mxu3 }
  0xcf   :  { %v402_v15 = vpop.f32.mrf.mxu0  ;;  %v1535_v16 = vpop.f32.mrf.mxu1 }
  0xd0   :  { %v1119_v17 = vpack.c.bf16 %v402_v15, %v400_v11  ;;  %v1159_v18 = vpack.c.bf16 %v1535_v16, %v1526_v12  ;;  %v750_v59 = vmul.f32 %v402_v15, %v402_v15  ;;  %v679_v8 = vadd.f32 %v678_v61, %v402_v15 }
  0xd2   :  { %1263 = vst [vmem:[%s1867_s2 + $0x18] sm:$0xff] %v1119_v17   ;;  %v813_v6 = vadd.f32 %v812_v62, %v750_v59 }
  0xd3   :  { %1271 = vst [vmem:[%s1867_s2 + $0x58] sm:$0xff] %v1159_v18  }
  0xd6   :  { %v1581_v35 = vpop.f32.mrf.mxu2 }
  0xd7   :  { %v405_v21 = vpop.f32.mrf.mxu0  ;;  %v1549_v22 = vpop.f32.mrf.mxu1  ;;  %v1199_v38 = vpack.c.bf16 %v1581_v35, %v1569_v31 }
  0xd8   :  { %v751_v1 = vmul.f32 %v405_v21, %v405_v21  ;;  %v680_v25 = vadd.f32 %v679_v8, %v405_v21 }
  0xd9   :  { %1279 = vst [vmem:[%s1867_s2 + $0x98] sm:$0xff] %v1199_v38  }
  0xda   :  { %v814_v4 = vadd.f32 %v813_v6, %v751_v1 }
  0xde   :  { %v1599_v45 = vpop.f32.mrf.mxu2 }
  0xdf   :  { %v407_v27 = vpop.f32.mrf.mxu0  ;;  %v1565_v28 = vpop.f32.mrf.mxu1 }
  0xe0   :  { %v1124_v29 = vpack.c.bf16 %v407_v27, %v405_v21  ;;  %v1164_v30 = vpack.c.bf16 %v1565_v28, %v1549_v22  ;;  %v752_v18 = vmul.f32 %v407_v27, %v407_v27  ;;  %v681_v15 = vadd.f32 %v680_v25, %v407_v27 }
  0xe2   :  { %1264 = vst [vmem:[%s1867_s2 + $0x20] sm:$0xff] %v1124_v29   ;;  %v815_v26 = vadd.f32 %v814_v4, %v752_v18 }
  0xe3   :  { %1272 = vst [vmem:[%s1867_s2 + $0x60] sm:$0xff] %v1164_v30  }
  0xe6   :  { %v1611_v50 = vpop.f32.mrf.mxu2 }
  0xe7   :  { %v410_v33 = vpop.f32.mrf.mxu0  ;;  %v1579_v34 = vpop.f32.mrf.mxu1  ;;  %v1204_v53 = vpack.c.bf16 %v1611_v50, %v1599_v45 }
  0xe8   :  { %v753_v11 = vmul.f32 %v410_v33, %v410_v33  ;;  %v682_v30 = vadd.f32 %v681_v15, %v410_v33 }
  0xe9   :  { %1280 = vst [vmem:[%s1867_s2 + $0xa0] sm:$0xff] %v1204_v53   ;;  %v1645_v53 = vpop.f32.mrf.mxu3 }
  0xea   :  { %v816_v38 = vadd.f32 %v815_v26, %v753_v11  ;;  %v1239_v27 = vpack.c.bf16 %v1645_v53, %v1633_v0  ;;  %v760_v26 = vmul.f32 %v1469_v42, %v1469_v42 }
  0xec   :  { %1287 = vst [vmem:[%s1867_s2 + $0xd8] sm:$0xff] %v1239_v27  }
  0xee   :  { %v1631_v17 = vpop.f32.mrf.mxu2 }
  0xef   :  { %v412_v40 = vpop.f32.mrf.mxu0  ;;  %v1595_v41 = vpop.f32.mrf.mxu1 }
  0xf0   :  { %v1129_v43 = vpack.c.bf16 %v412_v40, %v410_v33  ;;  %v1169_v44 = vpack.c.bf16 %v1595_v41, %v1579_v34  ;;  %v754_v29 = vmul.f32 %v412_v40, %v412_v40  ;;  %v683_v21 = vadd.f32 %v682_v30, %v412_v40 }
  0xf1   :  { %v1663_v4 = vpop.f32.mrf.mxu3 }
  0xf2   :  { %1265 = vst [vmem:[%s1867_s2 + $0x28] sm:$0xff] %v1129_v43   ;;  %v817_v54 = vadd.f32 %v816_v38, %v754_v29  ;;  %v761_v38 = vmul.f32 %v1479_v49, %v1479_v49 }
  0xf3   :  { %1273 = vst [vmem:[%s1867_s2 + $0x68] sm:$0xff] %v1169_v44  }
  0xf6   :  { %v1643_v52 = vpop.f32.mrf.mxu2 }
  0xf7   :  { %v415_v47 = vpop.f32.mrf.mxu0  ;;  %v1609_v48 = vpop.f32.mrf.mxu1  ;;  %v1209_v57 = vpack.c.bf16 %v1643_v52, %v1631_v17 }
  0xf8   :  { %v755_v39 = vmul.f32 %v415_v47, %v415_v47  ;;  %v684_v58 = vadd.f32 %v683_v21, %v415_v47 }
  0xf9   :  { %1281 = vst [vmem:[%s1867_s2 + $0xa8] sm:$0xff] %v1209_v57   ;;  %v1685_v57 = vpop.f32.mrf.mxu3 }
  0xfa   :  { %v818_v33 = vadd.f32 %v817_v54, %v755_v39  ;;  %v1244_v27 = vpack.c.bf16 %v1685_v57, %v1663_v4 }
  0xfc   :  { %1288 = vst [vmem:[%s1867_s2 + $0xe0] sm:$0xff] %v1244_v27  }
  0xfe   :  { %v1661_v25 = vpop.f32.mrf.mxu2 }
  0xff   :  { %v417_v3 = vpop.f32.mrf.mxu0  ;;  %v1627_v5 = vpop.f32.mrf.mxu1 }
 0x100   :  { %v1134_v9 = vpack.c.bf16 %v417_v3, %v415_v47  ;;  %v1174_v14 = vpack.c.bf16 %v1627_v5, %v1609_v48  ;;  %v756_v56 = vmul.f32 %v417_v3, %v417_v3  ;;  %v685_v40 = vadd.f32 %v684_v58, %v417_v3 }
 0x101   :  { %v759_v3 = vmul.f32 %v1459_v37, %v1459_v37  ;;  %v772_v27 = vmul.f32 %v1627_v5, %v1627_v5 }
 0x102   :  { %1266 = vst [vmem:[%s1867_s2 + $0x30] sm:$0xff] %v1134_v9   ;;  %v819_v61 = vadd.f32 %v818_v33, %v756_v56 }
 0x103   :  { %1274 = vst [vmem:[%s1867_s2 + $0x70] sm:$0xff] %v1174_v14  }
 0x106   :  { %v1683_v56 = vpop.f32.mrf.mxu2 }
 0x107   :  { %v420_v43 = vpop.f32.mrf.mxu0  ;;  %v1641_v44 = vpop.f32.mrf.mxu1 }
 0x108   :  { %v757_v59 = vmul.f32 %v420_v43, %v420_v43  ;;  %v686_v62 = vadd.f32 %v685_v40, %v420_v43 }
 0x10a   :  { %v820_v1 = vadd.f32 %v819_v61, %v757_v59  ;;  %v765_v61 = vmul.f32 %v1526_v12, %v1526_v12 }
 0x10f   :  { %v422_v8 = vpop.f32.mrf.mxu0  ;;  %v1657_v9 = vpop.f32.mrf.mxu1 }
 0x110   :  { %v1139_v14 = vpack.c.bf16 %v422_v8, %v420_v43  ;;  %v687_v6 = vadd.f32 %v686_v62, %v422_v8  ;;  %v758_v47 = vmul.f32 %v422_v8, %v422_v8  ;;  %v1179_v18 = vpack.c.bf16 %v1657_v9, %v1641_v44 }
 0x112   :  { %1267 = vst [vmem:[%s1867_s2 + $0x38] sm:$0xff] %v1139_v14   ;;  %v688_v11 = vadd.f32 %v687_v6, %v1459_v37  ;;  %v821_v15 = vadd.f32 %v820_v1, %v758_v47  ;;  %v762_v37 = vmul.f32 %v1485_v55, %v1485_v55  ;;  %v766_v1 = vmul.f32 %v1535_v16, %v1535_v16  ;;  %v1709_v6 = vpop.f32.mrf.mxu2 }
 0x113   :  { %1275 = vst [vmem:[%s1867_s2 + $0x78] sm:$0xff] %v1179_v18   ;;  %v767_v47 = vmul.f32 %v1549_v22, %v1549_v22 }
 0x114   :  { %v689_v29 = vadd.f32 %v688_v11, %v1469_v42  ;;  %v822_v30 = vadd.f32 %v821_v15, %v759_v3  ;;  %v1214_v42 = vpack.c.bf16 %v1683_v56, %v1661_v25  ;;  %v768_v11 = vmul.f32 %v1565_v28, %v1565_v28 }
 0x116   :  { %v690_v39 = vadd.f32 %v689_v29, %v1479_v49  ;;  %v823_v43 = vadd.f32 %v822_v30, %v760_v26  ;;  %v763_v49 = vmul.f32 %v1497_v63, %v1497_v63  ;;  %1282 = vst [vmem:[%s1867_s2 + $0xb0] sm:$0xff] %v1214_v42   ;;  %v770_v30 = vmul.f32 %v1595_v41, %v1595_v41 }
 0x118   :  { %v691_v21 = vadd.f32 %v690_v39, %v1485_v55  ;;  %v824_v54 = vadd.f32 %v823_v43, %v761_v38  ;;  %v764_v55 = vmul.f32 %v1514_v7, %v1514_v7 }
 0x11a   :  { %v692_v58 = vadd.f32 %v691_v21, %v1497_v63  ;;  %v825_v33 = vadd.f32 %v824_v54, %v762_v37 }
 0x11c   :  { %v693_v59 = vadd.f32 %v692_v58, %v1514_v7  ;;  %v826_v40 = vadd.f32 %v825_v33, %v763_v49  ;;  %v1711_v7 = vpop.f32.mrf.mxu3 }
 0x11e   :  { %v827_v62 = vadd.f32 %v826_v40, %v764_v55  ;;  %v694_v63 = vadd.f32 %v693_v59, %v1526_v12  ;;  %v774_v59 = vmul.f32 %v1657_v9, %v1657_v9 }
 0x120   :  { %v695_v8 = vadd.f32 %v694_v63, %v1535_v16  ;;  %v828_v14 = vadd.f32 %v827_v62, %v765_v61  ;;  %v769_v16 = vmul.f32 %v1579_v34, %v1579_v34  ;;  %v776_v63 = vmul.f32 %v1501_v2, %v1501_v2 }
 0x122   :  { %v696_v18 = vadd.f32 %v695_v8, %v1549_v22  ;;  %v829_v3 = vadd.f32 %v828_v14, %v766_v1  ;;  %v1725_v22 = vpop.f32.mrf.mxu2  ;;  %v777_v8 = vmul.f32 %v1518_v10, %v1518_v10 }
 0x124   :  { %v697_v12 = vadd.f32 %v696_v18, %v1565_v28  ;;  %v830_v15 = vadd.f32 %v829_v3, %v767_v47  ;;  %v1727_v43 = vpop.f32.mrf.mxu3  ;;  %v1219_v28 = vpack.c.bf16 %v1725_v22, %v1709_v6  ;;  %v778_v47 = vmul.f32 %v1528_v13, %v1528_v13 }
 0x125   :  { %v1249_v37 = vpack.c.bf16 %v1727_v43, %v1711_v7 }
 0x126   :  { %v698_v26 = vadd.f32 %v697_v12, %v1579_v34  ;;  %v831_v29 = vadd.f32 %v830_v15, %v768_v11  ;;  %v771_v34 = vmul.f32 %v1609_v48, %v1609_v48  ;;  %1283 = vst [vmem:[%s1867_s2 + $0xb8] sm:$0xff] %v1219_v28  }
 0x127   :  { %1289 = vst [vmem:[%s1867_s2 + $0xe8] sm:$0xff] %v1249_v37   ;;  %v783_v37 = vmul.f32 %v1599_v45, %v1599_v45 }
 0x128   :  { %v699_v38 = vadd.f32 %v698_v26, %v1595_v41  ;;  %v832_v39 = vadd.f32 %v831_v29, %v769_v16  ;;  %v781_v26 = vmul.f32 %v1569_v31, %v1569_v31 }
 0x12a   :  { %v700_v21 = vadd.f32 %v699_v38, %v1609_v48  ;;  %v833_v54 = vadd.f32 %v832_v39, %v770_v30  ;;  %v773_v48 = vmul.f32 %v1641_v44, %v1641_v44 }
 0x12c   :  { %v834_v41 = vadd.f32 %v833_v54, %v771_v34  ;;  %v701_v42 = vadd.f32 %v700_v21, %v1627_v5  ;;  %v1751_v40 = vpop.f32.mrf.mxu3  ;;  %v775_v5 = vmul.f32 %v1489_v60, %v1489_v60  ;;  %v784_v34 = vmul.f32 %v1611_v50, %v1611_v50 }
 0x12e   :  { %v835_v49 = vadd.f32 %v834_v41, %v772_v27  ;;  %v702_v58 = vadd.f32 %v701_v42, %v1641_v44  ;;  %v785_v41 = vmul.f32 %v1631_v17, %v1631_v17 }
 0x130   :  { %v836_v33 = vadd.f32 %v835_v49, %v773_v48  ;;  %v703_v55 = vadd.f32 %v702_v58, %v1657_v9  ;;  %v786_v49 = vmul.f32 %v1643_v52, %v1643_v52 }
 0x132   :  { %v704_v61 = vadd.f32 %v703_v55, %v1489_v60  ;;  %v837_v62 = vadd.f32 %v836_v33, %v774_v59 }
 0x134   :  { %v705_v1 = vadd.f32 %v704_v61, %v1501_v2  ;;  %v838_v44 = vadd.f32 %v837_v62, %v775_v5  ;;  %v1765_v60 = vpop.f32.mrf.mxu3  ;;  %v779_v2 = vmul.f32 %v1539_v19, %v1539_v19  ;;  %v789_v62 = vmul.f32 %v1709_v6, %v1709_v6 }
 0x135   :  { %v1254_v11 = vpack.c.bf16 %v1765_v60, %v1751_v40 }
 0x136   :  { %v706_v14 = vadd.f32 %v705_v1, %v1518_v10  ;;  %v839_v9 = vadd.f32 %v838_v44, %v776_v63  ;;  %v780_v10 = vmul.f32 %v1551_v23, %v1551_v23  ;;  %v791_v44 = vmul.f32 %v1541_v20, %v1541_v20 }
 0x137   :  { %1290 = vst [vmem:[%s1867_s2 + $0xf0] sm:$0xff] %v1254_v11  }
 0x138   :  { %v707_v18 = vadd.f32 %v706_v14, %v1528_v13  ;;  %v840_v3 = vadd.f32 %v839_v9, %v777_v8 }
 0x13a   :  { %v708_v12 = vadd.f32 %v707_v18, %v1539_v19  ;;  %v841_v15 = vadd.f32 %v840_v3, %v778_v47  ;;  %v782_v19 = vmul.f32 %v1581_v35, %v1581_v35 }
 0x13c   :  { %v709_v13 = vadd.f32 %v708_v12, %v1551_v23  ;;  %v842_v16 = vadd.f32 %v841_v15, %v779_v2  ;;  %v1784_v28 = vpop.f32.mrf.mxu3 }
 0x13e   :  { %v843_v29 = vadd.f32 %v842_v16, %v780_v10  ;;  %v710_v30 = vadd.f32 %v709_v13, %v1569_v31 }
 0x140   :  { %v711_v38 = vadd.f32 %v710_v30, %v1581_v35  ;;  %v844_v39 = vadd.f32 %v843_v29, %v781_v26 }
 0x142   :  { %v712_v23 = vadd.f32 %v711_v38, %v1599_v45  ;;  %v845_v21 = vadd.f32 %v844_v39, %v782_v19 }
 0x144   :  { %v713_v54 = vadd.f32 %v712_v23, %v1611_v50  ;;  %v846_v31 = vadd.f32 %v845_v21, %v783_v37  ;;  %v542_v45 = vpop.f32.mrf.mxu3  ;;  %v787_v50 = vmul.f32 %v1661_v25, %v1661_v25 }
 0x145   :  { %v1259_v48 = vpack.c.bf16 %v542_v45, %v1784_v28 }
 0x146   :  { %v714_v35 = vadd.f32 %v713_v54, %v1631_v17  ;;  %v847_v42 = vadd.f32 %v846_v31, %v784_v34  ;;  %v802_v34 = vmul.f32 %v1727_v43, %v1727_v43 }
 0x147   :  { %1291 = vst [vmem:[%s1867_s2 + $0xf8] sm:$0xff] %v1259_v48   ;;  %v806_v48 = vmul.f32 %v542_v45, %v542_v45 }
 0x148   :  { %v715_v27 = vadd.f32 %v714_v35, %v1643_v52  ;;  %v848_v58 = vadd.f32 %v847_v42, %v785_v41  ;;  %v788_v52 = vmul.f32 %v1683_v56, %v1683_v56  ;;  %v803_v41 = vmul.f32 %v1751_v40, %v1751_v40 }
 0x149   :  { %v804_v42 = vmul.f32 %v1765_v60, %v1765_v60 }
 0x14a   :  { %v849_v33 = vadd.f32 %v848_v58, %v786_v49  ;;  %v716_v55 = vadd.f32 %v715_v27, %v1661_v25  ;;  %v790_v25 = vmul.f32 %v1725_v22, %v1725_v22  ;;  %v805_v49 = vmul.f32 %v1784_v28, %v1784_v28 }
 0x14c   :  { %v850_v17 = vadd.f32 %v849_v33, %v787_v50  ;;  %v717_v59 = vadd.f32 %v716_v55, %v1683_v56  ;;  %v792_v56 = vmul.f32 %v1553_v24, %v1553_v24 }
 0x14e   :  { %v851_v5 = vadd.f32 %v850_v17, %v788_v52  ;;  %v718_v61 = vadd.f32 %v717_v59, %v1709_v6  ;;  %v793_v6 = vmul.f32 %v1571_v32, %v1571_v32 }
 0x150   :  { %v852_v63 = vadd.f32 %v851_v5, %v789_v62  ;;  %v719_v1 = vadd.f32 %v718_v61, %v1725_v22  ;;  %v794_v22 = vmul.f32 %v1583_v36, %v1583_v36 }
 0x152   :  { %v720_v8 = vadd.f32 %v719_v1, %v1541_v20  ;;  %v853_v14 = vadd.f32 %v852_v63, %v790_v25  ;;  %v795_v20 = vmul.f32 %v1601_v46, %v1601_v46 }
 0x154   :  { %v721_v9 = vadd.f32 %v720_v8, %v1553_v24  ;;  %v854_v47 = vadd.f32 %v853_v14, %v791_v44  ;;  %v796_v24 = vmul.f32 %v1613_v51, %v1613_v51 }
 0x156   :  { %v722_v18 = vadd.f32 %v721_v9, %v1571_v32  ;;  %v855_v3 = vadd.f32 %v854_v47, %v792_v56  ;;  %v797_v32 = vmul.f32 %v1633_v0, %v1633_v0 }
 0x158   :  { %v723_v11 = vadd.f32 %v722_v18, %v1583_v36  ;;  %v856_v2 = vadd.f32 %v855_v3, %v793_v6  ;;  %v798_v36 = vmul.f32 %v1645_v53, %v1645_v53 }
 0x15a   :  { %v724_v12 = vadd.f32 %v723_v11, %v1601_v46  ;;  %v857_v15 = vadd.f32 %v856_v2, %v794_v22  ;;  %v799_v46 = vmul.f32 %v1663_v4, %v1663_v4 }
 0x15c   :  { %v725_v10 = vadd.f32 %v724_v12, %v1613_v51  ;;  %v858_v13 = vadd.f32 %v857_v15, %v795_v20  ;;  %v800_v51 = vmul.f32 %v1685_v57, %v1685_v57 }
 0x15e   :  { %v859_v16 = vadd.f32 %v858_v13, %v796_v24  ;;  %v726_v26 = vadd.f32 %v725_v10, %v1633_v0  ;;  %v801_v0 = vmul.f32 %v1711_v7, %v1711_v7 }
 0x160   :  { %v727_v29 = vadd.f32 %v726_v26, %v1645_v53  ;;  %v860_v30 = vadd.f32 %v859_v16, %v797_v32 }
 0x162   :  { %v728_v19 = vadd.f32 %v727_v29, %v1663_v4  ;;  %v861_v38 = vadd.f32 %v860_v30, %v798_v36 }
 0x164   :  { %v729_v39 = vadd.f32 %v728_v19, %v1685_v57  ;;  %v862_v37 = vadd.f32 %v861_v38, %v799_v46 }
 0x166   :  { %v730_v23 = vadd.f32 %v729_v39, %v1711_v7  ;;  %v863_v21 = vadd.f32 %v862_v37, %v800_v51 }
 0x168   :  { %v731_v53 = vadd.f32 %v730_v23, %v1727_v43  ;;  %v864_v54 = vadd.f32 %v863_v21, %v801_v0 }
 0x16a   :  { %v865_v4 = vadd.f32 %v864_v54, %v802_v34  ;;  %v732_v31 = vadd.f32 %v731_v53, %v1751_v40 }
 0x16c   :  { %v866_v57 = vadd.f32 %v865_v4, %v803_v41  ;;  %v733_v35 = vadd.f32 %v732_v31, %v1765_v60 }
 0x16e   :  { %v867_v7 = vadd.f32 %v866_v57, %v804_v42  ;;  %v734_v27 = vadd.f32 %v733_v35, %v1784_v28 }
 0x170   :  { %v868_v43 = vadd.f32 %v867_v7, %v805_v49  ;;  %v735_v58 = vadd.f32 %v734_v27, %v542_v45 }
 0x172   :  { %v736_v33 = vrot.slane %v735_v58, 4  ;;  %v869_v55 = vadd.f32 %v868_v43, %v806_v48 }
 0x174   :  { %v737_v50 = vadd.f32 %v736_v33, %v735_v58  ;;  %v870_v17 = vrot.slane %v869_v55, 4 }
 0x176   :  { %v738_v40 = vrot.slane %v737_v50, 2  ;;  %v871_v59 = vadd.f32 %v870_v17, %v869_v55 }
 0x178   :  { %v739_v52 = vadd.f32 %v738_v40, %v737_v50  ;;  %v872_v5 = vrot.slane %v871_v59, 2 }
 0x17a   :  { %v740_v61 = vrot.slane %v739_v52, 1  ;;  %v873_v62 = vadd.f32 %v872_v5, %v871_v59 }
 0x17c   :  { %v741_v60 = vadd.f32 %v740_v61, %v739_v52  ;;  %v874_v63 = vrot.slane %v873_v62, 1 }
 0x17e   :  { %742 = vst [vmem:[%s1868_s3] sm:$0x1] %v741_v60  ;;  %v875_v28 = vadd.f32 %v874_v63, %v873_v62 }
 0x180   :  { %876 = vst [vmem:[%s1869_s4] sm:$0x1] %v875_v28 }

// kernel: basic_block_forward.7
= control target key start
LH: loop header
LB: loop body
LE: loop exit
PB: predicated region body
PF: predicated region fallthrough
CT: control target
= control target key end

     0   :  { %s1788_s0 = inlined_call_operand.vmem [shape: bf16[512,128], index: 0, kind: input, shape index: {}]   ;;  %s1789_s1 = inlined_call_operand.vmem [shape: f32[1,128], index: 1, kind: input, shape index: {}]   ;;  %s1790_s2 = inlined_call_operand.vmem [shape: f32[1,128], index: 2, kind: input, shape index: {}]   ;;  %s1791_s3 = inlined_call_operand.vmem [shape: bf16[512,128], index: 3, kind: input, shape index: {}]   ;;  %s1792_s4 = inlined_call_operand.vmem [shape: f32[1,128], index: 4, kind: input, shape index: {}]   ;;  %s1793_s5 = inlined_call_operand.vmem [shape: f32[1,128], index: 5, kind: input, shape index: {}]   ;;  %s1794_s6 = inlined_call_operand.vmem [shape: f32[512,128], index: 6, kind: output, shape index: {}]  }
   0x1   :  { %v748_v0 = vld [vmem:[%s1788_s0] sm:$0xff]   ;;  %v1003_v11 = vld [vmem:[%s1788_s0 + $0x8] sm:$0xff]   ;;  %v1004_v17 = vld [vmem:[%s1788_s0 + $0x10] sm:$0xff]  }
   0x2   :  { %v1114_v1 = vld [vmem:[%s1789_s1] ss:$0 sm:$0xff]  ;;  %v749_v2 = vunpack.c.l.bf16 %v748_v0  ;;  %v750_v5 = vunpack.c.h.bf16 %v748_v0  ;;  %v1034_v12 = vld [vmem:[%s1791_s3 + $0x8] sm:$0xff]   ;;  %v753_v15 = vunpack.c.l.bf16 %v1003_v11  ;;  %v1035_v18 = vld [vmem:[%s1791_s3 + $0x10] sm:$0xff]   ;;  %v754_v22 = vunpack.c.h.bf16 %v1003_v11 }
   0x3   :  { %v1119_v3 = vld [vmem:[%s1790_s2] ss:$0 sm:$0xff]  ;;  %v881_v16 = vunpack.c.l.bf16 %v1034_v12  ;;  %v882_v23 = vunpack.c.h.bf16 %v1034_v12  ;;  %v757_v26 = vunpack.c.l.bf16 %v1004_v17  ;;  %v885_v27 = vunpack.c.l.bf16 %v1035_v18  ;;  %v1005_v32 = vld [vmem:[%s1788_s0 + $0x18] sm:$0xff]  }
   0x4   :  { %v876_v4 = vld [vmem:[%s1791_s3] sm:$0xff]   ;;  %v155_v9 = vmul.f32 %v1114_v1, %v749_v2  ;;  %v156_v10 = vmul.f32 %v1114_v1, %v750_v5  ;;  %v157_v24 = vmul.f32 %v1114_v1, %v753_v15  ;;  %v158_v30 = vmul.f32 %v1114_v1, %v754_v22  ;;  %v1036_v45 = vld [vmem:[%s1791_s3 + $0x18] sm:$0xff]  }
   0x5   :  { %v877_v6 = vunpack.c.l.bf16 %v876_v4  ;;  %v1127_v7 = vld [vmem:[%s1792_s4] ss:$0 sm:$0xff]  ;;  %v878_v8 = vunpack.c.h.bf16 %v876_v4  ;;  %v159_v34 = vmul.f32 %v1114_v1, %v757_v26  ;;  %v758_v36 = vunpack.c.h.bf16 %v1004_v17 }
   0x6   :  { %v223_v19 = vadd.f32 %v1119_v3, %v155_v9  ;;  %v1149_v20 = vld [vmem:[%s1793_s5] ss:$0 sm:$0xff]  ;;  %v224_v21 = vadd.f32 %v1119_v3, %v156_v10  ;;  %v421_v25 = vmul.f32 %v1127_v7, %v881_v16  ;;  %v422_v31 = vmul.f32 %v1127_v7, %v882_v23  ;;  %v1038_v16 = vld [vmem:[%s1791_s3 + $0x28] sm:$0xff]  }
   0x7   :  { %v419_v13 = vmul.f32 %v1127_v7, %v877_v6  ;;  %v420_v14 = vmul.f32 %v1127_v7, %v878_v8  ;;  %v225_v33 = vadd.f32 %v1119_v3, %v157_v24  ;;  %v423_v35 = vmul.f32 %v1127_v7, %v885_v27  ;;  %v1006_v58 = vld [vmem:[%s1788_s0 + $0x20] sm:$0xff]   ;;  %v1007_v6 = vld [vmem:[%s1788_s0 + $0x28] sm:$0xff]  }
   0x8   :  { %v226_v39 = vadd.f32 %v1119_v3, %v158_v30  ;;  %v886_v40 = vunpack.c.h.bf16 %v1035_v18  ;;  %v227_v42 = vadd.f32 %v1119_v3, %v159_v34  ;;  %v160_v43 = vmul.f32 %v1114_v1, %v758_v36  ;;  %v1037_v59 = vld [vmem:[%s1791_s3 + $0x20] sm:$0xff]   ;;  %v1008_v30 = vld [vmem:[%s1788_s0 + $0x30] sm:$0xff]  }
   0x9   :  { %v483_v28 = vadd.f32 %v419_v13, %v223_v19  ;;  %v484_v29 = vadd.f32 %v420_v14, %v224_v21  ;;  %v485_v41 = vadd.f32 %v421_v25, %v225_v33  ;;  %v761_v44 = vunpack.c.l.bf16 %v1005_v32 }
   0xa   :  { %v486_v48 = vadd.f32 %v422_v31, %v226_v39  ;;  %v424_v49 = vmul.f32 %v1127_v7, %v886_v40  ;;  %v487_v51 = vadd.f32 %v423_v35, %v227_v42  ;;  %v228_v52 = vadd.f32 %v1119_v3, %v160_v43  ;;  %v1039_v35 = vld [vmem:[%s1791_s3 + $0x30] sm:$0xff]  }
   0xb   :  { %v551_v37 = vadd.f32 %v1149_v20, %v483_v28  ;;  %v552_v38 = vadd.f32 %v1149_v20, %v484_v29  ;;  %v553_v50 = vadd.f32 %v1149_v20, %v485_v41  ;;  %v161_v53 = vmul.f32 %v1114_v1, %v761_v44 }
   0xc   :  { %v554_v54 = vadd.f32 %v1149_v20, %v486_v48  ;;  %v889_v55 = vunpack.c.l.bf16 %v1036_v45  ;;  %v762_v56 = vunpack.c.h.bf16 %v1005_v32  ;;  %v890_v57 = vunpack.c.h.bf16 %v1036_v45 }
   0xd   :  { %v615_v46 = vmax.f32 %v551_v37, 0.0  ;;  %v616_v47 = vmax.f32 %v552_v38, 0.0  ;;  %v617_v60 = vmax.f32 %v553_v50, 0.0  ;;  %v555_v61 = vadd.f32 %v1149_v20, %v487_v51 }
   0xe   :  { %v488_v62 = vadd.f32 %v424_v49, %v228_v52  ;;  %v229_v63 = vadd.f32 %v1119_v3, %v161_v53  ;;  %v618_v0 = vmax.f32 %v554_v54, 0.0  ;;  %v425_v2 = vmul.f32 %v1127_v7, %v889_v55  ;;  %v1009_v52 = vld [vmem:[%s1788_s0 + $0x38] sm:$0xff]  }
   0xf   :  { %679 = vst [vmem:[%s1794_s6] sm:$0xff] %v615_v46  ;;  %v162_v4 = vmul.f32 %v1114_v1, %v762_v56  ;;  %v426_v5 = vmul.f32 %v1127_v7, %v890_v57  ;;  %v619_v8 = vmax.f32 %v555_v61, 0.0  ;;  %v765_v10 = vunpack.c.l.bf16 %v1006_v58  ;;  %v1040_v53 = vld [vmem:[%s1791_s3 + $0x38] sm:$0xff]  }
  0x10   :  { %680 = vst [vmem:[%s1794_s6 + $0x8] sm:$0xff] %v616_v47  ;;  %v556_v9 = vadd.f32 %v1149_v20, %v488_v62  ;;  %v893_v11 = vunpack.c.l.bf16 %v1037_v59  ;;  %v489_v12 = vadd.f32 %v425_v2, %v229_v63  ;;  %v766_v14 = vunpack.c.h.bf16 %v1006_v58  ;;  %v1010_v62 = vld [vmem:[%s1788_s0 + $0x40] sm:$0xff]  }
  0x11   :  { %681 = vst [vmem:[%s1794_s6 + $0x10] sm:$0xff] %v617_v60  ;;  %v230_v13 = vadd.f32 %v1119_v3, %v162_v4  ;;  %v894_v15 = vunpack.c.h.bf16 %v1037_v59  ;;  %v163_v18 = vmul.f32 %v1114_v1, %v765_v10  ;;  %v769_v21 = vunpack.c.l.bf16 %v1007_v6  ;;  %v1041_v10 = vld [vmem:[%s1791_s3 + $0x40] sm:$0xff]  }
  0x12   :  { %682 = vst [vmem:[%s1794_s6 + $0x18] sm:$0xff] %v618_v0  ;;  %v620_v17 = vmax.f32 %v556_v9, 0.0  ;;  %v427_v19 = vmul.f32 %v1127_v7, %v893_v11  ;;  %v557_v22 = vadd.f32 %v1149_v20, %v489_v12  ;;  %v164_v24 = vmul.f32 %v1114_v1, %v766_v14 }
  0x13   :  { %683 = vst [vmem:[%s1794_s6 + $0x20] sm:$0xff] %v619_v8  ;;  %v490_v23 = vadd.f32 %v426_v5, %v230_v13  ;;  %v428_v25 = vmul.f32 %v1127_v7, %v894_v15  ;;  %v231_v26 = vadd.f32 %v1119_v3, %v163_v18  ;;  %v165_v27 = vmul.f32 %v1114_v1, %v769_v21 }
  0x14   :  { %684 = vst [vmem:[%s1794_s6 + $0x28] sm:$0xff] %v620_v17  ;;  %v897_v28 = vunpack.c.l.bf16 %v1038_v16  ;;  %v770_v29 = vunpack.c.h.bf16 %v1007_v6  ;;  %v621_v31 = vmax.f32 %v557_v22, 0.0  ;;  %v232_v33 = vadd.f32 %v1119_v3, %v164_v24  ;;  %v1011_v24 = vld [vmem:[%s1788_s0 + $0x48] sm:$0xff]  }
  0x15   :  { %v558_v32 = vadd.f32 %v1149_v20, %v490_v23  ;;  %v898_v34 = vunpack.c.h.bf16 %v1038_v16  ;;  %v491_v36 = vadd.f32 %v427_v19, %v231_v26  ;;  %v233_v37 = vadd.f32 %v1119_v3, %v165_v27 }
  0x16   :  { %v429_v38 = vmul.f32 %v1127_v7, %v897_v28  ;;  %v166_v39 = vmul.f32 %v1114_v1, %v770_v29  ;;  %685 = vst [vmem:[%s1794_s6 + $0x30] sm:$0xff] %v621_v31  ;;  %v492_v41 = vadd.f32 %v428_v25, %v232_v33  ;;  %v773_v43 = vunpack.c.l.bf16 %v1008_v30  ;;  %v1042_v29 = vld [vmem:[%s1791_s3 + $0x48] sm:$0xff]  }
  0x17   :  { %v622_v40 = vmax.f32 %v558_v32, 0.0  ;;  %v430_v42 = vmul.f32 %v1127_v7, %v898_v34  ;;  %v559_v44 = vadd.f32 %v1149_v20, %v491_v36  ;;  %v901_v47 = vunpack.c.l.bf16 %v1039_v35 }
  0x18   :  { %v493_v45 = vadd.f32 %v429_v38, %v233_v37  ;;  %v234_v46 = vadd.f32 %v1119_v3, %v166_v39  ;;  %v560_v48 = vadd.f32 %v1149_v20, %v492_v41  ;;  %v167_v49 = vmul.f32 %v1114_v1, %v773_v43 }
  0x19   :  { %686 = vst [vmem:[%s1794_s6 + $0x38] sm:$0xff] %v622_v40  ;;  %v774_v50 = vunpack.c.h.bf16 %v1008_v30  ;;  %v902_v51 = vunpack.c.h.bf16 %v1039_v35  ;;  %v623_v54 = vmax.f32 %v559_v44, 0.0  ;;  %v431_v57 = vmul.f32 %v1127_v7, %v901_v47  ;;  %v1043_v47 = vld [vmem:[%s1791_s3 + $0x50] sm:$0xff]  }
  0x1a   :  { %v561_v55 = vadd.f32 %v1149_v20, %v493_v45  ;;  %v494_v56 = vadd.f32 %v430_v42, %v234_v46  ;;  %v624_v58 = vmax.f32 %v560_v48, 0.0  ;;  %v235_v59 = vadd.f32 %v1119_v3, %v167_v49  ;;  %v1012_v46 = vld [vmem:[%s1788_s0 + $0x50] sm:$0xff]  }
  0x1b   :  { %v168_v60 = vmul.f32 %v1114_v1, %v774_v50  ;;  %v432_v61 = vmul.f32 %v1127_v7, %v902_v51  ;;  %687 = vst [vmem:[%s1794_s6 + $0x40] sm:$0xff] %v623_v54  ;;  %v777_v2 = vunpack.c.l.bf16 %v1009_v52  ;;  %v905_v4 = vunpack.c.l.bf16 %v1040_v53 }
  0x1c   :  { %v625_v63 = vmax.f32 %v561_v55, 0.0  ;;  %v562_v0 = vadd.f32 %v1149_v20, %v494_v56  ;;  %688 = vst [vmem:[%s1794_s6 + $0x48] sm:$0xff] %v624_v58  ;;  %v495_v5 = vadd.f32 %v431_v57, %v235_v59  ;;  %v778_v8 = vunpack.c.h.bf16 %v1009_v52  ;;  %v1013_v56 = vld [vmem:[%s1788_s0 + $0x58] sm:$0xff]  }
  0x1d   :  { %v236_v6 = vadd.f32 %v1119_v3, %v168_v60  ;;  %v906_v9 = vunpack.c.h.bf16 %v1040_v53  ;;  %v169_v12 = vmul.f32 %v1114_v1, %v777_v2  ;;  %v433_v13 = vmul.f32 %v1127_v7, %v905_v4  ;;  %v1044_v2 = vld [vmem:[%s1791_s3 + $0x58] sm:$0xff]  }
  0x1e   :  { %689 = vst [vmem:[%s1794_s6 + $0x50] sm:$0xff] %v625_v63  ;;  %v626_v11 = vmax.f32 %v562_v0, 0.0  ;;  %v781_v14 = vunpack.c.l.bf16 %v1010_v62  ;;  %v563_v15 = vadd.f32 %v1149_v20, %v495_v5  ;;  %v170_v17 = vmul.f32 %v1114_v1, %v778_v8 }
  0x1f   :  { %v496_v16 = vadd.f32 %v432_v61, %v236_v6  ;;  %v434_v18 = vmul.f32 %v1127_v7, %v906_v9  ;;  %v237_v19 = vadd.f32 %v1119_v3, %v169_v12  ;;  %v909_v22 = vunpack.c.l.bf16 %v1041_v10 }
  0x20   :  { %690 = vst [vmem:[%s1794_s6 + $0x58] sm:$0xff] %v626_v11  ;;  %v171_v21 = vmul.f32 %v1114_v1, %v781_v14  ;;  %v782_v23 = vunpack.c.h.bf16 %v1010_v62  ;;  %v627_v25 = vmax.f32 %v563_v15, 0.0  ;;  %v238_v27 = vadd.f32 %v1119_v3, %v170_v17  ;;  %v1014_v17 = vld [vmem:[%s1788_s0 + $0x60] sm:$0xff]  }
  0x21   :  { %v564_v26 = vadd.f32 %v1149_v20, %v496_v16  ;;  %v910_v28 = vunpack.c.h.bf16 %v1041_v10  ;;  %v497_v30 = vadd.f32 %v433_v13, %v237_v19  ;;  %v435_v32 = vmul.f32 %v1127_v7, %v909_v22 }
  0x22   :  { %v239_v31 = vadd.f32 %v1119_v3, %v171_v21  ;;  %v172_v33 = vmul.f32 %v1114_v1, %v782_v23  ;;  %691 = vst [vmem:[%s1794_s6 + $0x60] sm:$0xff] %v627_v25  ;;  %v498_v35 = vadd.f32 %v434_v18, %v238_v27  ;;  %v785_v37 = vunpack.c.l.bf16 %v1011_v24  ;;  %v1045_v23 = vld [vmem:[%s1791_s3 + $0x60] sm:$0xff]  }
  0x23   :  { %v628_v34 = vmax.f32 %v564_v26, 0.0  ;;  %v436_v36 = vmul.f32 %v1127_v7, %v910_v28  ;;  %v565_v38 = vadd.f32 %v1149_v20, %v497_v30  ;;  %v913_v41 = vunpack.c.l.bf16 %v1042_v29 }
  0x24   :  { %v499_v39 = vadd.f32 %v435_v32, %v239_v31  ;;  %v240_v40 = vadd.f32 %v1119_v3, %v172_v33  ;;  %v566_v42 = vadd.f32 %v1149_v20, %v498_v35  ;;  %v173_v43 = vmul.f32 %v1114_v1, %v785_v37 }
  0x25   :  { %692 = vst [vmem:[%s1794_s6 + $0x68] sm:$0xff] %v628_v34  ;;  %v786_v44 = vunpack.c.h.bf16 %v1011_v24  ;;  %v914_v45 = vunpack.c.h.bf16 %v1042_v29  ;;  %v629_v48 = vmax.f32 %v565_v38, 0.0  ;;  %v437_v51 = vmul.f32 %v1127_v7, %v913_v41  ;;  %v1046_v41 = vld [vmem:[%s1791_s3 + $0x68] sm:$0xff]  }
  0x26   :  { %v567_v49 = vadd.f32 %v1149_v20, %v499_v39  ;;  %v500_v50 = vadd.f32 %v436_v36, %v240_v40  ;;  %v630_v52 = vmax.f32 %v566_v42, 0.0  ;;  %v241_v53 = vadd.f32 %v1119_v3, %v173_v43  ;;  %v1015_v40 = vld [vmem:[%s1788_s0 + $0x68] sm:$0xff]  }
  0x27   :  { %v174_v54 = vmul.f32 %v1114_v1, %v786_v44  ;;  %v438_v55 = vmul.f32 %v1127_v7, %v914_v45  ;;  %693 = vst [vmem:[%s1794_s6 + $0x70] sm:$0xff] %v629_v48  ;;  %v789_v59 = vunpack.c.l.bf16 %v1012_v46  ;;  %v917_v60 = vunpack.c.l.bf16 %v1043_v47 }
  0x28   :  { %v631_v57 = vmax.f32 %v567_v49, 0.0  ;;  %v568_v58 = vadd.f32 %v1149_v20, %v500_v50  ;;  %694 = vst [vmem:[%s1794_s6 + $0x78] sm:$0xff] %v630_v52  ;;  %v501_v61 = vadd.f32 %v437_v51, %v241_v53  ;;  %v790_v63 = vunpack.c.h.bf16 %v1012_v46  ;;  %v1016_v50 = vld [vmem:[%s1788_s0 + $0x70] sm:$0xff]  }
  0x29   :  { %v242_v62 = vadd.f32 %v1119_v3, %v174_v54  ;;  %v918_v0 = vunpack.c.h.bf16 %v1043_v47  ;;  %v175_v5 = vmul.f32 %v1114_v1, %v789_v59  ;;  %v439_v6 = vmul.f32 %v1127_v7, %v917_v60  ;;  %v1047_v59 = vld [vmem:[%s1791_s3 + $0x70] sm:$0xff]  }
  0x2a   :  { %695 = vst [vmem:[%s1794_s6 + $0x80] sm:$0xff] %v631_v57  ;;  %v632_v4 = vmax.f32 %v568_v58, 0.0  ;;  %v793_v8 = vunpack.c.l.bf16 %v1013_v56  ;;  %v569_v9 = vadd.f32 %v1149_v20, %v501_v61  ;;  %v176_v11 = vmul.f32 %v1114_v1, %v790_v63 }
  0x2b   :  { %v502_v10 = vadd.f32 %v438_v55, %v242_v62  ;;  %v440_v12 = vmul.f32 %v1127_v7, %v918_v0  ;;  %v243_v13 = vadd.f32 %v1119_v3, %v175_v5  ;;  %v921_v15 = vunpack.c.l.bf16 %v1044_v2 }
  0x2c   :  { %696 = vst [vmem:[%s1794_s6 + $0x88] sm:$0xff] %v632_v4  ;;  %v177_v14 = vmul.f32 %v1114_v1, %v793_v8  ;;  %v794_v16 = vunpack.c.h.bf16 %v1013_v56  ;;  %v633_v18 = vmax.f32 %v569_v9, 0.0  ;;  %v244_v21 = vadd.f32 %v1119_v3, %v176_v11  ;;  %v1017_v11 = vld [vmem:[%s1788_s0 + $0x78] sm:$0xff]  }
  0x2d   :  { %v570_v19 = vadd.f32 %v1149_v20, %v502_v10  ;;  %v922_v22 = vunpack.c.h.bf16 %v1044_v2  ;;  %v503_v24 = vadd.f32 %v439_v6, %v243_v13  ;;  %v441_v26 = vmul.f32 %v1127_v7, %v921_v15 }
  0x2e   :  { %v245_v25 = vadd.f32 %v1119_v3, %v177_v14  ;;  %v178_v27 = vmul.f32 %v1114_v1, %v794_v16  ;;  %697 = vst [vmem:[%s1794_s6 + $0x90] sm:$0xff] %v633_v18  ;;  %v504_v29 = vadd.f32 %v440_v12, %v244_v21  ;;  %v797_v31 = vunpack.c.l.bf16 %v1014_v17  ;;  %v1048_v16 = vld [vmem:[%s1791_s3 + $0x78] sm:$0xff]  }
  0x2f   :  { %v634_v28 = vmax.f32 %v570_v19, 0.0  ;;  %v442_v30 = vmul.f32 %v1127_v7, %v922_v22  ;;  %v571_v32 = vadd.f32 %v1149_v20, %v503_v24  ;;  %v925_v35 = vunpack.c.l.bf16 %v1045_v23 }
  0x30   :  { %v505_v33 = vadd.f32 %v441_v26, %v245_v25  ;;  %v246_v34 = vadd.f32 %v1119_v3, %v178_v27  ;;  %v572_v36 = vadd.f32 %v1149_v20, %v504_v29  ;;  %v179_v37 = vmul.f32 %v1114_v1, %v797_v31 }
  0x31   :  { %698 = vst [vmem:[%s1794_s6 + $0x98] sm:$0xff] %v634_v28  ;;  %v798_v38 = vunpack.c.h.bf16 %v1014_v17  ;;  %v926_v39 = vunpack.c.h.bf16 %v1045_v23  ;;  %v635_v42 = vmax.f32 %v571_v32, 0.0  ;;  %v443_v45 = vmul.f32 %v1127_v7, %v925_v35  ;;  %v1049_v35 = vld [vmem:[%s1791_s3 + $0x80] sm:$0xff]  }
  0x32   :  { %v573_v43 = vadd.f32 %v1149_v20, %v505_v33  ;;  %v506_v44 = vadd.f32 %v442_v30, %v246_v34  ;;  %v636_v46 = vmax.f32 %v572_v36, 0.0  ;;  %v247_v47 = vadd.f32 %v1119_v3, %v179_v37  ;;  %v1018_v34 = vld [vmem:[%s1788_s0 + $0x80] sm:$0xff]  }
  0x33   :  { %v180_v48 = vmul.f32 %v1114_v1, %v798_v38  ;;  %v444_v49 = vmul.f32 %v1127_v7, %v926_v39  ;;  %699 = vst [vmem:[%s1794_s6 + $0xa0] sm:$0xff] %v635_v42  ;;  %v801_v53 = vunpack.c.l.bf16 %v1015_v40  ;;  %v929_v54 = vunpack.c.l.bf16 %v1046_v41 }
  0x34   :  { %v637_v51 = vmax.f32 %v573_v43, 0.0  ;;  %v574_v52 = vadd.f32 %v1149_v20, %v506_v44  ;;  %700 = vst [vmem:[%s1794_s6 + $0xa8] sm:$0xff] %v636_v46  ;;  %v507_v55 = vadd.f32 %v443_v45, %v247_v47  ;;  %v802_v57 = vunpack.c.h.bf16 %v1015_v40  ;;  %v1019_v44 = vld [vmem:[%s1788_s0 + $0x88] sm:$0xff]  }
  0x35   :  { %v248_v56 = vadd.f32 %v1119_v3, %v180_v48  ;;  %v930_v58 = vunpack.c.h.bf16 %v1046_v41  ;;  %v181_v61 = vmul.f32 %v1114_v1, %v801_v53  ;;  %v445_v62 = vmul.f32 %v1127_v7, %v929_v54  ;;  %v1050_v53 = vld [vmem:[%s1791_s3 + $0x88] sm:$0xff]  }
  0x36   :  { %701 = vst [vmem:[%s1794_s6 + $0xb0] sm:$0xff] %v637_v51  ;;  %v638_v60 = vmax.f32 %v574_v52, 0.0  ;;  %v805_v63 = vunpack.c.l.bf16 %v1016_v50  ;;  %v575_v0 = vadd.f32 %v1149_v20, %v507_v55  ;;  %v182_v4 = vmul.f32 %v1114_v1, %v802_v57 }
  0x37   :  { %v508_v2 = vadd.f32 %v444_v49, %v248_v56  ;;  %v446_v5 = vmul.f32 %v1127_v7, %v930_v58  ;;  %v249_v6 = vadd.f32 %v1119_v3, %v181_v61  ;;  %v933_v9 = vunpack.c.l.bf16 %v1047_v59 }
  0x38   :  { %702 = vst [vmem:[%s1794_s6 + $0xb8] sm:$0xff] %v638_v60  ;;  %v183_v8 = vmul.f32 %v1114_v1, %v805_v63  ;;  %v806_v10 = vunpack.c.h.bf16 %v1016_v50  ;;  %v639_v12 = vmax.f32 %v575_v0, 0.0  ;;  %v250_v14 = vadd.f32 %v1119_v3, %v182_v4  ;;  %v1020_v4 = vld [vmem:[%s1788_s0 + $0x90] sm:$0xff]  }
  0x39   :  { %v576_v13 = vadd.f32 %v1149_v20, %v508_v2  ;;  %v934_v15 = vunpack.c.h.bf16 %v1047_v59  ;;  %v509_v17 = vadd.f32 %v445_v62, %v249_v6  ;;  %v447_v19 = vmul.f32 %v1127_v7, %v933_v9 }
  0x3a   :  { %v251_v18 = vadd.f32 %v1119_v3, %v183_v8  ;;  %v184_v21 = vmul.f32 %v1114_v1, %v806_v10  ;;  %703 = vst [vmem:[%s1794_s6 + $0xc0] sm:$0xff] %v639_v12  ;;  %v510_v23 = vadd.f32 %v446_v5, %v250_v14  ;;  %v809_v25 = vunpack.c.l.bf16 %v1017_v11  ;;  %v1051_v10 = vld [vmem:[%s1791_s3 + $0x90] sm:$0xff]  }
  0x3b   :  { %v640_v22 = vmax.f32 %v576_v13, 0.0  ;;  %v448_v24 = vmul.f32 %v1127_v7, %v934_v15  ;;  %v577_v26 = vadd.f32 %v1149_v20, %v509_v17  ;;  %v937_v29 = vunpack.c.l.bf16 %v1048_v16 }
  0x3c   :  { %v511_v27 = vadd.f32 %v447_v19, %v251_v18  ;;  %v252_v28 = vadd.f32 %v1119_v3, %v184_v21  ;;  %v578_v30 = vadd.f32 %v1149_v20, %v510_v23  ;;  %v185_v31 = vmul.f32 %v1114_v1, %v809_v25 }
  0x3d   :  { %704 = vst [vmem:[%s1794_s6 + $0xc8] sm:$0xff] %v640_v22  ;;  %v810_v32 = vunpack.c.h.bf16 %v1017_v11  ;;  %v938_v33 = vunpack.c.h.bf16 %v1048_v16  ;;  %v641_v36 = vmax.f32 %v577_v26, 0.0  ;;  %v449_v39 = vmul.f32 %v1127_v7, %v937_v29  ;;  %v1052_v29 = vld [vmem:[%s1791_s3 + $0x98] sm:$0xff]  }
  0x3e   :  { %v579_v37 = vadd.f32 %v1149_v20, %v511_v27  ;;  %v512_v38 = vadd.f32 %v448_v24, %v252_v28  ;;  %v642_v40 = vmax.f32 %v578_v30, 0.0  ;;  %v253_v41 = vadd.f32 %v1119_v3, %v185_v31  ;;  %v1021_v28 = vld [vmem:[%s1788_s0 + $0x98] sm:$0xff]  }
  0x3f   :  { %v186_v42 = vmul.f32 %v1114_v1, %v810_v32  ;;  %v450_v43 = vmul.f32 %v1127_v7, %v938_v33  ;;  %705 = vst [vmem:[%s1794_s6 + $0xd0] sm:$0xff] %v641_v36  ;;  %v813_v47 = vunpack.c.l.bf16 %v1018_v34  ;;  %v941_v48 = vunpack.c.l.bf16 %v1049_v35 }
  0x40   :  { %v643_v45 = vmax.f32 %v579_v37, 0.0  ;;  %v580_v46 = vadd.f32 %v1149_v20, %v512_v38  ;;  %706 = vst [vmem:[%s1794_s6 + $0xd8] sm:$0xff] %v642_v40  ;;  %v513_v49 = vadd.f32 %v449_v39, %v253_v41  ;;  %v814_v51 = vunpack.c.h.bf16 %v1018_v34  ;;  %v1022_v38 = vld [vmem:[%s1788_s0 + $0xa0] sm:$0xff]  }
  0x41   :  { %v254_v50 = vadd.f32 %v1119_v3, %v186_v42  ;;  %v942_v52 = vunpack.c.h.bf16 %v1049_v35  ;;  %v187_v55 = vmul.f32 %v1114_v1, %v813_v47  ;;  %v451_v56 = vmul.f32 %v1127_v7, %v941_v48  ;;  %v1053_v47 = vld [vmem:[%s1791_s3 + $0xa0] sm:$0xff]  }
  0x42   :  { %707 = vst [vmem:[%s1794_s6 + $0xe0] sm:$0xff] %v643_v45  ;;  %v644_v54 = vmax.f32 %v580_v46, 0.0  ;;  %v817_v57 = vunpack.c.l.bf16 %v1019_v44  ;;  %v581_v58 = vadd.f32 %v1149_v20, %v513_v49  ;;  %v188_v60 = vmul.f32 %v1114_v1, %v814_v51 }
  0x43   :  { %v514_v59 = vadd.f32 %v450_v43, %v254_v50  ;;  %v452_v61 = vmul.f32 %v1127_v7, %v942_v52  ;;  %v255_v62 = vadd.f32 %v1119_v3, %v187_v55  ;;  %v945_v0 = vunpack.c.l.bf16 %v1050_v53 }
  0x44   :  { %708 = vst [vmem:[%s1794_s6 + $0xe8] sm:$0xff] %v644_v54  ;;  %v189_v63 = vmul.f32 %v1114_v1, %v817_v57  ;;  %v818_v2 = vunpack.c.h.bf16 %v1019_v44  ;;  %v645_v5 = vmax.f32 %v581_v58, 0.0  ;;  %v256_v8 = vadd.f32 %v1119_v3, %v188_v60  ;;  %v1023_v60 = vld [vmem:[%s1788_s0 + $0xa8] sm:$0xff]  }
  0x45   :  { %v582_v6 = vadd.f32 %v1149_v20, %v514_v59  ;;  %v946_v9 = vunpack.c.h.bf16 %v1050_v53  ;;  %v515_v11 = vadd.f32 %v451_v56, %v255_v62  ;;  %v453_v13 = vmul.f32 %v1127_v7, %v945_v0 }
  0x46   :  { %v257_v12 = vadd.f32 %v1119_v3, %v189_v63  ;;  %v190_v14 = vmul.f32 %v1114_v1, %v818_v2  ;;  %709 = vst [vmem:[%s1794_s6 + $0xf0] sm:$0xff] %v645_v5  ;;  %v516_v16 = vadd.f32 %v452_v61, %v256_v8  ;;  %v821_v18 = vunpack.c.l.bf16 %v1020_v4  ;;  %v1054_v2 = vld [vmem:[%s1791_s3 + $0xa8] sm:$0xff]  }
  0x47   :  { %v646_v15 = vmax.f32 %v582_v6, 0.0  ;;  %v454_v17 = vmul.f32 %v1127_v7, %v946_v9  ;;  %v583_v19 = vadd.f32 %v1149_v20, %v515_v11  ;;  %v949_v23 = vunpack.c.l.bf16 %v1051_v10 }
  0x48   :  { %v517_v21 = vadd.f32 %v453_v13, %v257_v12  ;;  %v258_v22 = vadd.f32 %v1119_v3, %v190_v14  ;;  %v584_v24 = vadd.f32 %v1149_v20, %v516_v16  ;;  %v191_v25 = vmul.f32 %v1114_v1, %v821_v18 }
  0x49   :  { %710 = vst [vmem:[%s1794_s6 + $0xf8] sm:$0xff] %v646_v15  ;;  %v822_v26 = vunpack.c.h.bf16 %v1020_v4  ;;  %v950_v27 = vunpack.c.h.bf16 %v1051_v10  ;;  %v647_v30 = vmax.f32 %v583_v19, 0.0  ;;  %v455_v33 = vmul.f32 %v1127_v7, %v949_v23  ;;  %v1055_v23 = vld [vmem:[%s1791_s3 + $0xb0] sm:$0xff]  }
  0x4a   :  { %v585_v31 = vadd.f32 %v1149_v20, %v517_v21  ;;  %v518_v32 = vadd.f32 %v454_v17, %v258_v22  ;;  %v648_v34 = vmax.f32 %v584_v24, 0.0  ;;  %v259_v35 = vadd.f32 %v1119_v3, %v191_v25  ;;  %v1024_v22 = vld [vmem:[%s1788_s0 + $0xb0] sm:$0xff]  }
  0x4b   :  { %v192_v36 = vmul.f32 %v1114_v1, %v822_v26  ;;  %v456_v37 = vmul.f32 %v1127_v7, %v950_v27  ;;  %711 = vst [vmem:[%s1794_s6 + $0x100] sm:$0xff] %v647_v30  ;;  %v825_v41 = vunpack.c.l.bf16 %v1021_v28  ;;  %v953_v42 = vunpack.c.l.bf16 %v1052_v29 }
  0x4c   :  { %v649_v39 = vmax.f32 %v585_v31, 0.0  ;;  %v586_v40 = vadd.f32 %v1149_v20, %v518_v32  ;;  %712 = vst [vmem:[%s1794_s6 + $0x108] sm:$0xff] %v648_v34  ;;  %v519_v43 = vadd.f32 %v455_v33, %v259_v35  ;;  %v826_v45 = vunpack.c.h.bf16 %v1021_v28  ;;  %v1025_v32 = vld [vmem:[%s1788_s0 + $0xb8] sm:$0xff]  }
  0x4d   :  { %v260_v44 = vadd.f32 %v1119_v3, %v192_v36  ;;  %v954_v46 = vunpack.c.h.bf16 %v1052_v29  ;;  %v193_v49 = vmul.f32 %v1114_v1, %v825_v41  ;;  %v457_v50 = vmul.f32 %v1127_v7, %v953_v42  ;;  %v1056_v41 = vld [vmem:[%s1791_s3 + $0xb8] sm:$0xff]  }
  0x4e   :  { %713 = vst [vmem:[%s1794_s6 + $0x110] sm:$0xff] %v649_v39  ;;  %v650_v48 = vmax.f32 %v586_v40, 0.0  ;;  %v829_v51 = vunpack.c.l.bf16 %v1022_v38  ;;  %v587_v52 = vadd.f32 %v1149_v20, %v519_v43  ;;  %v194_v54 = vmul.f32 %v1114_v1, %v826_v45 }
  0x4f   :  { %v520_v53 = vadd.f32 %v456_v37, %v260_v44  ;;  %v458_v55 = vmul.f32 %v1127_v7, %v954_v46  ;;  %v261_v56 = vadd.f32 %v1119_v3, %v193_v49  ;;  %v957_v58 = vunpack.c.l.bf16 %v1053_v47 }
  0x50   :  { %714 = vst [vmem:[%s1794_s6 + $0x118] sm:$0xff] %v650_v48  ;;  %v195_v57 = vmul.f32 %v1114_v1, %v829_v51  ;;  %v830_v59 = vunpack.c.h.bf16 %v1022_v38  ;;  %v651_v61 = vmax.f32 %v587_v52, 0.0  ;;  %v262_v63 = vadd.f32 %v1119_v3, %v194_v54  ;;  %v1026_v54 = vld [vmem:[%s1788_s0 + $0xc0] sm:$0xff]  }
  0x51   :  { %v588_v62 = vadd.f32 %v1149_v20, %v520_v53  ;;  %v958_v0 = vunpack.c.h.bf16 %v1053_v47  ;;  %v521_v4 = vadd.f32 %v457_v50, %v261_v56  ;;  %v459_v6 = vmul.f32 %v1127_v7, %v957_v58 }
  0x52   :  { %v263_v5 = vadd.f32 %v1119_v3, %v195_v57  ;;  %v196_v8 = vmul.f32 %v1114_v1, %v830_v59  ;;  %715 = vst [vmem:[%s1794_s6 + $0x120] sm:$0xff] %v651_v61  ;;  %v522_v10 = vadd.f32 %v458_v55, %v262_v63  ;;  %v833_v12 = vunpack.c.l.bf16 %v1023_v60  ;;  %v1057_v59 = vld [vmem:[%s1791_s3 + $0xc0] sm:$0xff]  }
  0x53   :  { %v652_v9 = vmax.f32 %v588_v62, 0.0  ;;  %v460_v11 = vmul.f32 %v1127_v7, %v958_v0  ;;  %v589_v13 = vadd.f32 %v1149_v20, %v521_v4  ;;  %v961_v16 = vunpack.c.l.bf16 %v1054_v2 }
  0x54   :  { %v523_v14 = vadd.f32 %v459_v6, %v263_v5  ;;  %v264_v15 = vadd.f32 %v1119_v3, %v196_v8  ;;  %v590_v17 = vadd.f32 %v1149_v20, %v522_v10  ;;  %v197_v18 = vmul.f32 %v1114_v1, %v833_v12 }
  0x55   :  { %716 = vst [vmem:[%s1794_s6 + $0x128] sm:$0xff] %v652_v9  ;;  %v834_v19 = vunpack.c.h.bf16 %v1023_v60  ;;  %v962_v21 = vunpack.c.h.bf16 %v1054_v2  ;;  %v653_v24 = vmax.f32 %v589_v13, 0.0  ;;  %v461_v27 = vmul.f32 %v1127_v7, %v961_v16  ;;  %v1058_v16 = vld [vmem:[%s1791_s3 + $0xc8] sm:$0xff]  }
  0x56   :  { %v591_v25 = vadd.f32 %v1149_v20, %v523_v14  ;;  %v524_v26 = vadd.f32 %v460_v11, %v264_v15  ;;  %v654_v28 = vmax.f32 %v590_v17, 0.0  ;;  %v265_v29 = vadd.f32 %v1119_v3, %v197_v18  ;;  %v1027_v15 = vld [vmem:[%s1788_s0 + $0xc8] sm:$0xff]  }
  0x57   :  { %v198_v30 = vmul.f32 %v1114_v1, %v834_v19  ;;  %v462_v31 = vmul.f32 %v1127_v7, %v962_v21  ;;  %717 = vst [vmem:[%s1794_s6 + $0x130] sm:$0xff] %v653_v24  ;;  %v837_v35 = vunpack.c.l.bf16 %v1024_v22  ;;  %v965_v36 = vunpack.c.l.bf16 %v1055_v23 }
  0x58   :  { %v655_v33 = vmax.f32 %v591_v25, 0.0  ;;  %v592_v34 = vadd.f32 %v1149_v20, %v524_v26  ;;  %718 = vst [vmem:[%s1794_s6 + $0x138] sm:$0xff] %v654_v28  ;;  %v525_v37 = vadd.f32 %v461_v27, %v265_v29  ;;  %v838_v39 = vunpack.c.h.bf16 %v1024_v22  ;;  %v1028_v26 = vld [vmem:[%s1788_s0 + $0xd0] sm:$0xff]  }
  0x59   :  { %v266_v38 = vadd.f32 %v1119_v3, %v198_v30  ;;  %v966_v40 = vunpack.c.h.bf16 %v1055_v23  ;;  %v199_v43 = vmul.f32 %v1114_v1, %v837_v35  ;;  %v463_v44 = vmul.f32 %v1127_v7, %v965_v36  ;;  %v1059_v35 = vld [vmem:[%s1791_s3 + $0xd0] sm:$0xff]  }
  0x5a   :  { %719 = vst [vmem:[%s1794_s6 + $0x140] sm:$0xff] %v655_v33  ;;  %v656_v42 = vmax.f32 %v592_v34, 0.0  ;;  %v841_v45 = vunpack.c.l.bf16 %v1025_v32  ;;  %v593_v46 = vadd.f32 %v1149_v20, %v525_v37  ;;  %v200_v48 = vmul.f32 %v1114_v1, %v838_v39 }
  0x5b   :  { %v526_v47 = vadd.f32 %v462_v31, %v266_v38  ;;  %v464_v49 = vmul.f32 %v1127_v7, %v966_v40  ;;  %v267_v50 = vadd.f32 %v1119_v3, %v199_v43  ;;  %v969_v52 = vunpack.c.l.bf16 %v1056_v41 }
  0x5c   :  { %720 = vst [vmem:[%s1794_s6 + $0x148] sm:$0xff] %v656_v42  ;;  %v201_v51 = vmul.f32 %v1114_v1, %v841_v45  ;;  %v842_v53 = vunpack.c.h.bf16 %v1025_v32  ;;  %v657_v55 = vmax.f32 %v593_v46, 0.0  ;;  %v268_v57 = vadd.f32 %v1119_v3, %v200_v48  ;;  %v1029_v48 = vld [vmem:[%s1788_s0 + $0xd8] sm:$0xff]  }
  0x5d   :  { %v594_v56 = vadd.f32 %v1149_v20, %v526_v47  ;;  %v970_v58 = vunpack.c.h.bf16 %v1056_v41  ;;  %v527_v60 = vadd.f32 %v463_v44, %v267_v50  ;;  %v465_v62 = vmul.f32 %v1127_v7, %v969_v52  ;;  %v1060_v52 = vld [vmem:[%s1791_s3 + $0xd8] sm:$0xff]  }
  0x5e   :  { %v269_v61 = vadd.f32 %v1119_v3, %v201_v51  ;;  %v202_v63 = vmul.f32 %v1114_v1, %v842_v53  ;;  %721 = vst [vmem:[%s1794_s6 + $0x150] sm:$0xff] %v657_v55  ;;  %v528_v2 = vadd.f32 %v464_v49, %v268_v57  ;;  %v845_v5 = vunpack.c.l.bf16 %v1026_v54  ;;  %v1661_v55 = vld [vmem:[%s1792_s4] ss:$0 sm:$0xff] }
  0x5f   :  { %v658_v0 = vmax.f32 %v594_v56, 0.0  ;;  %v466_v4 = vmul.f32 %v1127_v7, %v970_v58  ;;  %v595_v6 = vadd.f32 %v1149_v20, %v527_v60  ;;  %v973_v10 = vunpack.c.l.bf16 %v1057_v59 }
  0x60   :  { %v529_v8 = vadd.f32 %v465_v62, %v269_v61  ;;  %v270_v9 = vadd.f32 %v1119_v3, %v202_v63  ;;  %v596_v11 = vadd.f32 %v1149_v20, %v528_v2  ;;  %v203_v12 = vmul.f32 %v1114_v1, %v845_v5  ;;  %v1672_v61 = vld [vmem:[%s1793_s5] ss:$0 sm:$0xff] }
  0x61   :  { %722 = vst [vmem:[%s1794_s6 + $0x158] sm:$0xff] %v658_v0  ;;  %v846_v13 = vunpack.c.h.bf16 %v1026_v54  ;;  %v974_v14 = vunpack.c.h.bf16 %v1057_v59  ;;  %v659_v17 = vmax.f32 %v595_v6, 0.0  ;;  %v467_v21 = vmul.f32 %v1127_v7, %v973_v10  ;;  %v1061_v10 = vld [vmem:[%s1791_s3 + $0xe0] sm:$0xff]  }
  0x62   :  { %v597_v18 = vadd.f32 %v1149_v20, %v529_v8  ;;  %v530_v19 = vadd.f32 %v466_v4, %v270_v9  ;;  %v660_v22 = vmax.f32 %v596_v11, 0.0  ;;  %v271_v23 = vadd.f32 %v1119_v3, %v203_v12  ;;  %v1030_v9 = vld [vmem:[%s1788_s0 + $0xe0] sm:$0xff]  }
  0x63   :  { %v204_v24 = vmul.f32 %v1114_v1, %v846_v13  ;;  %v468_v25 = vmul.f32 %v1127_v7, %v974_v14  ;;  %723 = vst [vmem:[%s1794_s6 + $0x160] sm:$0xff] %v659_v17  ;;  %v849_v29 = vunpack.c.l.bf16 %v1027_v15  ;;  %v977_v30 = vunpack.c.l.bf16 %v1058_v16 }
  0x64   :  { %v661_v27 = vmax.f32 %v597_v18, 0.0  ;;  %v598_v28 = vadd.f32 %v1149_v20, %v530_v19  ;;  %724 = vst [vmem:[%s1794_s6 + $0x168] sm:$0xff] %v660_v22  ;;  %v531_v31 = vadd.f32 %v467_v21, %v271_v23  ;;  %v850_v33 = vunpack.c.h.bf16 %v1027_v15  ;;  %v1031_v19 = vld [vmem:[%s1788_s0 + $0xe8] sm:$0xff]  }
  0x65   :  { %v272_v32 = vadd.f32 %v1119_v3, %v204_v24  ;;  %v978_v34 = vunpack.c.h.bf16 %v1058_v16  ;;  %v205_v37 = vmul.f32 %v1114_v1, %v849_v29  ;;  %v469_v38 = vmul.f32 %v1127_v7, %v977_v30  ;;  %v1635_v3 = vld [vmem:[%s1789_s1] ss:$0 sm:$0xff]  ;;  %v1062_v29 = vld [vmem:[%s1791_s3 + $0xe8] sm:$0xff]  }
  0x66   :  { %725 = vst [vmem:[%s1794_s6 + $0x170] sm:$0xff] %v661_v27  ;;  %v662_v36 = vmax.f32 %v598_v28, 0.0  ;;  %v853_v39 = vunpack.c.l.bf16 %v1028_v26  ;;  %v599_v40 = vadd.f32 %v1149_v20, %v531_v31  ;;  %v206_v42 = vmul.f32 %v1635_v3, %v850_v33  ;;  %v1645_v1 = vld [vmem:[%s1790_s2] ss:$0 sm:$0xff] }
  0x67   :  { %v532_v41 = vadd.f32 %v468_v25, %v272_v32  ;;  %v470_v43 = vmul.f32 %v1127_v7, %v978_v34  ;;  %v273_v44 = vadd.f32 %v1645_v1, %v205_v37  ;;  %v981_v46 = vunpack.c.l.bf16 %v1059_v35 }
  0x68   :  { %726 = vst [vmem:[%s1794_s6 + $0x178] sm:$0xff] %v662_v36  ;;  %v207_v45 = vmul.f32 %v1635_v3, %v853_v39  ;;  %v854_v47 = vunpack.c.h.bf16 %v1028_v26  ;;  %v663_v7 = vmax.f32 %v599_v40, 0.0  ;;  %v274_v50 = vadd.f32 %v1645_v1, %v206_v42  ;;  %v1032_v42 = vld [vmem:[%s1788_s0 + $0xf0] sm:$0xff]  }
  0x69   :  { %v600_v49 = vadd.f32 %v1149_v20, %v532_v41  ;;  %v982_v51 = vunpack.c.h.bf16 %v1059_v35  ;;  %v533_v53 = vadd.f32 %v469_v38, %v273_v44  ;;  %v471_v56 = vmul.f32 %v1661_v55, %v981_v46 }
  0x6a   :  { %v275_v54 = vadd.f32 %v1645_v1, %v207_v45  ;;  %v208_v57 = vmul.f32 %v1635_v3, %v854_v47  ;;  %727 = vst [vmem:[%s1794_s6 + $0x180] sm:$0xff] %v663_v7  ;;  %v534_v58 = vadd.f32 %v470_v43, %v274_v50  ;;  %v857_v60 = vunpack.c.l.bf16 %v1029_v48  ;;  %v1063_v47 = vld [vmem:[%s1791_s3 + $0xf0] sm:$0xff]  }
  0x6b   :  { %v664_v20 = vmax.f32 %v600_v49, 0.0  ;;  %v472_v59 = vmul.f32 %v1661_v55, %v982_v51  ;;  %v601_v62 = vadd.f32 %v1672_v61, %v533_v53  ;;  %v985_v2 = vunpack.c.l.bf16 %v1060_v52 }
  0x6c   :  { %v535_v63 = vadd.f32 %v471_v56, %v275_v54  ;;  %v276_v0 = vadd.f32 %v1645_v1, %v208_v57  ;;  %v602_v4 = vadd.f32 %v1672_v61, %v534_v58  ;;  %v209_v5 = vmul.f32 %v1635_v3, %v857_v60 }
  0x6d   :  { %728 = vst [vmem:[%s1794_s6 + $0x188] sm:$0xff] %v664_v20  ;;  %v858_v6 = vunpack.c.h.bf16 %v1029_v48  ;;  %v986_v8 = vunpack.c.h.bf16 %v1060_v52  ;;  %v665_v11 = vmax.f32 %v601_v62, 0.0  ;;  %v473_v14 = vmul.f32 %v1661_v55, %v985_v2  ;;  %v1064_v2 = vld [vmem:[%s1791_s3 + $0xf8] sm:$0xff]  }
  0x6e   :  { %v603_v12 = vadd.f32 %v1672_v61, %v535_v63  ;;  %v536_v13 = vadd.f32 %v472_v59, %v276_v0  ;;  %v666_v15 = vmax.f32 %v602_v4, 0.0  ;;  %v277_v16 = vadd.f32 %v1645_v1, %v209_v5  ;;  %v1033_v0 = vld [vmem:[%s1788_s0 + $0xf8] sm:$0xff]  }
  0x6f   :  { %v210_v17 = vmul.f32 %v1635_v3, %v858_v6  ;;  %v474_v18 = vmul.f32 %v1661_v55, %v986_v8  ;;  %729 = vst [vmem:[%s1794_s6 + $0x190] sm:$0xff] %v665_v11  ;;  %v861_v23 = vunpack.c.l.bf16 %v1030_v9  ;;  %v989_v24 = vunpack.c.l.bf16 %v1061_v10 }
  0x70   :  { %v667_v21 = vmax.f32 %v603_v12, 0.0  ;;  %v604_v22 = vadd.f32 %v1672_v61, %v536_v13  ;;  %730 = vst [vmem:[%s1794_s6 + $0x198] sm:$0xff] %v666_v15  ;;  %v537_v25 = vadd.f32 %v473_v14, %v277_v16  ;;  %v862_v27 = vunpack.c.h.bf16 %v1030_v9 }
  0x71   :  { %v278_v26 = vadd.f32 %v1645_v1, %v210_v17  ;;  %v990_v28 = vunpack.c.h.bf16 %v1061_v10  ;;  %v211_v31 = vmul.f32 %v1635_v3, %v861_v23  ;;  %v475_v32 = vmul.f32 %v1661_v55, %v989_v24 }
  0x72   :  { %731 = vst [vmem:[%s1794_s6 + $0x1a0] sm:$0xff] %v667_v21  ;;  %v668_v30 = vmax.f32 %v604_v22, 0.0  ;;  %v865_v33 = vunpack.c.l.bf16 %v1031_v19  ;;  %v605_v34 = vadd.f32 %v1672_v61, %v537_v25  ;;  %v212_v36 = vmul.f32 %v1635_v3, %v862_v27 }
  0x73   :  { %v538_v35 = vadd.f32 %v474_v18, %v278_v26  ;;  %v476_v37 = vmul.f32 %v1661_v55, %v990_v28  ;;  %v279_v38 = vadd.f32 %v1645_v1, %v211_v31  ;;  %v993_v40 = vunpack.c.l.bf16 %v1062_v29 }
  0x74   :  { %732 = vst [vmem:[%s1794_s6 + $0x1a8] sm:$0xff] %v668_v30  ;;  %v213_v39 = vmul.f32 %v1635_v3, %v865_v33  ;;  %v866_v41 = vunpack.c.h.bf16 %v1031_v19  ;;  %v669_v43 = vmax.f32 %v605_v34, 0.0  ;;  %v280_v45 = vadd.f32 %v1645_v1, %v212_v36 }
  0x75   :  { %v606_v44 = vadd.f32 %v1672_v61, %v538_v35  ;;  %v994_v46 = vunpack.c.h.bf16 %v1062_v29  ;;  %v539_v48 = vadd.f32 %v475_v32, %v279_v38  ;;  %v477_v49 = vmul.f32 %v1661_v55, %v993_v40 }
  0x76   :  { %v281_v7 = vadd.f32 %v1645_v1, %v213_v39  ;;  %v214_v50 = vmul.f32 %v1635_v3, %v866_v41  ;;  %733 = vst [vmem:[%s1794_s6 + $0x1b0] sm:$0xff] %v669_v43  ;;  %v540_v52 = vadd.f32 %v476_v37, %v280_v45  ;;  %v869_v54 = vunpack.c.l.bf16 %v1032_v42 }
  0x77   :  { %v670_v51 = vmax.f32 %v606_v44, 0.0  ;;  %v478_v53 = vmul.f32 %v1661_v55, %v994_v46  ;;  %v607_v56 = vadd.f32 %v1672_v61, %v539_v48  ;;  %v997_v58 = vunpack.c.l.bf16 %v1063_v47 }
  0x78   :  { %v541_v57 = vadd.f32 %v477_v49, %v281_v7  ;;  %v282_v20 = vadd.f32 %v1645_v1, %v214_v50  ;;  %v608_v59 = vadd.f32 %v1672_v61, %v540_v52  ;;  %v215_v60 = vmul.f32 %v1635_v3, %v869_v54 }
  0x79   :  { %734 = vst [vmem:[%s1794_s6 + $0x1b8] sm:$0xff] %v670_v51  ;;  %v870_v62 = vunpack.c.h.bf16 %v1032_v42  ;;  %v998_v63 = vunpack.c.h.bf16 %v1063_v47  ;;  %v671_v4 = vmax.f32 %v607_v56, 0.0  ;;  %v479_v8 = vmul.f32 %v1661_v55, %v997_v58 }
  0x7a   :  { %v609_v5 = vadd.f32 %v1672_v61, %v541_v57  ;;  %v542_v6 = vadd.f32 %v478_v53, %v282_v20  ;;  %v672_v9 = vmax.f32 %v608_v59, 0.0  ;;  %v283_v10 = vadd.f32 %v1645_v1, %v215_v60 }
  0x7b   :  { %v216_v11 = vmul.f32 %v1635_v3, %v870_v62  ;;  %v480_v12 = vmul.f32 %v1661_v55, %v998_v63  ;;  %735 = vst [vmem:[%s1794_s6 + $0x1c0] sm:$0xff] %v671_v4  ;;  %v873_v15 = vunpack.c.l.bf16 %v1033_v0  ;;  %v1001_v16 = vunpack.c.l.bf16 %v1064_v2 }
  0x7c   :  { %v673_v13 = vmax.f32 %v609_v5, 0.0  ;;  %v610_v14 = vadd.f32 %v1672_v61, %v542_v6  ;;  %736 = vst [vmem:[%s1794_s6 + $0x1c8] sm:$0xff] %v672_v9  ;;  %v543_v17 = vadd.f32 %v479_v8, %v283_v10  ;;  %v874_v19 = vunpack.c.h.bf16 %v1033_v0 }
  0x7d   :  { %v284_v18 = vadd.f32 %v1645_v1, %v216_v11  ;;  %v1002_v21 = vunpack.c.h.bf16 %v1064_v2  ;;  %v217_v23 = vmul.f32 %v1635_v3, %v873_v15  ;;  %v481_v24 = vmul.f32 %v1661_v55, %v1001_v16 }
  0x7e   :  { %737 = vst [vmem:[%s1794_s6 + $0x1d0] sm:$0xff] %v673_v13  ;;  %v674_v22 = vmax.f32 %v610_v14, 0.0  ;;  %v611_v25 = vadd.f32 %v1672_v61, %v543_v17  ;;  %v218_v27 = vmul.f32 %v1635_v3, %v874_v19 }
  0x7f   :  { %v544_v26 = vadd.f32 %v480_v12, %v284_v18  ;;  %v482_v28 = vmul.f32 %v1661_v55, %v1002_v21  ;;  %v285_v29 = vadd.f32 %v1645_v1, %v217_v23 }
  0x80   :  { %738 = vst [vmem:[%s1794_s6 + $0x1d8] sm:$0xff] %v674_v22  ;;  %v675_v30 = vmax.f32 %v611_v25, 0.0  ;;  %v286_v32 = vadd.f32 %v1645_v1, %v218_v27 }
  0x81   :  { %v612_v31 = vadd.f32 %v1672_v61, %v544_v26  ;;  %v545_v33 = vadd.f32 %v481_v24, %v285_v29 }
  0x82   :  { %739 = vst [vmem:[%s1794_s6 + $0x1e0] sm:$0xff] %v675_v30  ;;  %v546_v3 = vadd.f32 %v482_v28, %v286_v32 }
  0x83   :  { %v676_v34 = vmax.f32 %v612_v31, 0.0  ;;  %v613_v55 = vadd.f32 %v1672_v61, %v545_v33 }
  0x84   :  { %v614_v35 = vadd.f32 %v1672_v61, %v546_v3 }
  0x85   :  { %740 = vst [vmem:[%s1794_s6 + $0x1e8] sm:$0xff] %v676_v34  ;;  %v677_v36 = vmax.f32 %v613_v55, 0.0 }
  0x86   :  { %v678_v37 = vmax.f32 %v614_v35, 0.0 }
  0x87   :  { %741 = vst [vmem:[%s1794_s6 + $0x1f0] sm:$0xff] %v677_v36 }
  0x88   :  { %742 = vst [vmem:[%s1794_s6 + $0x1f8] sm:$0xff] %v678_v37 }

</bundles_post_ra>
